<compile_context>
chip_gen: v7x
topology: tpu7x:2x2x1
jax: 0.10.0
libtpu: 0.0.40
codegen_flags: <defaults>
</compile_context>

<pallas_src>
import jax
import jax.numpy as jnp
from jax import lax
from jax.experimental import pallas as pl
from jax.experimental.pallas import tpu as pltpu

HIDDEN = 256
NUM_LAYERS = 3


# ----------------------------- Pallas kernel ------------------------------ #
def encoder_gru_kernel(x_ref, h0_ref, w_ih_ref, w_hh_ref, b_gi_ref, b_hh_n_ref,
                       out_ref, hlast_ref, act_scratch, gi_scratch):
    """One grid step == one GRU layer.  Everything VMEM-resident.

    x_ref:      (S, B, H)   f32   layer-0 input (embedded tokens), constant block
    h0_ref:     (1, B, H)   f32   this layer's initial hidden
    w_ih_ref:   (1, H, 3H)  bf16  this layer's input-projection weights (pre-transposed)
    w_hh_ref:   (1, H, 3H)  bf16  this layer's hidden-projection weights (pre-transposed)
    b_gi_ref:   (1, 1, 3H)  f32   b_ih + [b_hh_r | b_hh_z | 0]  (folded bias)
    b_hh_n_ref: (1, 1, H)   f32   n-gate slice of b_hh (must stay inside r*(...))
    out_ref:    (S, B, H)   f32   last layer's outputs, constant block (written at last layer)
    hlast_ref:  (1, B, H)   f32   this layer's final hidden
    act_scratch:(S, B, H)   f32   inter-layer activations (persists across grid steps)
    gi_scratch: (S, B, 3H)  f32   precomputed input projection for current layer
    """
    layer = pl.program_id(0)
    n_layers = pl.num_programs(0)
    S, B, H = act_scratch.shape
    H3 = 3 * H

    # Layer 0 reads the embedded tokens; later layers read the previous layer's
    # activations already sitting in act_scratch.
    @pl.when(layer == 0)
    def _():
        act_scratch[...] = x_ref[...]

    # ---- whole-sequence input projection: one big MXU matmul (bf16 x bf16 -> f32) ----
    x_flat = act_scratch[...].reshape(S * B, H).astype(jnp.bfloat16)
    gi = jnp.dot(x_flat, w_ih_ref[0],
                 preferred_element_type=jnp.float32) + b_gi_ref[0]
    gi_scratch[...] = gi.reshape(S, B, H3)

    # per-layer constants, hoisted out of the time loop
    w_hh = w_hh_ref[0]                                         # (H, 3H) bf16
    b_hh_n = jnp.broadcast_to(b_hh_n_ref[0], (B, H))           # hoisted broadcast
    h0 = h0_ref[0]                                             # (B, H) f32

    # ---- serial recurrence: only h @ W_hh + gate math per step ----------------
    def step(t, h):
        gi_t = gi_scratch[t]                                   # (B, 3H) f32
        gh = jnp.dot(h.astype(jnp.bfloat16), w_hh,
                     preferred_element_type=jnp.float32)       # (B, 3H) f32
        rz = jax.nn.sigmoid(gi_t[:, :2 * H] + gh[:, :2 * H])   # [r | z]
        r = rz[:, :H]
        z = rz[:, H:]
        n = jnp.tanh(gi_t[:, 2 * H:] + r * (gh[:, 2 * H:] + b_hh_n))
        h_new = n + z * (h - n)          # == (1 - z) * n + z * h
        act_scratch[t] = h_new           # next layer's input (overwrites are safe:
        return h_new                     # gi for this layer was precomputed above)

    h_final = lax.fori_loop(0, S, step, h0, unroll=min(S, 8))
    hlast_ref[0] = h_final

    @pl.when(layer == n_layers - 1)
    def _():
        out_ref[...] = act_scratch[...]


def encoder_gru(x, h0, w_ih_t_bf16, w_hh_t_bf16, b_ih, b_hh):
    """x: [S, B, H] f32, h0: [L, B, H] f32, stacked per-layer weights (bf16) / biases (f32).
    Returns (out [S, B, H] f32, h_last [L, B, H] f32)."""
    S, B, H = x.shape
    L = NUM_LAYERS
    H3 = 3 * H

    # Fold b_ih + the r/z portions of b_hh into the precomputed projection bias;
    # only the n-gate b_hh slice is needed inside the time loop.
    b_gi = b_ih + jnp.concatenate(
        [b_hh[:, :, :2 * H], jnp.zeros_like(b_hh[:, :, 2 * H:])], axis=-1)   # [L,1,3H]
    b_hh_n = b_hh[:, :, 2 * H:]                                              # [L,1,H]

    grid_spec = pltpu.PrefetchScalarGridSpec(
        num_scalar_prefetch=0,
        grid=(L,),   # one grid step per layer -> layer l+1 weights prefetched behind layer l
        in_specs=[
            pl.BlockSpec((S, B, H), lambda l: (0, 0, 0)),      # x (embedded), fetched once
            pl.BlockSpec((1, B, H), lambda l: (l, 0, 0)),      # h0 of layer l
            pl.BlockSpec((1, H, H3), lambda l: (l, 0, 0)),     # W_ih^T of layer l (bf16)
            pl.BlockSpec((1, H, H3), lambda l: (l, 0, 0)),     # W_hh^T of layer l (bf16)
            pl.BlockSpec((1, 1, H3), lambda l: (l, 0, 0)),     # folded gi bias of layer l
            pl.BlockSpec((1, 1, H), lambda l: (l, 0, 0)),      # b_hh n-gate of layer l
        ],
        out_specs=(
            pl.BlockSpec((S, B, H), lambda l: (0, 0, 0)),      # enc_output (resident)
            pl.BlockSpec((1, B, H), lambda l: (l, 0, 0)),      # enc_hidden of layer l
        ),
        scratch_shapes=[
            pltpu.VMEM((S, B, H), jnp.float32),     # inter-layer activations
            pltpu.VMEM((S, B, H3), jnp.float32),    # precomputed gi
        ],
    )
    out, h_last = pl.pallas_call(
        encoder_gru_kernel,
        out_shape=(
            jax.ShapeDtypeStruct((S, B, H), jnp.float32),
            jax.ShapeDtypeStruct((L, B, H), jnp.float32),
        ),
        grid_spec=grid_spec,
        compiler_params=pltpu.CompilerParams(
            dimension_semantics=("arbitrary",),   # layers are sequentially dependent
            vmem_limit_bytes=32 * 1024 * 1024,
        ),
    )(x, h0, w_ih_t_bf16, w_hh_t_bf16, b_gi, b_hh_n)
    return out, h_last


# ----------------------------- Encoder wrapper ----------------------------- #
def init_encoder_params(key, input_dim):
    """Deterministic init matching the module's parameter shapes (stacked per layer)."""
    params = {}
    k_emb, key = jax.random.split(key)
    # nn.Embedding(input_dim, 256): N(0, 1)
    params["embedding"] = jax.random.normal(k_emb, (input_dim, HIDDEN), jnp.float32)
    bound = 1.0 / jnp.sqrt(jnp.float32(HIDDEN))
    w_ih, w_hh, b_ih, b_hh = [], [], [], []
    for _ in range(NUM_LAYERS):
        k1, k2, k3, k4, key = jax.random.split(key, 5)
        # PyTorch stores weight_ih_l{l}: [3H, in]; we keep them transposed for x @ W.
        w_ih.append(jax.random.uniform(k1, (HIDDEN, 3 * HIDDEN), jnp.float32, -bound, bound))
        w_hh.append(jax.random.uniform(k2, (HIDDEN, 3 * HIDDEN), jnp.float32, -bound, bound))
        b_ih.append(jax.random.uniform(k3, (1, 3 * HIDDEN), jnp.float32, -bound, bound))
        b_hh.append(jax.random.uniform(k4, (1, 3 * HIDDEN), jnp.float32, -bound, bound))
    params["w_ih"] = jnp.stack(w_ih, axis=0)   # [L, H, 3H]
    params["w_hh"] = jnp.stack(w_hh, axis=0)   # [L, H, 3H]
    params["b_ih"] = jnp.stack(b_ih, axis=0)   # [L, 1, 3H]
    params["b_hh"] = jnp.stack(b_hh, axis=0)   # [L, 1, 3H]
    return params


@jax.jit
def encoder_forward(params, src, hidden):
    """
    src:    [src_len, batch] int32 token ids
    hidden: [3, batch, 256] f32
    returns (enc_output [src_len, batch, 256], enc_hidden [3, batch, 256])
    """
    # src.transpose(0,1) -> embedding -> dropout -> transpose back is equivalent to
    # embedding directly on [S, B] (embedding is elementwise over tokens).
    embedded = jnp.take(params["embedding"], src, axis=0)   # [S, B, 256]
    # TODO(synk): training-mode dropout (random mask) not reproduced; forward uses
    # eval semantics (identity), matching module.eval().

    # Pad batch to a multiple of 8 for clean (8,128) sublane tiling (e.g. 60 -> 64).
    S, B, _ = embedded.shape
    B_pad = ((B + 7) // 8) * 8
    if B_pad != B:
        embedded = jnp.pad(embedded, ((0, 0), (0, B_pad - B), (0, 0)))
        hidden = jnp.pad(hidden, ((0, 0), (0, B_pad - B), (0, 0)))

    out, h_last = encoder_gru(
        embedded, hidden,
        params["w_ih"].astype(jnp.bfloat16),   # bf16 MXU operands, f32 accumulation
        params["w_hh"].astype(jnp.bfloat16),
        params["b_ih"], params["b_hh"])

    if B_pad != B:
        out = out[:, :B]
        h_last = h_last[:, :B]
    return out, h_last


# --------------------------- pure-JAX reference ---------------------------- #
def _reference_forward(params, src, hidden):
    H = HIDDEN
    x = jnp.take(params["embedding"], src, axis=0)
    h_finals = []
    for layer in range(NUM_LAYERS):
        w_ih = params["w_ih"][layer]; w_hh = params["w_hh"][layer]
        b_ih = params["b_ih"][layer]; b_hh = params["b_hh"][layer]

        def step(h, x_t):
            gi = x_t @ w_ih + b_ih
            gh = h @ w_hh + b_hh
            r = jax.nn.sigmoid(gi[:, :H] + gh[:, :H])
            z = jax.nn.sigmoid(gi[:, H:2 * H] + gh[:, H:2 * H])
            n = jnp.tanh(gi[:, 2 * H:] + r * gh[:, 2 * H:])
            h_new = (1.0 - z) * n + z * h
            return h_new, h_new

        h_last, outs = lax.scan(step, hidden[layer], x)
        x = outs
        h_finals.append(h_last)
    return x, jnp.stack(h_finals, axis=0)


# ----------------------------------- main ---------------------------------- #
if __name__ == "__main__":
    key = jax.random.PRNGKey(0)
    input_dim = 32      # vocab size
    src_len = 8
    batch = 8           # small; real module's initHidden uses 60 (padded to 64 internally)

    k_params, k_src = jax.random.split(key)
    params = init_encoder_params(k_params, input_dim)

    src = jax.random.randint(k_src, (src_len, batch), 0, input_dim, dtype=jnp.int32)
    hidden0 = jnp.zeros((NUM_LAYERS, batch, HIDDEN), jnp.float32)

    enc_output, enc_hidden = encoder_forward(params, src, hidden0)
    jax.block_until_ready((enc_output, enc_hidden))

    assert enc_output.shape == (src_len, batch, HIDDEN)
    assert enc_hidden.shape == (NUM_LAYERS, batch, HIDDEN)

    ref_out, ref_hidden = _reference_forward(params, src, hidden0)
    # Tolerance loosened vs. the f32 kernel because matmul operands are bf16
    # (f32 accumulation); gate math remains f32.
    assert jnp.allclose(enc_output, ref_out, rtol=5e-2, atol=5e-2)
    assert jnp.allclose(enc_hidden, ref_hidden, rtol=5e-2, atol=5e-2)

    print("KERNEL_OK")
</pallas_src>

<mosaic_0001>
module attributes {stable_mosaic.version = 11 : i64} {
  func.func @encoder_gru_kernel(%arg0: i32, %arg1: memref<8x8x256xf32, #tpu.memory_space<vmem>>, %arg2: memref<1x8x256xf32, #tpu.memory_space<vmem>>, %arg3: memref<1x256x768xbf16, #tpu.memory_space<vmem>>, %arg4: memref<1x256x768xbf16, #tpu.memory_space<vmem>>, %arg5: memref<1x1x768xf32, #tpu.memory_space<vmem>>, %arg6: memref<1x1x256xf32, #tpu.memory_space<vmem>>, %arg7: memref<8x8x256xf32, #tpu.memory_space<vmem>>, %arg8: memref<1x8x256xf32, #tpu.memory_space<vmem>>, %arg9: memref<8x8x256xf32, #tpu.memory_space<vmem>>, %arg10: memref<8x8x768xf32, #tpu.memory_space<vmem>>) attributes {dimension_semantics = [#tpu.dimension_semantics<arbitrary>], iteration_bounds = array<i64: 3>, scalar_prefetch = 0 : i64, scratch_operands = 2 : i64, tpu.core_type = #tpu.core_type<tc>, window_params = [{pipeline_mode = #tpu.pipeline_mode<synchronous>, transform_indices = @transform_0, window_bounds = array<i64: 8, 8, 256>}, {transform_indices = @transform_1, window_bounds = array<i64: 1, 8, 256>}, {transform_indices = @transform_2, window_bounds = array<i64: 1, 256, 768>}, {transform_indices = @transform_3, window_bounds = array<i64: 1, 256, 768>}, {transform_indices = @transform_4, window_bounds = array<i64: 1, 1, 768>}, {transform_indices = @transform_5, window_bounds = array<i64: 1, 1, 256>}, {pipeline_mode = #tpu.pipeline_mode<synchronous>, transform_indices = @transform_6, window_bounds = array<i64: 8, 8, 256>}, {transform_indices = @transform_7, window_bounds = array<i64: 1, 8, 256>}]} {
    %c0_i32 = arith.constant 0 : i32
    %0 = arith.cmpi eq, %arg0, %c0_i32 : i32
    %1 = arith.extui %0 : i1 to i32
    %c0_i32_0 = arith.constant 0 : i32
    %2 = arith.cmpi ne, %1, %c0_i32_0 : i32
    scf.if %2 {
      %c0_75 = arith.constant 0 : index
      %c0_76 = arith.constant 0 : index
      %c0_77 = arith.constant 0 : index
      %253 = vector.load %arg1[%c0_75, %c0_76, %c0_77] : memref<8x8x256xf32, #tpu.memory_space<vmem>>, vector<8x8x256xf32>
      %c0_78 = arith.constant 0 : index
      %c0_79 = arith.constant 0 : index
      %c0_80 = arith.constant 0 : index
      %254 = vector.load %arg9[%c0_78, %c0_79, %c0_80] : memref<8x8x256xf32, #tpu.memory_space<vmem>>, vector<8x8x256xf32>
      tpu.vector_store %arg9[%c0_78, %c0_79, %c0_80], %253 {strides = array<i32>} : memref<8x8x256xf32, #tpu.memory_space<vmem>>, vector<8x8x256xf32>,
    } else {
    }
    %c0 = arith.constant 0 : index
    %c0_1 = arith.constant 0 : index
    %c0_2 = arith.constant 0 : index
    %3 = vector.load %arg9[%c0, %c0_1, %c0_2] : memref<8x8x256xf32, #tpu.memory_space<vmem>>, vector<8x8x256xf32>
    %4 = vector.shape_cast %3 : vector<8x8x256xf32> to vector<64x256xf32>
    %5 = arith.truncf %4 : vector<64x256xf32> to vector<64x256xbf16>
    %c0_3 = arith.constant 0 : index
    %c0_4 = arith.constant 0 : index
    %c0_5 = arith.constant 0 : index
    %6 = vector.load %arg3[%c0_3, %c0_4, %c0_5] : memref<1x256x768xbf16, #tpu.memory_space<vmem>>, vector<1x256x768xbf16>
    %7 = vector.shape_cast %6 : vector<1x256x768xbf16> to vector<256x768xbf16>
    %cst = arith.constant dense<0.000000e+00> : vector<64x768xf32>
    %8 = tpu.matmul %5, %7, %cst {dimension_numbers = #tpu.dot_dimension_numbers<[1], [0], [0], [1], [0, 0, 1, 1], [], []>} : vector<64x256xbf16>, vector<256x768xbf16>, vector<64x768xf32> -> vector<64x768xf32>
    %c0_6 = arith.constant 0 : index
    %c0_7 = arith.constant 0 : index
    %c0_8 = arith.constant 0 : index
    %9 = vector.load %arg5[%c0_6, %c0_7, %c0_8] : memref<1x1x768xf32, #tpu.memory_space<vmem>>, vector<1x1x768xf32>
    %10 = vector.shape_cast %9 : vector<1x1x768xf32> to vector<1x768xf32>
    %11 = vector.broadcast %10 : vector<1x768xf32> to vector<64x768xf32>
    %12 = arith.addf %8, %11 : vector<64x768xf32>
    %13 = vector.shape_cast %12 : vector<64x768xf32> to vector<8x8x768xf32>
    %c0_9 = arith.constant 0 : index
    %c0_10 = arith.constant 0 : index
    %c0_11 = arith.constant 0 : index
    %14 = vector.load %arg10[%c0_9, %c0_10, %c0_11] : memref<8x8x768xf32, #tpu.memory_space<vmem>>, vector<8x8x768xf32>
    tpu.vector_store %arg10[%c0_9, %c0_10, %c0_11], %13 {strides = array<i32>} : memref<8x8x768xf32, #tpu.memory_space<vmem>>, vector<8x8x768xf32>,
    %c0_12 = arith.constant 0 : index
    %c0_13 = arith.constant 0 : index
    %c0_14 = arith.constant 0 : index
    %15 = vector.load %arg4[%c0_12, %c0_13, %c0_14] : memref<1x256x768xbf16, #tpu.memory_space<vmem>>, vector<1x256x768xbf16>
    %16 = vector.shape_cast %15 : vector<1x256x768xbf16> to vector<256x768xbf16>
    %c0_15 = arith.constant 0 : index
    %c0_16 = arith.constant 0 : index
    %c0_17 = arith.constant 0 : index
    %17 = vector.load %arg6[%c0_15, %c0_16, %c0_17] : memref<1x1x256xf32, #tpu.memory_space<vmem>>, vector<1x1x256xf32>
    %18 = vector.shape_cast %17 : vector<1x1x256xf32> to vector<1x256xf32>
    %19 = vector.shape_cast %18 : vector<1x256xf32> to vector<1x256xf32>
    %20 = vector.broadcast %19 : vector<1x256xf32> to vector<8x256xf32>
    %c0_18 = arith.constant 0 : index
    %c0_19 = arith.constant 0 : index
    %c0_20 = arith.constant 0 : index
    %21 = vector.load %arg2[%c0_18, %c0_19, %c0_20] : memref<1x8x256xf32, #tpu.memory_space<vmem>>, vector<1x8x256xf32>
    %22 = vector.shape_cast %21 : vector<1x8x256xf32> to vector<8x256xf32>
    %c0_i32_21 = arith.constant 0 : i32
    %23 = arith.index_cast %c0_i32_21 : i32 to index
    %c0_22 = arith.constant 0 : index
    %c0_23 = arith.constant 0 : index
    %24 = vector.load %arg10[%23, %c0_22, %c0_23] : memref<8x8x768xf32, #tpu.memory_space<vmem>>, vector<1x8x768xf32>
    %25 = vector.shape_cast %24 : vector<1x8x768xf32> to vector<8x768xf32>
    %26 = arith.truncf %22 : vector<8x256xf32> to vector<8x256xbf16>
    %cst_24 = arith.constant dense<0.000000e+00> : vector<8x768xf32>
    %27 = tpu.matmul %26, %16, %cst_24 {dimension_numbers = #tpu.dot_dimension_numbers<[1], [0], [0], [1], [0, 0, 1, 1], [], []>} : vector<8x256xbf16>, vector<256x768xbf16>, vector<8x768xf32> -> vector<8x768xf32>
    %28 = vector.extract_strided_slice %25 {offsets = [0, 0], sizes = [8, 512], strides = [1, 1]} : vector<8x768xf32> to vector<8x512xf32>
    %29 = vector.extract_strided_slice %27 {offsets = [0, 0], sizes = [8, 512], strides = [1, 1]} : vector<8x768xf32> to vector<8x512xf32>
    %30 = arith.addf %28, %29 : vector<8x512xf32>
    %31 = arith.negf %30 : vector<8x512xf32>
    %32 = math.exp %31 : vector<8x512xf32>
    %cst_25 = arith.constant 1.000000e+00 : f32
    %33 = vector.broadcast %cst_25 : f32 to vector<8x512xf32>
    %34 = arith.addf %33, %32 : vector<8x512xf32>
    %35 = arith.divf %33, %34 : vector<8x512xf32>
    %36 = vector.extract_strided_slice %35 {offsets = [0, 0], sizes = [8, 256], strides = [1, 1]} : vector<8x512xf32> to vector<8x256xf32>
    %37 = vector.extract_strided_slice %35 {offsets = [0, 256], sizes = [8, 256], strides = [1, 1]} : vector<8x512xf32> to vector<8x256xf32>
    %38 = vector.extract_strided_slice %25 {offsets = [0, 512], sizes = [8, 256], strides = [1, 1]} : vector<8x768xf32> to vector<8x256xf32>
    %39 = vector.extract_strided_slice %27 {offsets = [0, 512], sizes = [8, 256], strides = [1, 1]} : vector<8x768xf32> to vector<8x256xf32>
    %40 = arith.addf %39, %20 : vector<8x256xf32>
    %41 = arith.mulf %36, %40 : vector<8x256xf32>
    %42 = arith.addf %38, %41 : vector<8x256xf32>
    %43 = math.tanh %42 : vector<8x256xf32>
    %44 = arith.subf %22, %43 : vector<8x256xf32>
    %45 = arith.mulf %37, %44 : vector<8x256xf32>
    %46 = arith.addf %43, %45 : vector<8x256xf32>
    %47 = arith.index_cast %c0_i32_21 : i32 to index
    %c0_26 = arith.constant 0 : index
    %c0_27 = arith.constant 0 : index
    %48 = vector.load %arg9[%47, %c0_26, %c0_27] : memref<8x8x256xf32, #tpu.memory_space<vmem>>, vector<1x8x256xf32>
    %49 = vector.shape_cast %48 : vector<1x8x256xf32> to vector<8x256xf32>
    %50 = vector.shape_cast %46 : vector<8x256xf32> to vector<1x8x256xf32>
    tpu.vector_store %arg9[%47, %c0_26, %c0_27], %50 {strides = array<i32>} : memref<8x8x256xf32, #tpu.memory_space<vmem>>, vector<1x8x256xf32>,
    %c1_i32 = arith.constant 1 : i32
    %51 = arith.index_cast %c1_i32 : i32 to index
    %c0_28 = arith.constant 0 : index
    %c0_29 = arith.constant 0 : index
    %52 = vector.load %arg10[%51, %c0_28, %c0_29] : memref<8x8x768xf32, #tpu.memory_space<vmem>>, vector<1x8x768xf32>
    %53 = vector.shape_cast %52 : vector<1x8x768xf32> to vector<8x768xf32>
    %54 = arith.truncf %46 : vector<8x256xf32> to vector<8x256xbf16>
    %cst_30 = arith.constant dense<0.000000e+00> : vector<8x768xf32>
    %55 = tpu.matmul %54, %16, %cst_30 {dimension_numbers = #tpu.dot_dimension_numbers<[1], [0], [0], [1], [0, 0, 1, 1], [], []>} : vector<8x256xbf16>, vector<256x768xbf16>, vector<8x768xf32> -> vector<8x768xf32>
    %56 = vector.extract_strided_slice %53 {offsets = [0, 0], sizes = [8, 512], strides = [1, 1]} : vector<8x768xf32> to vector<8x512xf32>
    %57 = vector.extract_strided_slice %55 {offsets = [0, 0], sizes = [8, 512], strides = [1, 1]} : vector<8x768xf32> to vector<8x512xf32>
    %58 = arith.addf %56, %57 : vector<8x512xf32>
    %59 = arith.negf %58 : vector<8x512xf32>
    %60 = math.exp %59 : vector<8x512xf32>
    %cst_31 = arith.constant 1.000000e+00 : f32
    %61 = vector.broadcast %cst_31 : f32 to vector<8x512xf32>
    %62 = arith.addf %61, %60 : vector<8x512xf32>
    %63 = arith.divf %61, %62 : vector<8x512xf32>
    %64 = vector.extract_strided_slice %63 {offsets = [0, 0], sizes = [8, 256], strides = [1, 1]} : vector<8x512xf32> to vector<8x256xf32>
    %65 = vector.extract_strided_slice %63 {offsets = [0, 256], sizes = [8, 256], strides = [1, 1]} : vector<8x512xf32> to vector<8x256xf32>
    %66 = vector.extract_strided_slice %53 {offsets = [0, 512], sizes = [8, 256], strides = [1, 1]} : vector<8x768xf32> to vector<8x256xf32>
    %67 = vector.extract_strided_slice %55 {offsets = [0, 512], sizes = [8, 256], strides = [1, 1]} : vector<8x768xf32> to vector<8x256xf32>
    %68 = arith.addf %67, %20 : vector<8x256xf32>
    %69 = arith.mulf %64, %68 : vector<8x256xf32>
    %70 = arith.addf %66, %69 : vector<8x256xf32>
    %71 = math.tanh %70 : vector<8x256xf32>
    %72 = arith.subf %46, %71 : vector<8x256xf32>
    %73 = arith.mulf %65, %72 : vector<8x256xf32>
    %74 = arith.addf %71, %73 : vector<8x256xf32>
    %75 = arith.index_cast %c1_i32 : i32 to index
    %c0_32 = arith.constant 0 : index
    %c0_33 = arith.constant 0 : index
    %76 = vector.load %arg9[%75, %c0_32, %c0_33] : memref<8x8x256xf32, #tpu.memory_space<vmem>>, vector<1x8x256xf32>
    %77 = vector.shape_cast %76 : vector<1x8x256xf32> to vector<8x256xf32>
    %78 = vector.shape_cast %74 : vector<8x256xf32> to vector<1x8x256xf32>
    tpu.vector_store %arg9[%75, %c0_32, %c0_33], %78 {strides = array<i32>} : memref<8x8x256xf32, #tpu.memory_space<vmem>>, vector<1x8x256xf32>,
    %c2_i32 = arith.constant 2 : i32
    %79 = arith.index_cast %c2_i32 : i32 to index
    %c0_34 = arith.constant 0 : index
    %c0_35 = arith.constant 0 : index
    %80 = vector.load %arg10[%79, %c0_34, %c0_35] : memref<8x8x768xf32, #tpu.memory_space<vmem>>, vector<1x8x768xf32>
    %81 = vector.shape_cast %80 : vector<1x8x768xf32> to vector<8x768xf32>
    %82 = arith.truncf %74 : vector<8x256xf32> to vector<8x256xbf16>
    %cst_36 = arith.constant dense<0.000000e+00> : vector<8x768xf32>
    %83 = tpu.matmul %82, %16, %cst_36 {dimension_numbers = #tpu.dot_dimension_numbers<[1], [0], [0], [1], [0, 0, 1, 1], [], []>} : vector<8x256xbf16>, vector<256x768xbf16>, vector<8x768xf32> -> vector<8x768xf32>
    %84 = vector.extract_strided_slice %81 {offsets = [0, 0], sizes = [8, 512], strides = [1, 1]} : vector<8x768xf32> to vector<8x512xf32>
    %85 = vector.extract_strided_slice %83 {offsets = [0, 0], sizes = [8, 512], strides = [1, 1]} : vector<8x768xf32> to vector<8x512xf32>
    %86 = arith.addf %84, %85 : vector<8x512xf32>
    %87 = arith.negf %86 : vector<8x512xf32>
    %88 = math.exp %87 : vector<8x512xf32>
    %cst_37 = arith.constant 1.000000e+00 : f32
    %89 = vector.broadcast %cst_37 : f32 to vector<8x512xf32>
    %90 = arith.addf %89, %88 : vector<8x512xf32>
    %91 = arith.divf %89, %90 : vector<8x512xf32>
    %92 = vector.extract_strided_slice %91 {offsets = [0, 0], sizes = [8, 256], strides = [1, 1]} : vector<8x512xf32> to vector<8x256xf32>
    %93 = vector.extract_strided_slice %91 {offsets = [0, 256], sizes = [8, 256], strides = [1, 1]} : vector<8x512xf32> to vector<8x256xf32>
    %94 = vector.extract_strided_slice %81 {offsets = [0, 512], sizes = [8, 256], strides = [1, 1]} : vector<8x768xf32> to vector<8x256xf32>
    %95 = vector.extract_strided_slice %83 {offsets = [0, 512], sizes = [8, 256], strides = [1, 1]} : vector<8x768xf32> to vector<8x256xf32>
    %96 = arith.addf %95, %20 : vector<8x256xf32>
    %97 = arith.mulf %92, %96 : vector<8x256xf32>
    %98 = arith.addf %94, %97 : vector<8x256xf32>
    %99 = math.tanh %98 : vector<8x256xf32>
    %100 = arith.subf %74, %99 : vector<8x256xf32>
    %101 = arith.mulf %93, %100 : vector<8x256xf32>
    %102 = arith.addf %99, %101 : vector<8x256xf32>
    %103 = arith.index_cast %c2_i32 : i32 to index
    %c0_38 = arith.constant 0 : index
    %c0_39 = arith.constant 0 : index
    %104 = vector.load %arg9[%103, %c0_38, %c0_39] : memref<8x8x256xf32, #tpu.memory_space<vmem>>, vector<1x8x256xf32>
    %105 = vector.shape_cast %104 : vector<1x8x256xf32> to vector<8x256xf32>
    %106 = vector.shape_cast %102 : vector<8x256xf32> to vector<1x8x256xf32>
    tpu.vector_store %arg9[%103, %c0_38, %c0_39], %106 {strides = array<i32>} : memref<8x8x256xf32, #tpu.memory_space<vmem>>, vector<1x8x256xf32>,
    %c3_i32 = arith.constant 3 : i32
    %107 = arith.index_cast %c3_i32 : i32 to index
    %c0_40 = arith.constant 0 : index
    %c0_41 = arith.constant 0 : index
    %108 = vector.load %arg10[%107, %c0_40, %c0_41] : memref<8x8x768xf32, #tpu.memory_space<vmem>>, vector<1x8x768xf32>
    %109 = vector.shape_cast %108 : vector<1x8x768xf32> to vector<8x768xf32>
    %110 = arith.truncf %102 : vector<8x256xf32> to vector<8x256xbf16>
    %cst_42 = arith.constant dense<0.000000e+00> : vector<8x768xf32>
    %111 = tpu.matmul %110, %16, %cst_42 {dimension_numbers = #tpu.dot_dimension_numbers<[1], [0], [0], [1], [0, 0, 1, 1], [], []>} : vector<8x256xbf16>, vector<256x768xbf16>, vector<8x768xf32> -> vector<8x768xf32>
    %112 = vector.extract_strided_slice %109 {offsets = [0, 0], sizes = [8, 512], strides = [1, 1]} : vector<8x768xf32> to vector<8x512xf32>
    %113 = vector.extract_strided_slice %111 {offsets = [0, 0], sizes = [8, 512], strides = [1, 1]} : vector<8x768xf32> to vector<8x512xf32>
    %114 = arith.addf %112, %113 : vector<8x512xf32>
    %115 = arith.negf %114 : vector<8x512xf32>
    %116 = math.exp %115 : vector<8x512xf32>
    %cst_43 = arith.constant 1.000000e+00 : f32
    %117 = vector.broadcast %cst_43 : f32 to vector<8x512xf32>
    %118 = arith.addf %117, %116 : vector<8x512xf32>
    %119 = arith.divf %117, %118 : vector<8x512xf32>
    %120 = vector.extract_strided_slice %119 {offsets = [0, 0], sizes = [8, 256], strides = [1, 1]} : vector<8x512xf32> to vector<8x256xf32>
    %121 = vector.extract_strided_slice %119 {offsets = [0, 256], sizes = [8, 256], strides = [1, 1]} : vector<8x512xf32> to vector<8x256xf32>
    %122 = vector.extract_strided_slice %109 {offsets = [0, 512], sizes = [8, 256], strides = [1, 1]} : vector<8x768xf32> to vector<8x256xf32>
    %123 = vector.extract_strided_slice %111 {offsets = [0, 512], sizes = [8, 256], strides = [1, 1]} : vector<8x768xf32> to vector<8x256xf32>
    %124 = arith.addf %123, %20 : vector<8x256xf32>
    %125 = arith.mulf %120, %124 : vector<8x256xf32>
    %126 = arith.addf %122, %125 : vector<8x256xf32>
    %127 = math.tanh %126 : vector<8x256xf32>
    %128 = arith.subf %102, %127 : vector<8x256xf32>
    %129 = arith.mulf %121, %128 : vector<8x256xf32>
    %130 = arith.addf %127, %129 : vector<8x256xf32>
    %131 = arith.index_cast %c3_i32 : i32 to index
    %c0_44 = arith.constant 0 : index
    %c0_45 = arith.constant 0 : index
    %132 = vector.load %arg9[%131, %c0_44, %c0_45] : memref<8x8x256xf32, #tpu.memory_space<vmem>>, vector<1x8x256xf32>
    %133 = vector.shape_cast %132 : vector<1x8x256xf32> to vector<8x256xf32>
    %134 = vector.shape_cast %130 : vector<8x256xf32> to vector<1x8x256xf32>
    tpu.vector_store %arg9[%131, %c0_44, %c0_45], %134 {strides = array<i32>} : memref<8x8x256xf32, #tpu.memory_space<vmem>>, vector<1x8x256xf32>,
    %c4_i32 = arith.constant 4 : i32
    %135 = arith.index_cast %c4_i32 : i32 to index
    %c0_46 = arith.constant 0 : index
    %c0_47 = arith.constant 0 : index
    %136 = vector.load %arg10[%135, %c0_46, %c0_47] : memref<8x8x768xf32, #tpu.memory_space<vmem>>, vector<1x8x768xf32>
    %137 = vector.shape_cast %136 : vector<1x8x768xf32> to vector<8x768xf32>
    %138 = arith.truncf %130 : vector<8x256xf32> to vector<8x256xbf16>
    %cst_48 = arith.constant dense<0.000000e+00> : vector<8x768xf32>
    %139 = tpu.matmul %138, %16, %cst_48 {dimension_numbers = #tpu.dot_dimension_numbers<[1], [0], [0], [1], [0, 0, 1, 1], [], []>} : vector<8x256xbf16>, vector<256x768xbf16>, vector<8x768xf32> -> vector<8x768xf32>
    %140 = vector.extract_strided_slice %137 {offsets = [0, 0], sizes = [8, 512], strides = [1, 1]} : vector<8x768xf32> to vector<8x512xf32>
    %141 = vector.extract_strided_slice %139 {offsets = [0, 0], sizes = [8, 512], strides = [1, 1]} : vector<8x768xf32> to vector<8x512xf32>
    %142 = arith.addf %140, %141 : vector<8x512xf32>
    %143 = arith.negf %142 : vector<8x512xf32>
    %144 = math.exp %143 : vector<8x512xf32>
    %cst_49 = arith.constant 1.000000e+00 : f32
    %145 = vector.broadcast %cst_49 : f32 to vector<8x512xf32>
    %146 = arith.addf %145, %144 : vector<8x512xf32>
    %147 = arith.divf %145, %146 : vector<8x512xf32>
    %148 = vector.extract_strided_slice %147 {offsets = [0, 0], sizes = [8, 256], strides = [1, 1]} : vector<8x512xf32> to vector<8x256xf32>
    %149 = vector.extract_strided_slice %147 {offsets = [0, 256], sizes = [8, 256], strides = [1, 1]} : vector<8x512xf32> to vector<8x256xf32>
    %150 = vector.extract_strided_slice %137 {offsets = [0, 512], sizes = [8, 256], strides = [1, 1]} : vector<8x768xf32> to vector<8x256xf32>
    %151 = vector.extract_strided_slice %139 {offsets = [0, 512], sizes = [8, 256], strides = [1, 1]} : vector<8x768xf32> to vector<8x256xf32>
    %152 = arith.addf %151, %20 : vector<8x256xf32>
    %153 = arith.mulf %148, %152 : vector<8x256xf32>
    %154 = arith.addf %150, %153 : vector<8x256xf32>
    %155 = math.tanh %154 : vector<8x256xf32>
    %156 = arith.subf %130, %155 : vector<8x256xf32>
    %157 = arith.mulf %149, %156 : vector<8x256xf32>
    %158 = arith.addf %155, %157 : vector<8x256xf32>
    %159 = arith.index_cast %c4_i32 : i32 to index
    %c0_50 = arith.constant 0 : index
    %c0_51 = arith.constant 0 : index
    %160 = vector.load %arg9[%159, %c0_50, %c0_51] : memref<8x8x256xf32, #tpu.memory_space<vmem>>, vector<1x8x256xf32>
    %161 = vector.shape_cast %160 : vector<1x8x256xf32> to vector<8x256xf32>
    %162 = vector.shape_cast %158 : vector<8x256xf32> to vector<1x8x256xf32>
    tpu.vector_store %arg9[%159, %c0_50, %c0_51], %162 {strides = array<i32>} : memref<8x8x256xf32, #tpu.memory_space<vmem>>, vector<1x8x256xf32>,
    %c5_i32 = arith.constant 5 : i32
    %163 = arith.index_cast %c5_i32 : i32 to index
    %c0_52 = arith.constant 0 : index
    %c0_53 = arith.constant 0 : index
    %164 = vector.load %arg10[%163, %c0_52, %c0_53] : memref<8x8x768xf32, #tpu.memory_space<vmem>>, vector<1x8x768xf32>
    %165 = vector.shape_cast %164 : vector<1x8x768xf32> to vector<8x768xf32>
    %166 = arith.truncf %158 : vector<8x256xf32> to vector<8x256xbf16>
    %cst_54 = arith.constant dense<0.000000e+00> : vector<8x768xf32>
    %167 = tpu.matmul %166, %16, %cst_54 {dimension_numbers = #tpu.dot_dimension_numbers<[1], [0], [0], [1], [0, 0, 1, 1], [], []>} : vector<8x256xbf16>, vector<256x768xbf16>, vector<8x768xf32> -> vector<8x768xf32>
    %168 = vector.extract_strided_slice %165 {offsets = [0, 0], sizes = [8, 512], strides = [1, 1]} : vector<8x768xf32> to vector<8x512xf32>
    %169 = vector.extract_strided_slice %167 {offsets = [0, 0], sizes = [8, 512], strides = [1, 1]} : vector<8x768xf32> to vector<8x512xf32>
    %170 = arith.addf %168, %169 : vector<8x512xf32>
    %171 = arith.negf %170 : vector<8x512xf32>
    %172 = math.exp %171 : vector<8x512xf32>
    %cst_55 = arith.constant 1.000000e+00 : f32
    %173 = vector.broadcast %cst_55 : f32 to vector<8x512xf32>
    %174 = arith.addf %173, %172 : vector<8x512xf32>
    %175 = arith.divf %173, %174 : vector<8x512xf32>
    %176 = vector.extract_strided_slice %175 {offsets = [0, 0], sizes = [8, 256], strides = [1, 1]} : vector<8x512xf32> to vector<8x256xf32>
    %177 = vector.extract_strided_slice %175 {offsets = [0, 256], sizes = [8, 256], strides = [1, 1]} : vector<8x512xf32> to vector<8x256xf32>
    %178 = vector.extract_strided_slice %165 {offsets = [0, 512], sizes = [8, 256], strides = [1, 1]} : vector<8x768xf32> to vector<8x256xf32>
    %179 = vector.extract_strided_slice %167 {offsets = [0, 512], sizes = [8, 256], strides = [1, 1]} : vector<8x768xf32> to vector<8x256xf32>
    %180 = arith.addf %179, %20 : vector<8x256xf32>
    %181 = arith.mulf %176, %180 : vector<8x256xf32>
    %182 = arith.addf %178, %181 : vector<8x256xf32>
    %183 = math.tanh %182 : vector<8x256xf32>
    %184 = arith.subf %158, %183 : vector<8x256xf32>
    %185 = arith.mulf %177, %184 : vector<8x256xf32>
    %186 = arith.addf %183, %185 : vector<8x256xf32>
    %187 = arith.index_cast %c5_i32 : i32 to index
    %c0_56 = arith.constant 0 : index
    %c0_57 = arith.constant 0 : index
    %188 = vector.load %arg9[%187, %c0_56, %c0_57] : memref<8x8x256xf32, #tpu.memory_space<vmem>>, vector<1x8x256xf32>
    %189 = vector.shape_cast %188 : vector<1x8x256xf32> to vector<8x256xf32>
    %190 = vector.shape_cast %186 : vector<8x256xf32> to vector<1x8x256xf32>
    tpu.vector_store %arg9[%187, %c0_56, %c0_57], %190 {strides = array<i32>} : memref<8x8x256xf32, #tpu.memory_space<vmem>>, vector<1x8x256xf32>,
    %c6_i32 = arith.constant 6 : i32
    %191 = arith.index_cast %c6_i32 : i32 to index
    %c0_58 = arith.constant 0 : index
    %c0_59 = arith.constant 0 : index
    %192 = vector.load %arg10[%191, %c0_58, %c0_59] : memref<8x8x768xf32, #tpu.memory_space<vmem>>, vector<1x8x768xf32>
    %193 = vector.shape_cast %192 : vector<1x8x768xf32> to vector<8x768xf32>
    %194 = arith.truncf %186 : vector<8x256xf32> to vector<8x256xbf16>
    %cst_60 = arith.constant dense<0.000000e+00> : vector<8x768xf32>
    %195 = tpu.matmul %194, %16, %cst_60 {dimension_numbers = #tpu.dot_dimension_numbers<[1], [0], [0], [1], [0, 0, 1, 1], [], []>} : vector<8x256xbf16>, vector<256x768xbf16>, vector<8x768xf32> -> vector<8x768xf32>
    %196 = vector.extract_strided_slice %193 {offsets = [0, 0], sizes = [8, 512], strides = [1, 1]} : vector<8x768xf32> to vector<8x512xf32>
    %197 = vector.extract_strided_slice %195 {offsets = [0, 0], sizes = [8, 512], strides = [1, 1]} : vector<8x768xf32> to vector<8x512xf32>
    %198 = arith.addf %196, %197 : vector<8x512xf32>
    %199 = arith.negf %198 : vector<8x512xf32>
    %200 = math.exp %199 : vector<8x512xf32>
    %cst_61 = arith.constant 1.000000e+00 : f32
    %201 = vector.broadcast %cst_61 : f32 to vector<8x512xf32>
    %202 = arith.addf %201, %200 : vector<8x512xf32>
    %203 = arith.divf %201, %202 : vector<8x512xf32>
    %204 = vector.extract_strided_slice %203 {offsets = [0, 0], sizes = [8, 256], strides = [1, 1]} : vector<8x512xf32> to vector<8x256xf32>
    %205 = vector.extract_strided_slice %203 {offsets = [0, 256], sizes = [8, 256], strides = [1, 1]} : vector<8x512xf32> to vector<8x256xf32>
    %206 = vector.extract_strided_slice %193 {offsets = [0, 512], sizes = [8, 256], strides = [1, 1]} : vector<8x768xf32> to vector<8x256xf32>
    %207 = vector.extract_strided_slice %195 {offsets = [0, 512], sizes = [8, 256], strides = [1, 1]} : vector<8x768xf32> to vector<8x256xf32>
    %208 = arith.addf %207, %20 : vector<8x256xf32>
    %209 = arith.mulf %204, %208 : vector<8x256xf32>
    %210 = arith.addf %206, %209 : vector<8x256xf32>
    %211 = math.tanh %210 : vector<8x256xf32>
    %212 = arith.subf %186, %211 : vector<8x256xf32>
    %213 = arith.mulf %205, %212 : vector<8x256xf32>
    %214 = arith.addf %211, %213 : vector<8x256xf32>
    %215 = arith.index_cast %c6_i32 : i32 to index
    %c0_62 = arith.constant 0 : index
    %c0_63 = arith.constant 0 : index
    %216 = vector.load %arg9[%215, %c0_62, %c0_63] : memref<8x8x256xf32, #tpu.memory_space<vmem>>, vector<1x8x256xf32>
    %217 = vector.shape_cast %216 : vector<1x8x256xf32> to vector<8x256xf32>
    %218 = vector.shape_cast %214 : vector<8x256xf32> to vector<1x8x256xf32>
    tpu.vector_store %arg9[%215, %c0_62, %c0_63], %218 {strides = array<i32>} : memref<8x8x256xf32, #tpu.memory_space<vmem>>, vector<1x8x256xf32>,
    %c7_i32 = arith.constant 7 : i32
    %219 = arith.index_cast %c7_i32 : i32 to index
    %c0_64 = arith.constant 0 : index
    %c0_65 = arith.constant 0 : index
    %220 = vector.load %arg10[%219, %c0_64, %c0_65] : memref<8x8x768xf32, #tpu.memory_space<vmem>>, vector<1x8x768xf32>
    %221 = vector.shape_cast %220 : vector<1x8x768xf32> to vector<8x768xf32>
    %222 = arith.truncf %214 : vector<8x256xf32> to vector<8x256xbf16>
    %cst_66 = arith.constant dense<0.000000e+00> : vector<8x768xf32>
    %223 = tpu.matmul %222, %16, %cst_66 {dimension_numbers = #tpu.dot_dimension_numbers<[1], [0], [0], [1], [0, 0, 1, 1], [], []>} : vector<8x256xbf16>, vector<256x768xbf16>, vector<8x768xf32> -> vector<8x768xf32>
    %224 = vector.extract_strided_slice %221 {offsets = [0, 0], sizes = [8, 512], strides = [1, 1]} : vector<8x768xf32> to vector<8x512xf32>
    %225 = vector.extract_strided_slice %223 {offsets = [0, 0], sizes = [8, 512], strides = [1, 1]} : vector<8x768xf32> to vector<8x512xf32>
    %226 = arith.addf %224, %225 : vector<8x512xf32>
    %227 = arith.negf %226 : vector<8x512xf32>
    %228 = math.exp %227 : vector<8x512xf32>
    %cst_67 = arith.constant 1.000000e+00 : f32
    %229 = vector.broadcast %cst_67 : f32 to vector<8x512xf32>
    %230 = arith.addf %229, %228 : vector<8x512xf32>
    %231 = arith.divf %229, %230 : vector<8x512xf32>
    %232 = vector.extract_strided_slice %231 {offsets = [0, 0], sizes = [8, 256], strides = [1, 1]} : vector<8x512xf32> to vector<8x256xf32>
    %233 = vector.extract_strided_slice %231 {offsets = [0, 256], sizes = [8, 256], strides = [1, 1]} : vector<8x512xf32> to vector<8x256xf32>
    %234 = vector.extract_strided_slice %221 {offsets = [0, 512], sizes = [8, 256], strides = [1, 1]} : vector<8x768xf32> to vector<8x256xf32>
    %235 = vector.extract_strided_slice %223 {offsets = [0, 512], sizes = [8, 256], strides = [1, 1]} : vector<8x768xf32> to vector<8x256xf32>
    %236 = arith.addf %235, %20 : vector<8x256xf32>
    %237 = arith.mulf %232, %236 : vector<8x256xf32>
    %238 = arith.addf %234, %237 : vector<8x256xf32>
    %239 = math.tanh %238 : vector<8x256xf32>
    %240 = arith.subf %214, %239 : vector<8x256xf32>
    %241 = arith.mulf %233, %240 : vector<8x256xf32>
    %242 = arith.addf %239, %241 : vector<8x256xf32>
    %243 = arith.index_cast %c7_i32 : i32 to index
    %c0_68 = arith.constant 0 : index
    %c0_69 = arith.constant 0 : index
    %244 = vector.load %arg9[%243, %c0_68, %c0_69] : memref<8x8x256xf32, #tpu.memory_space<vmem>>, vector<1x8x256xf32>
    %245 = vector.shape_cast %244 : vector<1x8x256xf32> to vector<8x256xf32>
    %246 = vector.shape_cast %242 : vector<8x256xf32> to vector<1x8x256xf32>
    tpu.vector_store %arg9[%243, %c0_68, %c0_69], %246 {strides = array<i32>} : memref<8x8x256xf32, #tpu.memory_space<vmem>>, vector<1x8x256xf32>,
    %c8_i32 = arith.constant 8 : i32
    %c0_70 = arith.constant 0 : index
    %c0_71 = arith.constant 0 : index
    %c0_72 = arith.constant 0 : index
    %247 = vector.load %arg8[%c0_70, %c0_71, %c0_72] : memref<1x8x256xf32, #tpu.memory_space<vmem>>, vector<1x8x256xf32>
    %248 = vector.shape_cast %247 : vector<1x8x256xf32> to vector<8x256xf32>
    %249 = vector.shape_cast %242 : vector<8x256xf32> to vector<1x8x256xf32>
    tpu.vector_store %arg8[%c0_70, %c0_71, %c0_72], %249 {strides = array<i32>} : memref<1x8x256xf32, #tpu.memory_space<vmem>>, vector<1x8x256xf32>,
    %c2_i32_73 = arith.constant 2 : i32
    %250 = arith.cmpi eq, %arg0, %c2_i32_73 : i32
    %251 = arith.extui %250 : i1 to i32
    %c0_i32_74 = arith.constant 0 : i32
    %252 = arith.cmpi ne, %251, %c0_i32_74 : i32
    scf.if %252 {
      %c0_75 = arith.constant 0 : index
      %c0_76 = arith.constant 0 : index
      %c0_77 = arith.constant 0 : index
      %253 = vector.load %arg9[%c0_75, %c0_76, %c0_77] : memref<8x8x256xf32, #tpu.memory_space<vmem>>, vector<8x8x256xf32>
      %c0_78 = arith.constant 0 : index
      %c0_79 = arith.constant 0 : index
      %c0_80 = arith.constant 0 : index
      %254 = vector.load %arg7[%c0_78, %c0_79, %c0_80] : memref<8x8x256xf32, #tpu.memory_space<vmem>>, vector<8x8x256xf32>
      tpu.vector_store %arg7[%c0_78, %c0_79, %c0_80], %253 {strides = array<i32>} : memref<8x8x256xf32, #tpu.memory_space<vmem>>, vector<8x8x256xf32>,
    } else {
    }
    return
  }
  func.func @transform_0(%arg0: i32) -> (i32, i32, i32) {
    %c0_i32 = arith.constant 0 : i32
    %c0_i32_0 = arith.constant 0 : i32
    %c0_i32_1 = arith.constant 0 : i32
    %c0_i32_2 = arith.constant 0 : i32
    return %c0_i32, %c0_i32_0, %c0_i32_1 : i32, i32, i32
  }
  func.func @transform_1(%arg0: i32) -> (i32, i32, i32) {
    %c0_i32 = arith.constant 0 : i32
    %c0_i32_0 = arith.constant 0 : i32
    %c0_i32_1 = arith.constant 0 : i32
    return %arg0, %c0_i32, %c0_i32_0 : i32, i32, i32
  }
  func.func @transform_2(%arg0: i32) -> (i32, i32, i32) {
    %c0_i32 = arith.constant 0 : i32
    %c0_i32_0 = arith.constant 0 : i32
    %c0_i32_1 = arith.constant 0 : i32
    return %arg0, %c0_i32, %c0_i32_0 : i32, i32, i32
  }
  func.func @transform_3(%arg0: i32) -> (i32, i32, i32) {
    %c0_i32 = arith.constant 0 : i32
    %c0_i32_0 = arith.constant 0 : i32
    %c0_i32_1 = arith.constant 0 : i32
    return %arg0, %c0_i32, %c0_i32_0 : i32, i32, i32
  }
  func.func @transform_4(%arg0: i32) -> (i32, i32, i32) {
    %c0_i32 = arith.constant 0 : i32
    %c0_i32_0 = arith.constant 0 : i32
    %c0_i32_1 = arith.constant 0 : i32
    return %arg0, %c0_i32, %c0_i32_0 : i32, i32, i32
  }
  func.func @transform_5(%arg0: i32) -> (i32, i32, i32) {
    %c0_i32 = arith.constant 0 : i32
    %c0_i32_0 = arith.constant 0 : i32
    %c0_i32_1 = arith.constant 0 : i32
    return %arg0, %c0_i32, %c0_i32_0 : i32, i32, i32
  }
  func.func @transform_6(%arg0: i32) -> (i32, i32, i32) {
    %c0_i32 = arith.constant 0 : i32
    %c0_i32_0 = arith.constant 0 : i32
    %c0_i32_1 = arith.constant 0 : i32
    %c0_i32_2 = arith.constant 0 : i32
    return %c0_i32, %c0_i32_0, %c0_i32_1 : i32, i32, i32
  }
  func.func @transform_7(%arg0: i32) -> (i32, i32, i32) {
    %c0_i32 = arith.constant 0 : i32
    %c0_i32_0 = arith.constant 0 : i32
    %c0_i32_1 = arith.constant 0 : i32
    return %arg0, %c0_i32, %c0_i32_0 : i32, i32, i32
  }
}

</mosaic_0001>

<bundles_post_ra>
// kernel: encoder_forward.1
= control target key start
LH: loop header
LB: loop body
LE: loop exit
PB: predicated region body
PF: predicated region fallthrough
CT: control target
= control target key end

     0   :  { %s6704_s0 = inlined_call_operand.vmem [shape: f32[8,8,256], index: 0, kind: input, shape index: {}]   ;;  %s6705_s1 = inlined_call_operand.vmem [shape: f32[3,8,256], index: 1, kind: input, shape index: {}]   ;;  %s6706_s2 = inlined_call_operand.vmem [shape: bf16[3,256,768], index: 2, kind: input, shape index: {}]   ;;  %s6707_s3 = inlined_call_operand.vmem [shape: bf16[3,256,768], index: 3, kind: input, shape index: {}]   ;;  %s6708_s4 = inlined_call_operand.vmem [shape: f32[3,1,768], index: 4, kind: input, shape index: {}]   ;;  %s6709_s5 = inlined_call_operand.vmem [shape: f32[3,1,256], index: 5, kind: input, shape index: {}]   ;;  %s6710_s6 = inlined_call_operand.hbm [shape: f32[8,8,256], index: 6, kind: output, shape index: {0}]   ;;  %s6711_s7 = inlined_call_operand.hbm [shape: f32[3,8,256], index: 7, kind: output, shape index: {1}]  }
   0x1   :  { %6907 = sst [smem:[#allocation101_spill]] %s6705_s1 }
   0x2   :  { %13 = vsyncpa [#allocation5], 0 }
   0x3   :  { %14 = vsyncpa [#allocation7], 0 }
   0x4   :  { %16 = vsyncpa [#allocation7 + $0x1], 0  ;;  %s4548_s24 = smov 0   ;;  %s4550_s25 = smov 0  }
   0x5   :  { %s4552_s26 = smov 0   ;;  %s4554_s27 = smov 0  }
   0x6 LB: > { %6908 = sst [smem:[#allocation10_spill]] %s4498_s26  ;;  %s4569_s28 = sadd.s32 4294967295, %s4502_s27   ;;  %s4502_s27 = sphi %s4554_s27, %s7295_s27   ;;  %s4498_s26 = sphi %s4552_s26, %s7297_s26   ;;  %s4494_s25 = sphi %s4550_s25, %s7299_s25   ;;  %s4490_s24 = sphi %s4548_s24, %s7298_s24  }
   0x7   : > { %s3475_s29 = sadd.s32 4294967294, %s4502_s27   ;;  %s4573_s30 = sadd.s32 1, %s4502_s27  }
   0x8   : > { %6909 = sst [smem:[#allocation11_spill]] %s4573_s30  ;;  %s201_s8 = sadd.s32 1, %s4498_s26 }
   0x9   : > { %s198_s9 = ssub.s32 %s4502_s27, %s4573_s30  ;;  %p211_p0 = scmp.ne.s32.totalorder %s4498_s26, %s4494_s25 }
   0xa   : > { %p199_p1 = scmp.eq.s32.totalorder %s198_s9, 0  ;;  %p212_p2 = scmp.eq.s32.totalorder %s4569_s28, 2 }
   0xb   : > { %p217_p3 = scmp.ne.s32.totalorder %s4494_s25, %s4490_s24  ;;  %p218_p4 = scmp.eq.s32.totalorder %s3475_s29, 2 }
   0xc   : > { %s4584_s10 = scalar_select %p199_p1, %s4498_s26, %s201_s8  }
   0xd   : > { %p4588_p5 = por %p212_p2, %p211_p0  ;;  %p4592_p6 = por %p218_p4, %p217_p3 }
   0xe   : > { %6910 = sst [smem:[#allocation12_spill]] %s4584_s10  ;;  %p3478_p7 = scmp.ge.s32.totalorder %s4502_s27, 1 }
   0xf   : > { %s6912_s12 = scalar_select %p4592_p6, 1, 0 }
  0x10   : > { %p277_p8 = scmp.lt.s32.totalorder %s4502_s27, 4 }
  0x11   : > { %6913 = sst [smem:[#allocation13_spill]] %s6912_s12 }
  0x12   : > { %p278_p9 = pnand %p3478_p7, %p277_p8 }
  0x14   : > { %281 = sbr.rel (%p278_p9) target bundleno = 2662 (0xa66), region = 44 }
  0x1b   : > { %s6712_s13 = sand.u32 1, %s4494_s25   ;;  %p327_p10 = scmp.lt.s32.totalorder %s4569_s28, 2 }
  0x1c   : > { %s3479_s14 = sshll.u32 %s6712_s13, 4  ;;  %s6914_s1 = sld [smem:[#allocation101_spill]] }
  0x1d   : > { %s328_s15 = scalar_select %p327_p10, %s4569_s28, 2 }
  0x1e   : > { %p3485_p11 = scmp.ne.s32.totalorder %s4569_s28, 0 }
  0x1f   : > { %s3718_s16 = sshll.u32 %s328_s15, 4  ;;  %s3720_s17 = smul.u32 768, %s328_s15  ;;  %v354_v0 = vld [vmem:[%s6704_s0] sm:$0xff] (!%p3485_p11)  ;;  %v355_v1 = vld [vmem:[%s6704_s0 + $0x8] sm:$0xff] (!%p3485_p11)  ;;  %v356_v2 = vld [vmem:[%s6704_s0 + $0x10] sm:$0xff] (!%p3485_p11) }
  0x20   : > { %s3721_s21 = smul.u32 6, %s328_s15  ;;  %s3484_s12 = sshll.u32 %s328_s15, 1  ;;  %370 = vst [vmem:[#allocation2] sm:$0xff] (!%p3485_p11), %v354_v0  ;;  %371 = vst [vmem:[#allocation2 + $0x8] sm:$0xff] (!%p3485_p11), %v355_v1  ;;  %v357_v3 = vld [vmem:[%s6704_s0 + $0x18] sm:$0xff] (!%p3485_p11)  ;;  %v358_v4 = vld [vmem:[%s6704_s0 + $0x20] sm:$0xff] (!%p3485_p11) }
  0x21   : > { %s4611_s29 = scalar_lea.vmem %s6706_s2, %s3720_s17  ;;  %s4616_s10 = scalar_lea.vmem %s6707_s3, %s3720_s17  ;;  %372 = vst [vmem:[#allocation2 + $0x10] sm:$0xff] (!%p3485_p11), %v356_v2  ;;  %v359_v5 = vld [vmem:[%s6704_s0 + $0x28] sm:$0xff] (!%p3485_p11)  ;;  %373 = vst [vmem:[#allocation2 + $0x18] sm:$0xff] (!%p3485_p11), %v357_v3  ;;  %v360_v6 = vld [vmem:[%s6704_s0 + $0x30] sm:$0xff] (!%p3485_p11) }
  0x22   : > { %s4606_s20 = scalar_lea.vmem %s6914_s1, %s3718_s16  ;;  %s4621_s30 = scalar_lea.vmem %s6708_s4, %s3721_s21  ;;  %374 = vst [vmem:[#allocation2 + $0x20] sm:$0xff] (!%p3485_p11), %v358_v4  ;;  %375 = vst [vmem:[#allocation2 + $0x28] sm:$0xff] (!%p3485_p11), %v359_v5  ;;  %v361_v7 = vld [vmem:[%s6704_s0 + $0x38] sm:$0xff] (!%p3485_p11)  ;;  %v362_v8 = vld [vmem:[%s6704_s0 + $0x40] sm:$0xff] (!%p3485_p11) }
  0x23   : > { %s4626_s19 = scalar_lea.vmem %s6709_s5, %s3484_s12  ;;  %s4628_s1 = scalar_lea.vmem [#allocation6], %s3479_s14  ;;  %376 = vst [vmem:[#allocation2 + $0x30] sm:$0xff] (!%p3485_p11), %v360_v6  ;;  %377 = vst [vmem:[#allocation2 + $0x38] sm:$0xff] (!%p3485_p11), %v361_v7  ;;  %v363_v9 = vld [vmem:[%s6704_s0 + $0x48] sm:$0xff] (!%p3485_p11)  ;;  %v364_v10 = vld [vmem:[%s6704_s0 + $0x50] sm:$0xff] (!%p3485_p11) }
  0x24   : > { %353 = sbr.rel (%p3485_p11) target bundleno = 43 (0x2b), region = 48  ;;  %378 = vst [vmem:[#allocation2 + $0x40] sm:$0xff] (!%p3485_p11), %v362_v8  ;;  %v365_v11 = vld [vmem:[%s6704_s0 + $0x58] sm:$0xff] (!%p3485_p11)  ;;  %379 = vst [vmem:[#allocation2 + $0x48] sm:$0xff] (!%p3485_p11), %v363_v9  ;;  %v366_v12 = vld [vmem:[%s6704_s0 + $0x60] sm:$0xff] (!%p3485_p11) }
  0x25   : > { %380 = vst [vmem:[#allocation2 + $0x50] sm:$0xff] (!%p3485_p11), %v364_v10  ;;  %381 = vst [vmem:[#allocation2 + $0x58] sm:$0xff] (!%p3485_p11), %v365_v11  ;;  %v367_v13 = vld [vmem:[%s6704_s0 + $0x68] sm:$0xff] (!%p3485_p11)  ;;  %v368_v14 = vld [vmem:[%s6704_s0 + $0x70] sm:$0xff] (!%p3485_p11) }
  0x26   : > { %382 = vst [vmem:[#allocation2 + $0x60] sm:$0xff] (!%p3485_p11), %v366_v12  ;;  %383 = vst [vmem:[#allocation2 + $0x68] sm:$0xff] (!%p3485_p11), %v367_v13  ;;  %v369_v15 = vld [vmem:[%s6704_s0 + $0x78] sm:$0xff] (!%p3485_p11) }
  0x27   : > { %384 = vst [vmem:[#allocation2 + $0x70] sm:$0xff] (!%p3485_p11), %v368_v14  ;;  %385 = vst [vmem:[#allocation2 + $0x78] sm:$0xff] (!%p3485_p11), %v369_v15 }
  0x2b PF: > { %v3770_v16 = vld [vmem:[%s4611_s29 + $0x4] ss:$24 sps:$4 sm:$0xff]   ;;  %v3774_v18 = vld [vmem:[%s4611_s29] ss:$24 sps:$4 sm:$0xff]   ;;  %v3776_v20 = vld [vmem:[%s4611_s29 + $0x34] ss:$24 sps:$4 sm:$0xff]  }
  0x2c   : > { %v3772_v17 = vld [vmem:[%s4611_s29 + $0xc] ss:$24 sps:$4 sm:$0xff]   ;;  %1018 = vmatprep.subr.bf16.mxu0 %v3770_v16  ;;  %v3775_v19 = vld [vmem:[%s4611_s29 + $0x8] ss:$24 sps:$4 sm:$0xff]   ;;  %v3778_v21 = vld [vmem:[%s4611_s29 + $0x3c] ss:$24 sps:$4 sm:$0xff]  }
  0x2d   : > { %1091 = vmatprep.subr.bf16.mxu1 %v3772_v17  ;;  %1019 = vmatpush1.bf16.msra.mxu0 %v3774_v18  ;;  %v3780_v22 = vld [vmem:[%s4611_s29 + $0x30] ss:$24 sps:$4 sm:$0xff]   ;;  %v3782_v24 = vld [vmem:[%s4611_s29 + $0x64] ss:$24 sps:$4 sm:$0xff]   ;;  %v3786_v26 = vld [vmem:[%s4611_s29 + $0x60] ss:$24 sps:$4 sm:$0xff]  }
  0x2e   : > { %1092 = vmatpush1.bf16.msra.mxu1 %v3775_v19  ;;  %1020 = vmatprep.subr.bf16.mxu0 %v3776_v20  ;;  %v3781_v23 = vld [vmem:[%s4611_s29 + $0x38] ss:$24 sps:$4 sm:$0xff]   ;;  %v3784_v25 = vld [vmem:[%s4611_s29 + $0x6c] ss:$24 sps:$4 sm:$0xff]   ;;  %v3787_v27 = vld [vmem:[%s4611_s29 + $0x68] ss:$24 sps:$4 sm:$0xff]  }
  0x2f   : > { %1093 = vmatprep.subr.bf16.mxu1 %v3778_v21  ;;  %v3788_v28 = vld [vmem:[%s4611_s29 + $0x94] ss:$24 sps:$4 sm:$0xff]   ;;  %v3792_v30 = vld [vmem:[%s4611_s29 + $0x90] ss:$24 sps:$4 sm:$0xff]   ;;  %v3794_v32 = vld [vmem:[%s4611_s29 + $0xc4] ss:$24 sps:$4 sm:$0xff]  }
  0x30   : > { %v3790_v29 = vld [vmem:[%s4611_s29 + $0x9c] ss:$24 sps:$4 sm:$0xff]   ;;  %v3793_v31 = vld [vmem:[%s4611_s29 + $0x98] ss:$24 sps:$4 sm:$0xff]   ;;  %v3796_v33 = vld [vmem:[%s4611_s29 + $0xcc] ss:$24 sps:$4 sm:$0xff]  }
  0x31   : > { %1021 = vmatpush1.bf16.msra.mxu0 %v3780_v22  ;;  %v3798_v34 = vld [vmem:[%s4611_s29 + $0xc0] ss:$24 sps:$4 sm:$0xff]   ;;  %v3800_v36 = vld [vmem:[%s4611_s29 + $0xf4] ss:$24 sps:$4 sm:$0xff]   ;;  %v3804_v38 = vld [vmem:[%s4611_s29 + $0xf0] ss:$24 sps:$4 sm:$0xff]  }
  0x32   : > { %1094 = vmatpush1.bf16.msra.mxu1 %v3781_v23  ;;  %1022 = vmatprep.subr.bf16.mxu0 %v3782_v24  ;;  %v3799_v35 = vld [vmem:[%s4611_s29 + $0xc8] ss:$24 sps:$4 sm:$0xff]   ;;  %v3802_v37 = vld [vmem:[%s4611_s29 + $0xfc] ss:$24 sps:$4 sm:$0xff]   ;;  %v3805_v39 = vld [vmem:[%s4611_s29 + $0xf8] ss:$24 sps:$4 sm:$0xff]  }
  0x33   : > { %1095 = vmatprep.subr.bf16.mxu1 %v3784_v25  ;;  %v3806_v40 = vld [vmem:[%s4611_s29 + $0x124] ss:$24 sps:$4 sm:$0xff]   ;;  %v3810_v42 = vld [vmem:[%s4611_s29 + $0x120] ss:$24 sps:$4 sm:$0xff]   ;;  %v3812_v44 = vld [vmem:[%s4611_s29 + $0x154] ss:$24 sps:$4 sm:$0xff]  }
  0x34   : > { %v3808_v41 = vld [vmem:[%s4611_s29 + $0x12c] ss:$24 sps:$4 sm:$0xff]   ;;  %v3811_v43 = vld [vmem:[%s4611_s29 + $0x128] ss:$24 sps:$4 sm:$0xff]   ;;  %v3814_v45 = vld [vmem:[%s4611_s29 + $0x15c] ss:$24 sps:$4 sm:$0xff]  }
  0x35   : > { %1023 = vmatpush1.bf16.msra.mxu0 %v3786_v26  ;;  %v3816_v46 = vld [vmem:[%s4611_s29 + $0x150] ss:$24 sps:$4 sm:$0xff]   ;;  %v3818_v48 = vld [vmem:[%s4611_s29 + $0x184] ss:$24 sps:$4 sm:$0xff]   ;;  %v3822_v50 = vld [vmem:[%s4611_s29 + $0x180] ss:$24 sps:$4 sm:$0xff]  }
  0x36   : > { %1096 = vmatpush1.bf16.msra.mxu1 %v3787_v27  ;;  %1024 = vmatprep.subr.bf16.mxu0 %v3788_v28  ;;  %v3817_v47 = vld [vmem:[%s4611_s29 + $0x158] ss:$24 sps:$4 sm:$0xff]   ;;  %v3820_v49 = vld [vmem:[%s4611_s29 + $0x18c] ss:$24 sps:$4 sm:$0xff]   ;;  %v3823_v51 = vld [vmem:[%s4611_s29 + $0x188] ss:$24 sps:$4 sm:$0xff]  }
  0x37   : > { %1097 = vmatprep.subr.bf16.mxu1 %v3790_v29  ;;  %v3824_v52 = vld [vmem:[%s4611_s29 + $0x1b4] ss:$24 sps:$4 sm:$0xff]   ;;  %v3828_v54 = vld [vmem:[%s4611_s29 + $0x1b0] ss:$24 sps:$4 sm:$0xff]   ;;  %v3830_v56 = vld [vmem:[%s4611_s29 + $0x1e4] ss:$24 sps:$4 sm:$0xff]  }
  0x38   : > { %v3826_v53 = vld [vmem:[%s4611_s29 + $0x1bc] ss:$24 sps:$4 sm:$0xff]   ;;  %v3829_v55 = vld [vmem:[%s4611_s29 + $0x1b8] ss:$24 sps:$4 sm:$0xff]   ;;  %v3832_v57 = vld [vmem:[%s4611_s29 + $0x1ec] ss:$24 sps:$4 sm:$0xff]  }
  0x39   : > { %1025 = vmatpush1.bf16.msra.mxu0 %v3792_v30  ;;  %v3834_v58 = vld [vmem:[%s4611_s29 + $0x1e0] ss:$24 sps:$4 sm:$0xff]   ;;  %v3836_v60 = vld [vmem:[%s4611_s29 + $0x214] ss:$24 sps:$4 sm:$0xff]   ;;  %v3840_v63 = vld [vmem:[%s4611_s29 + $0x210] ss:$24 sps:$4 sm:$0xff]  }
  0x3a   : > { %1098 = vmatpush1.bf16.msra.mxu1 %v3793_v31  ;;  %1026 = vmatprep.subr.bf16.mxu0 %v3794_v32  ;;  %v3835_v59 = vld [vmem:[%s4611_s29 + $0x1e8] ss:$24 sps:$4 sm:$0xff]   ;;  %v3838_v61 = vld [vmem:[%s4611_s29 + $0x21c] ss:$24 sps:$4 sm:$0xff]   ;;  %v3841_v0 = vld [vmem:[%s4611_s29 + $0x218] ss:$24 sps:$4 sm:$0xff]  }
  0x3b   : > { %1099 = vmatprep.subr.bf16.mxu1 %v3796_v33  ;;  %v387_v62 = vld [vmem:[#allocation2 + $0x8] sm:$0xff]  ;;  %v389_v1 = vld [vmem:[#allocation2 + $0x18] sm:$0xff]  ;;  %v386_v19 = vld [vmem:[#allocation2] sm:$0xff]  ;;  %p3710_p12 = scmp.ne.s32.totalorder %s4569_s28, 2 }
  0x3c   : > { %v3842_v2 = vld [vmem:[%s4611_s29 + $0x244] ss:$24 sps:$4 sm:$0xff]   ;;  %v4728_v3 = vpack.c.bf16 %v389_v1, %v387_v62  ;;  %v3846_v5 = vld [vmem:[%s4611_s29 + $0x240] ss:$24 sps:$4 sm:$0xff]   ;;  %v3848_v7 = vld [vmem:[%s4611_s29 + $0x274] ss:$24 sps:$4 sm:$0xff]  }
  0x3d   : > { %1027 = vmatpush1.bf16.msra.mxu0 %v3798_v34  ;;  %v3844_v4 = vld [vmem:[%s4611_s29 + $0x24c] ss:$24 sps:$4 sm:$0xff]   ;;  %v3847_v6 = vld [vmem:[%s4611_s29 + $0x248] ss:$24 sps:$4 sm:$0xff]   ;;  %v3850_v8 = vld [vmem:[%s4611_s29 + $0x27c] ss:$24 sps:$4 sm:$0xff]  }
  0x3e   : > { %1100 = vmatpush1.bf16.msra.mxu1 %v3799_v35  ;;  %1028 = vmatprep.subr.bf16.mxu0 %v3800_v36  ;;  %v3852_v9 = vld [vmem:[%s4611_s29 + $0x270] ss:$24 sps:$4 sm:$0xff]   ;;  %v3854_v11 = vld [vmem:[%s4611_s29 + $0x2a4] ss:$24 sps:$4 sm:$0xff]   ;;  %v3858_v13 = vld [vmem:[%s4611_s29 + $0x2a0] ss:$24 sps:$4 sm:$0xff]  }
  0x3f   : > { %1101 = vmatprep.subr.bf16.mxu1 %v3802_v37  ;;  %1050 = vmatprep.mubr.bf16.mxu0 %v4728_v3  ;;  %v3853_v10 = vld [vmem:[%s4611_s29 + $0x278] ss:$24 sps:$4 sm:$0xff]   ;;  %v3856_v12 = vld [vmem:[%s4611_s29 + $0x2ac] ss:$24 sps:$4 sm:$0xff]   ;;  %v3859_v14 = vld [vmem:[%s4611_s29 + $0x2a8] ss:$24 sps:$4 sm:$0xff]  }
  0x40   : > { %1123 = vmatprep.mubr.bf16.mxu1 %v4728_v3  ;;  %v3860_v15 = vld [vmem:[%s4611_s29 + $0x2d4] ss:$24 sps:$4 sm:$0xff]   ;;  %v3864_v17 = vld [vmem:[%s4611_s29 + $0x2d0] ss:$24 sps:$4 sm:$0xff]   ;;  %v4749_v22 = vld [vmem:[%s4616_s10 + $0x4] ss:$24 sps:$4 sm:$0xff]  }
  0x41   : > { %1029 = vmatpush1.bf16.msra.mxu0 %v3804_v38  ;;  %v3862_v16 = vld [vmem:[%s4611_s29 + $0x2dc] ss:$24 sps:$4 sm:$0xff]   ;;  %v3865_v18 = vld [vmem:[%s4611_s29 + $0x2d8] ss:$24 sps:$4 sm:$0xff]   ;;  %v391_v33 = vld [vmem:[#allocation2 + $0x28] sm:$0xff] }
  0x42   : > { %1102 = vmatpush1.bf16.msra.mxu1 %v3805_v39  ;;  %1030 = vmatprep.subr.bf16.mxu0 %v3806_v40  ;;  %v388_v20 = vld [vmem:[#allocation2 + $0x10] sm:$0xff]  ;;  %v4755_v25 = vld [vmem:[%s4616_s10] ss:$24 sps:$4 sm:$0xff]   ;;  %v3874_v26 = vld [vmem:[%s4611_s29 + $0x44] ss:$24 sps:$4 sm:$0xff]  }
  0x43   : > { %1103 = vmatprep.subr.bf16.mxu1 %v3808_v41  ;;  %v3868_v21 = vld [vmem:[%s4611_s29 + $0x14] ss:$24 sps:$4 sm:$0xff]   ;;  %v4751_v23 = vpack.c.bf16 %v388_v20, %v386_v19  ;;  %v3866_v24 = vld [vmem:[%s4611_s29 + $0x10] ss:$24 sps:$4 sm:$0xff]   ;;  %v3872_v28 = vld [vmem:[%s4611_s29 + $0x40] ss:$24 sps:$4 sm:$0xff]  }
  0x44   : > { %v4760_v27 = vld [vmem:[%s4616_s10 + $0x34] ss:$24 sps:$4 sm:$0xff]   ;;  %v4766_v29 = vld [vmem:[%s4616_s10 + $0x30] ss:$24 sps:$4 sm:$0xff]   ;;  %v4772_v31 = vld [vmem:[%s4616_s10 + $0x64] ss:$24 sps:$4 sm:$0xff]  }
  0x45   : > { %1031 = vmatpush1.bf16.msra.mxu0 %v3810_v42  ;;  %v3880_v30 = vld [vmem:[%s4611_s29 + $0x74] ss:$24 sps:$4 sm:$0xff]   ;;  %v3878_v32 = vld [vmem:[%s4611_s29 + $0x70] ss:$24 sps:$4 sm:$0xff]   ;;  %v393_v34 = vld [vmem:[#allocation2 + $0x38] sm:$0xff] }
  0x46   : > { %1104 = vmatpush1.bf16.msra.mxu1 %v3811_v43  ;;  %1032 = vmatprep.subr.bf16.mxu0 %v3812_v44  ;;  %v4776_v35 = vld [vmem:[%s4616_s10 + $0x60] ss:$24 sps:$4 sm:$0xff]   ;;  %v4778_v36 = vpack.c.bf16 %v393_v34, %v391_v33  ;;  %v392_v38 = vld [vmem:[#allocation2 + $0x30] sm:$0xff]  ;;  %v3886_v39 = vld [vmem:[%s4611_s29 + $0xa4] ss:$24 sps:$4 sm:$0xff]  }
  0x47   : > { %1105 = vmatprep.subr.bf16.mxu1 %v3814_v45  ;;  %v390_v37 = vld [vmem:[#allocation2 + $0x20] sm:$0xff]  ;;  %v4786_v41 = vld [vmem:[%s4616_s10 + $0x94] ss:$24 sps:$4 sm:$0xff]   ;;  %v4792_v43 = vld [vmem:[%s4616_s10 + $0x90] ss:$24 sps:$4 sm:$0xff]  }
  0x48   : > { %v4782_v40 = vpack.c.bf16 %v392_v38, %v390_v37  ;;  %v3884_v42 = vld [vmem:[%s4611_s29 + $0xa0] ss:$24 sps:$4 sm:$0xff]   ;;  %v3892_v44 = vld [vmem:[%s4611_s29 + $0xd4] ss:$24 sps:$4 sm:$0xff]   ;;  %v4800_v45 = vld [vmem:[%s4616_s10 + $0xc4] ss:$24 sps:$4 sm:$0xff]  }
  0x49   : > { %1033 = vmatpush1.bf16.msra.mxu0 %v3816_v46  ;;  %v395_v46 = vld [vmem:[#allocation2 + $0x48] sm:$0xff]  ;;  %v398_v62 = vld [vmem:[#allocation2 + $0x60] sm:$0xff] }
  0x4a   : > { %1106 = vmatpush1.bf16.msra.mxu1 %v3817_v47  ;;  %1034 = vmatprep.subr.bf16.mxu0 %v3818_v48  ;;  %v397_v47 = vld [vmem:[#allocation2 + $0x58] sm:$0xff]  ;;  %v3902_v1 = vld [vmem:[%s4611_s29 + $0x130] ss:$24 sps:$4 sm:$0xff]  }
  0x4b   : > { %1107 = vmatprep.subr.bf16.mxu1 %v3820_v49  ;;  %v4802_v48 = vpack.c.bf16 %v397_v47, %v395_v46  ;;  %v394_v49 = vld [vmem:[#allocation2 + $0x40] sm:$0xff]  ;;  %v3926_v20 = vld [vmem:[%s4611_s29 + $0x1f0] ss:$24 sps:$4 sm:$0xff]   ;;  %v3952_v46 = vld [vmem:[%s4611_s29 + $0x2b4] ss:$24 sps:$4 sm:$0xff]  }
  0x4c   : > { %v4881_v19 = vld [vmem:[%s4616_s10 + $0x1e4] ss:$24 sps:$4 sm:$0xff]   ;;  %v3938_v34 = vld [vmem:[%s4611_s29 + $0x250] ss:$24 sps:$4 sm:$0xff]   ;;  %v4906_v37 = vld [vmem:[%s4616_s10 + $0x240] ss:$24 sps:$4 sm:$0xff]  }
  0x4d   : > { %1035 = vmatpush1.bf16.msra.mxu0 %v3822_v50  ;;  %v396_v50 = vld [vmem:[#allocation2 + $0x50] sm:$0xff]  ;;  %v4901_v33 = vld [vmem:[%s4616_s10 + $0x244] ss:$24 sps:$4 sm:$0xff]  }
  0x4e   : > { %1108 = vmatpush1.bf16.msra.mxu1 %v3823_v51  ;;  %1036 = vmatprep.subr.bf16.mxu0 %v3824_v52  ;;  %v3890_v51 = vld [vmem:[%s4611_s29 + $0xd0] ss:$24 sps:$4 sm:$0xff]   ;;  %v4806_v52 = vld [vmem:[%s4616_s10 + $0xc0] ss:$24 sps:$4 sm:$0xff]   ;;  %v3946_v38 = vld [vmem:[%s4611_s29 + $0x284] ss:$24 sps:$4 sm:$0xff]  }
  0x4f   : > { %1109 = vmatprep.subr.bf16.mxu1 %v3826_v53  ;;  %v4808_v53 = vpack.c.bf16 %v396_v50, %v394_v49  ;;  %v4921_v47 = vld [vmem:[%s4616_s10 + $0x2a4] ss:$24 sps:$4 sm:$0xff]   ;;  %v3950_v49 = vld [vmem:[%s4611_s29 + $0x2b0] ss:$24 sps:$4 sm:$0xff]   ;;  %v4926_v50 = vld [vmem:[%s4616_s10 + $0x2a0] ss:$24 sps:$4 sm:$0xff]  }
  0x50   : > { %6916 = vst [vmem:[#allocation15_spill] sm:$0xff] %v4921_v47  ;;  %6917 = vst [vmem:[#allocation16_spill] sm:$0xff] %v4926_v50 }
  0x51   : > { %1037 = vmatpush1.bf16.msra.mxu0 %v3828_v54  ;;  %v3898_v54 = vld [vmem:[%s4611_s29 + $0x104] ss:$24 sps:$4 sm:$0xff]  }
  0x52   : > { %1110 = vmatpush1.bf16.msra.mxu1 %v3829_v55  ;;  %1038 = vmatprep.subr.bf16.mxu0 %v3830_v56  ;;  %v4814_v55 = vld [vmem:[%s4616_s10 + $0xf4] ss:$24 sps:$4 sm:$0xff]   ;;  %v3896_v56 = vld [vmem:[%s4611_s29 + $0x100] ss:$24 sps:$4 sm:$0xff]  }
  0x53   : > { %1111 = vmatprep.subr.bf16.mxu1 %v3832_v57  ;;  %v4818_v57 = vld [vmem:[%s4616_s10 + $0xf0] ss:$24 sps:$4 sm:$0xff]  }
  0x55   : > { %1039 = vmatpush1.bf16.msra.mxu0 %v3834_v58  ;;  %v3904_v58 = vld [vmem:[%s4611_s29 + $0x134] ss:$24 sps:$4 sm:$0xff]  }
  0x56   : > { %1112 = vmatpush1.bf16.msra.mxu1 %v3835_v59  ;;  %1040 = vmatprep.subr.bf16.mxu0 %v3836_v60  ;;  %v399_v59 = vld [vmem:[#allocation2 + $0x68] sm:$0xff]  ;;  %v4827_v60 = vld [vmem:[%s4616_s10 + $0x124] ss:$24 sps:$4 sm:$0xff]  }
  0x57   : > { %1113 = vmatprep.subr.bf16.mxu1 %v3838_v61  ;;  %v401_v61 = vld [vmem:[#allocation2 + $0x78] sm:$0xff] }
  0x59   : > { %1041 = vmatpush1.bf16.msra.mxu0 %v3840_v63  ;;  %v4830_v63 = vpack.c.bf16 %v401_v61, %v399_v59  ;;  %v4939_v59 = vld [vmem:[%s4606_s20] sm:$0xff] }
  0x5a   : > { %1114 = vmatpush1.bf16.msra.mxu1 %v3841_v0  ;;  %1042 = vmatprep.subr.bf16.mxu0 %v3842_v2  ;;  %v400_v0 = vld [vmem:[#allocation2 + $0x70] sm:$0xff]  ;;  %v4834_v2 = vld [vmem:[%s4616_s10 + $0x120] ss:$24 sps:$4 sm:$0xff]   ;;  %6920 = vst [vmem:[#allocation19_spill] sm:$0xff] %v4939_v59  ;;  %v4943_v61 = vld [vmem:[%s4616_s10 + $0xc] ss:$24 sps:$4 sm:$0xff]  }
  0x5b   : > { %1115 = vmatprep.subr.bf16.mxu1 %v3844_v4  ;;  %v4837_v4 = vpack.c.bf16 %v400_v0, %v398_v62  ;;  %v4946_v62 = vld [vmem:[%s4616_s10 + $0x14] ss:$24 sps:$4 sm:$0xff]   ;;  %v4950_v0 = vpack.c.bf16 %v4939_v59, %v4939_v59  ;;  %v5159_v59 = vld [vmem:[%s4616_s10 + $0x250] ss:$24 sps:$4 sm:$0xff]  }
  0x5c   : > { %6921 = vst [vmem:[#allocation20_spill] sm:$0xff] %v4946_v62  ;;  %6948 = vst [vmem:[#allocation47_spill] sm:$0xff] %v5159_v59 }
  0x5d   : > { %1043 = vmatpush1.bf16.msra.mxu0 %v3846_v5  ;;  %v3910_v5 = vld [vmem:[%s4611_s29 + $0x164] ss:$24 sps:$4 sm:$0xff]  }
  0x5e   : > { %1116 = vmatpush1.bf16.msra.mxu1 %v3847_v6  ;;  %1044 = vmatprep.subr.bf16.mxu0 %v3848_v7  ;;  %v4844_v6 = vld [vmem:[%s4616_s10 + $0x154] ss:$24 sps:$4 sm:$0xff]  }
  0x5f   : > { %1117 = vmatprep.subr.bf16.mxu1 %v3850_v8  ;;  %v1394_v7 = vld [vmem:[%s4606_s20 + $0x8] sm:$0xff]  ;;  %v3908_v8 = vld [vmem:[%s4611_s29 + $0x160] ss:$24 sps:$4 sm:$0xff]  }
  0x61   : > { %1045 = vmatpush1.bf16.msra.mxu0 %v3852_v9  ;;  %v4850_v9 = vpack.c.bf16 %v1394_v7, %v1394_v7  ;;  %v4960_v7 = vld [vmem:[%s4616_s10 + $0x3c] ss:$24 sps:$4 sm:$0xff]  }
  0x62   : > { %1118 = vmatpush1.bf16.msra.mxu1 %v3853_v10  ;;  %1046 = vmatprep.subr.bf16.mxu0 %v3854_v11  ;;  %v4854_v10 = vld [vmem:[%s4616_s10 + $0x150] ss:$24 sps:$4 sm:$0xff]   ;;  %v3916_v11 = vld [vmem:[%s4611_s29 + $0x194] ss:$24 sps:$4 sm:$0xff]  }
  0x63   : > { %1119 = vmatprep.subr.bf16.mxu1 %v3856_v12  ;;  %v4859_v12 = vld [vmem:[%s4616_s10 + $0x184] ss:$24 sps:$4 sm:$0xff]  }
  0x65   : > { %1047 = vmatpush1.bf16.msra.mxu0 %v3858_v13  ;;  %v3914_v13 = vld [vmem:[%s4611_s29 + $0x190] ss:$24 sps:$4 sm:$0xff]  }
  0x66   : > { %1120 = vmatpush1.bf16.msra.mxu1 %v3859_v14  ;;  %1048 = vmatprep.subr.bf16.mxu0 %v3860_v15  ;;  %v4866_v14 = vld [vmem:[%s4616_s10 + $0x180] ss:$24 sps:$4 sm:$0xff]   ;;  %v3922_v15 = vld [vmem:[%s4611_s29 + $0x1c4] ss:$24 sps:$4 sm:$0xff]  }
  0x67   : > { %1121 = vmatprep.subr.bf16.mxu1 %v3862_v16  ;;  %v4871_v16 = vld [vmem:[%s4616_s10 + $0x1b4] ss:$24 sps:$4 sm:$0xff]  }
  0x69   : > { %1049 = vmatpush1.bf16.msra.mxu0 %v3864_v17  ;;  %v4876_v17 = vld [vmem:[%s4616_s10 + $0x1b0] ss:$24 sps:$4 sm:$0xff]  }
  0x6a   : > { %1122 = vmatpush1.bf16.msra.mxu1 %v3865_v18  ;;  %1164 = vmatprep.subr.bf16.mxu0 %v3868_v21  ;;  %v3928_v18 = vld [vmem:[%s4611_s29 + $0x1f4] ss:$24 sps:$4 sm:$0xff]   ;;  %v4886_v21 = vld [vmem:[%s4616_s10 + $0x1e0] ss:$24 sps:$4 sm:$0xff]  }
  0x6b   : > { %1883 = vmatprep.subr.bf16.mxu1 %v4749_v22 }
  0x6c   : > { %1051 = vmatmul.mubr.bf16.vlgmr.msra.gmra.mrb[0].mxu0 %v4751_v23 }
  0x6d   : > { %1124 = vmatmul.mubr.bf16.vlgmr.msra.gmra.mrb[0].mxu1 %v4751_v23  ;;  %1165 = vmatpush1.bf16.msra.mxu0 %v3866_v24  ;;  %v3934_v24 = vld [vmem:[%s4611_s29 + $0x224] ss:$24 sps:$4 sm:$0xff]  }
  0x6e   : > { %1884 = vmatpush1.bf16.msra.mxu1 %v4755_v25  ;;  %1166 = vmatprep.subr.bf16.mxu0 %v3874_v26  ;;  %v4891_v26 = vld [vmem:[%s4616_s10 + $0x214] ss:$24 sps:$4 sm:$0xff]  }
  0x6f   : > { %1885 = vmatprep.subr.bf16.mxu1 %v4760_v27  ;;  %1060 = vmatprep.mubr.bf16.mxu0 %v4778_v36 }
  0x70   : > { %1133 = vmatprep.mubr.bf16.mxu1 %v4778_v36 }
  0x71   : > { %1167 = vmatpush1.bf16.msra.mxu0 %v3872_v28  ;;  %v3932_v28 = vld [vmem:[%s4611_s29 + $0x220] ss:$24 sps:$4 sm:$0xff]  }
  0x72   : > { %1886 = vmatpush1.bf16.msra.mxu1 %v4766_v29  ;;  %1168 = vmatprep.subr.bf16.mxu0 %v3880_v30  ;;  %v4896_v30 = vld [vmem:[%s4616_s10 + $0x210] ss:$24 sps:$4 sm:$0xff]  }
  0x73   : > { %1887 = vmatprep.subr.bf16.mxu1 %v4772_v31 }
  0x74   : > { %1061 = vmatmul.mubr.bf16.gmra.mrb[4].mxu0 %v4782_v40 }
  0x75   : > { %1134 = vmatmul.mubr.bf16.gmra.mrb[4].mxu1 %v4782_v40  ;;  %1169 = vmatpush1.bf16.msra.mxu0 %v3878_v32  ;;  %v3940_v32 = vld [vmem:[%s4611_s29 + $0x254] ss:$24 sps:$4 sm:$0xff]  }
  0x76   : > { %1888 = vmatpush1.bf16.msra.mxu1 %v4776_v35  ;;  %1170 = vmatprep.subr.bf16.mxu0 %v3886_v39  ;;  %v4911_v39 = vld [vmem:[%s4616_s10 + $0x274] ss:$24 sps:$4 sm:$0xff]  }
  0x77   : > { %1889 = vmatprep.subr.bf16.mxu1 %v4786_v41  ;;  %1070 = vmatprep.mubr.bf16.mxu0 %v4802_v48 }
  0x78   : > { %1143 = vmatprep.mubr.bf16.mxu1 %v4802_v48 }
  0x79   : > { %1171 = vmatpush1.bf16.msra.mxu0 %v3884_v42  ;;  %v3944_v42 = vld [vmem:[%s4611_s29 + $0x280] ss:$24 sps:$4 sm:$0xff]  }
  0x7a   : > { %1890 = vmatpush1.bf16.msra.mxu1 %v4792_v43  ;;  %1172 = vmatprep.subr.bf16.mxu0 %v3892_v44  ;;  %v4916_v44 = vld [vmem:[%s4616_s10 + $0x270] ss:$24 sps:$4 sm:$0xff]  }
  0x7b   : > { %1891 = vmatprep.subr.bf16.mxu1 %v4800_v45  ;;  %6915 = vst [vmem:[#allocation14_spill] sm:$0xff] %v4916_v44 }
  0x7c   : > { %1071 = vmatmul.mubr.bf16.gmra.mrb[8].mxu0 %v4808_v53 }
  0x7d   : > { %1144 = vmatmul.mubr.bf16.gmra.mrb[8].mxu1 %v4808_v53  ;;  %1173 = vmatpush1.bf16.msra.mxu0 %v3890_v51  ;;  %v3958_v51 = vld [vmem:[%s4611_s29 + $0x2e4] ss:$24 sps:$4 sm:$0xff]  }
  0x7e   : > { %1892 = vmatpush1.bf16.msra.mxu1 %v4806_v52  ;;  %1174 = vmatprep.subr.bf16.mxu0 %v3898_v54  ;;  %v4931_v54 = vld [vmem:[%s4616_s10 + $0x2d4] ss:$24 sps:$4 sm:$0xff]  }
  0x7f   : > { %1893 = vmatprep.subr.bf16.mxu1 %v4814_v55  ;;  %1080 = vmatprep.mubr.bf16.mxu0 %v4830_v63  ;;  %6918 = vst [vmem:[#allocation17_spill] sm:$0xff] %v4931_v54 }
  0x80   : > { %1153 = vmatprep.mubr.bf16.mxu1 %v4830_v63 }
  0x81   : > { %1175 = vmatpush1.bf16.msra.mxu0 %v3896_v56  ;;  %v3956_v56 = vld [vmem:[%s4611_s29 + $0x2e0] ss:$24 sps:$4 sm:$0xff]  }
  0x82   : > { %1894 = vmatpush1.bf16.msra.mxu1 %v4818_v57  ;;  %1176 = vmatprep.subr.bf16.mxu0 %v3904_v58  ;;  %v4935_v58 = vld [vmem:[%s4616_s10 + $0x2d0] ss:$24 sps:$4 sm:$0xff]  }
  0x83   : > { %1895 = vmatprep.subr.bf16.mxu1 %v4827_v60  ;;  %6919 = vst [vmem:[#allocation18_spill] sm:$0xff] %v4935_v58 }
  0x84   : > { %1081 = vmatmul.mubr.bf16.gmra.mrb[12].mxu0 %v4837_v4 }
  0x85   : > { %1154 = vmatmul.mubr.bf16.gmra.mrb[12].mxu1 %v4837_v4  ;;  %1177 = vmatpush1.bf16.msra.mxu0 %v3902_v1  ;;  %v4953_v1 = vld [vmem:[%s4616_s10 + $0x8] ss:$24 sps:$4 sm:$0xff]  }
  0x86   : > { %1896 = vmatpush1.bf16.msra.mxu1 %v4834_v2  ;;  %1178 = vmatprep.subr.bf16.mxu0 %v3910_v5  ;;  %v4957_v5 = vld [vmem:[%s4616_s10 + $0x10] ss:$24 sps:$4 sm:$0xff]  }
  0x87   : > { %1897 = vmatprep.subr.bf16.mxu1 %v4844_v6  ;;  %1196 = vmatprep.mubr.bf16.mxu0 %v4728_v3  ;;  %v3920_v3 = vld [vmem:[%s4611_s29 + $0x1c0] ss:$24 sps:$4 sm:$0xff]   ;;  %6922 = vst [vmem:[#allocation21_spill] sm:$0xff] %v4957_v5 }
  0x88   : > { %1915 = vmatprep.mubr.bf16.mxu1 %v4850_v9 }
  0x89   : > { %1179 = vmatpush1.bf16.msra.mxu0 %v3908_v8  ;;  %v4965_v8 = vld [vmem:[%s4616_s10 + $0x44] ss:$24 sps:$4 sm:$0xff]  }
  0x8a   : > { %1898 = vmatpush1.bf16.msra.mxu1 %v4854_v10  ;;  %1180 = vmatprep.subr.bf16.mxu0 %v3916_v11  ;;  %6923 = vst [vmem:[#allocation22_spill] sm:$0xff] %v4965_v8  ;;  %v4970_v11 = vld [vmem:[%s4616_s10 + $0x38] ss:$24 sps:$4 sm:$0xff]  }
  0x8b   : > { %1899 = vmatprep.subr.bf16.mxu1 %v4859_v12 }
  0x8d   : > { %1181 = vmatpush1.bf16.msra.mxu0 %v3914_v13  ;;  %v4975_v13 = vld [vmem:[%s4616_s10 + $0x40] ss:$24 sps:$4 sm:$0xff]  }
  0x8e   : > { %1900 = vmatpush1.bf16.msra.mxu1 %v4866_v14  ;;  %1182 = vmatprep.subr.bf16.mxu0 %v3922_v15  ;;  %6924 = vst [vmem:[#allocation23_spill] sm:$0xff] %v4975_v13  ;;  %v4980_v15 = vld [vmem:[%s4616_s10 + $0x6c] ss:$24 sps:$4 sm:$0xff]  }
  0x8f   : > { %1901 = vmatprep.subr.bf16.mxu1 %v4871_v16 }
  0x91   : > { %1183 = vmatpush1.bf16.msra.mxu0 %v3920_v3  ;;  %v4990_v3 = vld [vmem:[%s4616_s10 + $0x68] ss:$24 sps:$4 sm:$0xff]  }
  0x92   : > { %1902 = vmatpush1.bf16.msra.mxu1 %v4876_v17  ;;  %1184 = vmatprep.subr.bf16.mxu0 %v3928_v18  ;;  %v4993_v18 = vld [vmem:[%s4616_s10 + $0x70] ss:$24 sps:$4 sm:$0xff]  }
  0x93   : > { %1903 = vmatprep.subr.bf16.mxu1 %v4881_v19  ;;  %6926 = vst [vmem:[#allocation25_spill] sm:$0xff] %v4993_v18 }
  0x95   : > { %1185 = vmatpush1.bf16.msra.mxu0 %v3926_v20  ;;  %v4998_v20 = vld [vmem:[%s4616_s10 + $0x9c] ss:$24 sps:$4 sm:$0xff]  }
  0x96   : > { %1904 = vmatpush1.bf16.msra.mxu1 %v4886_v21  ;;  %1186 = vmatprep.subr.bf16.mxu0 %v3934_v24  ;;  %v5007_v24 = vld [vmem:[%s4616_s10 + $0x98] ss:$24 sps:$4 sm:$0xff]  }
  0x97   : > { %1905 = vmatprep.subr.bf16.mxu1 %v4891_v26 }
  0x99   : > { %1187 = vmatpush1.bf16.msra.mxu0 %v3932_v28  ;;  %v5010_v28 = vld [vmem:[%s4616_s10 + $0xa0] ss:$24 sps:$4 sm:$0xff]  }
  0x9a   : > { %1906 = vmatpush1.bf16.msra.mxu1 %v4896_v30  ;;  %1188 = vmatprep.subr.bf16.mxu0 %v3940_v32  ;;  %6928 = vst [vmem:[#allocation27_spill] sm:$0xff] %v5010_v28  ;;  %v5015_v32 = vld [vmem:[%s4616_s10 + $0xcc] ss:$24 sps:$4 sm:$0xff]  }
  0x9b   : > { %1907 = vmatprep.subr.bf16.mxu1 %v4901_v33 }
  0x9d   : > { %1189 = vmatpush1.bf16.msra.mxu0 %v3938_v34  ;;  %v5018_v34 = vld [vmem:[%s4616_s10 + $0xd4] ss:$24 sps:$4 sm:$0xff]  }
  0x9e   : > { %1908 = vmatpush1.bf16.msra.mxu1 %v4906_v37  ;;  %1190 = vmatprep.subr.bf16.mxu0 %v3946_v38  ;;  %6929 = vst [vmem:[#allocation28_spill] sm:$0xff] %v5018_v34  ;;  %v5027_v38 = vld [vmem:[%s4616_s10 + $0xd0] ss:$24 sps:$4 sm:$0xff]  }
  0x9f   : > { %1909 = vmatprep.subr.bf16.mxu1 %v4911_v39  ;;  %6930 = vst [vmem:[#allocation29_spill] sm:$0xff] %v5027_v38 }
  0xa1   : > { %1191 = vmatpush1.bf16.msra.mxu0 %v3944_v42  ;;  %v5032_v42 = vld [vmem:[%s4616_s10 + $0xfc] ss:$24 sps:$4 sm:$0xff]  }
  0xa2   : > { %1910 = vmatpush1.bf16.msra.mxu1 %v4916_v44  ;;  %1192 = vmatprep.subr.bf16.mxu0 %v3952_v46  ;;  %v5035_v46 = vld [vmem:[%s4616_s10 + $0x104] ss:$24 sps:$4 sm:$0xff]  }
  0xa3   : > { %1911 = vmatprep.subr.bf16.mxu1 %v4921_v47  ;;  %6931 = vst [vmem:[#allocation30_spill] sm:$0xff] %v5035_v46  ;;  %v5196_v47 = vld [vmem:[%s4616_s10 + $0x2dc] ss:$24 sps:$4 sm:$0xff]  }
  0xa4   : > { %6954 = vst [vmem:[#allocation53_spill] sm:$0xff] %v5196_v47  ;;  %v5199_v44 = vld [vmem:[%s4616_s10 + $0x2e4] ss:$24 sps:$4 sm:$0xff]  }
  0xa5   : > { %1193 = vmatpush1.bf16.msra.mxu0 %v3950_v49  ;;  %v5044_v49 = vld [vmem:[%s4616_s10 + $0x100] ss:$24 sps:$4 sm:$0xff]  }
  0xa6   : > { %1912 = vmatpush1.bf16.msra.mxu1 %v4926_v50  ;;  %1194 = vmatprep.subr.bf16.mxu0 %v3958_v51  ;;  %6932 = vst [vmem:[#allocation31_spill] sm:$0xff] %v5044_v49  ;;  %v5049_v51 = vld [vmem:[%s4616_s10 + $0x12c] ss:$24 sps:$4 sm:$0xff]   ;;  %v5188_v50 = vld [vmem:[%s4616_s10 + $0x2a8] ss:$24 sps:$4 sm:$0xff]  }
  0xa7   : > { %1913 = vmatprep.subr.bf16.mxu1 %v4931_v54  ;;  %v5183_v54 = vld [vmem:[%s4616_s10 + $0x2b4] ss:$24 sps:$4 sm:$0xff]   ;;  %6953 = vst [vmem:[#allocation52_spill] sm:$0xff] %v5188_v50 }
  0xa9   : > { %1195 = vmatpush1.bf16.msra.mxu0 %v3956_v56  ;;  %v5052_v56 = vld [vmem:[%s4616_s10 + $0x134] ss:$24 sps:$4 sm:$0xff]  }
  0xaa   : > { %1914 = vmatpush1.bf16.msra.mxu1 %v4935_v58  ;;  %1924 = vmatprep.subr.bf16.mxu0 %v4943_v61  ;;  %6933 = vst [vmem:[#allocation32_spill] sm:$0xff] %v5052_v56  ;;  %v5175_v58 = vld [vmem:[%s4616_s10 + $0x280] ss:$24 sps:$4 sm:$0xff]  }
  0xab   : > { %1965 = vmatprep.subr.bf16.mxu1 %v4946_v62  ;;  %v5167_v62 = vld [vmem:[%s4616_s10 + $0x284] ss:$24 sps:$4 sm:$0xff]  }
  0xac   : > { %1197 = vmatmul.mubr.bf16.vlgmr.msra.gmra.mrb[16].mxu0 %v4751_v23  ;;  %v4983_v23 = vld [vmem:[%s4616_s10 + $0x74] ss:$24 sps:$4 sm:$0xff]   ;;  %6950 = vst [vmem:[#allocation49_spill] sm:$0xff] %v5167_v62 }
  0xad   : > { %1916 = vmatmul.mubr.bf16.vlgmr.msra.gmra.mrb[16].mxu1 %v4950_v0  ;;  %1925 = vmatpush1.bf16.msra.mxu0 %v4953_v1  ;;  %6925 = vst [vmem:[#allocation24_spill] sm:$0xff] %v4983_v23 }
  0xae   : > { %1966 = vmatpush1.bf16.msra.mxu1 %v4957_v5  ;;  %1926 = vmatprep.subr.bf16.mxu0 %v4960_v7  ;;  %v5151_v5 = vld [vmem:[%s4616_s10 + $0x254] ss:$24 sps:$4 sm:$0xff]  }
  0xaf   : > { %1967 = vmatprep.subr.bf16.mxu1 %v4965_v8  ;;  %1206 = vmatprep.mubr.bf16.mxu0 %v4778_v36  ;;  %v5001_v36 = vld [vmem:[%s4616_s10 + $0xa4] ss:$24 sps:$4 sm:$0xff]   ;;  %v5143_v8 = vld [vmem:[%s4616_s10 + $0x220] ss:$24 sps:$4 sm:$0xff]   ;;  %6946 = vst [vmem:[#allocation45_spill] sm:$0xff] %v5151_v5 }
  0xb0   : > { %1997 = vmatprep.mubr.bf16.mxu1 %v4850_v9  ;;  %6927 = vst [vmem:[#allocation26_spill] sm:$0xff] %v5001_v36  ;;  %6944 = vst [vmem:[#allocation43_spill] sm:$0xff] %v5143_v8 }
  0xb1   : > { %1927 = vmatpush1.bf16.msra.mxu0 %v4970_v11 }
  0xb2   : > { %1968 = vmatpush1.bf16.msra.mxu1 %v4975_v13  ;;  %1928 = vmatprep.subr.bf16.mxu0 %v4980_v15  ;;  %v5135_v13 = vld [vmem:[%s4616_s10 + $0x224] ss:$24 sps:$4 sm:$0xff]  }
  0xb3   : > { %1969 = vmatprep.subr.bf16.mxu1 %v4983_v23  ;;  %v5127_v23 = vld [vmem:[%s4616_s10 + $0x1f0] ss:$24 sps:$4 sm:$0xff]   ;;  %6943 = vst [vmem:[#allocation42_spill] sm:$0xff] %v5135_v13 }
  0xb4   : > { %1207 = vmatmul.mubr.bf16.gmra.mrb[20].mxu0 %v4782_v40  ;;  %v5024_v40 = vld [vmem:[%s4616_s10 + $0xc8] ss:$24 sps:$4 sm:$0xff]   ;;  %6942 = vst [vmem:[#allocation41_spill] sm:$0xff] %v5127_v23 }
  0xb5   : > { %1929 = vmatpush1.bf16.msra.mxu0 %v4990_v3  ;;  %1216 = vmatprep.mubr.bf16.mxu0 %v4802_v48  ;;  %v5041_v48 = vld [vmem:[%s4616_s10 + $0xf8] ss:$24 sps:$4 sm:$0xff]  }
  0xb6   : > { %1970 = vmatpush1.bf16.msra.mxu1 %v4993_v18  ;;  %1930 = vmatprep.subr.bf16.mxu0 %v4998_v20  ;;  %v5119_v18 = vld [vmem:[%s4616_s10 + $0x1f4] ss:$24 sps:$4 sm:$0xff]  }
  0xb7   : > { %1971 = vmatprep.subr.bf16.mxu1 %v5001_v36  ;;  %v5103_v36 = vld [vmem:[%s4616_s10 + $0x1c4] ss:$24 sps:$4 sm:$0xff]   ;;  %6941 = vst [vmem:[#allocation40_spill] sm:$0xff] %v5119_v18 }
  0xb8   : > { %6939 = vst [vmem:[#allocation38_spill] sm:$0xff] %v5103_v36 }
  0xb9   : > { %1931 = vmatpush1.bf16.msra.mxu0 %v5007_v24 }
  0xba   : > { %1972 = vmatpush1.bf16.msra.mxu1 %v5010_v28  ;;  %1932 = vmatprep.subr.bf16.mxu0 %v5015_v32  ;;  %v5086_v28 = vld [vmem:[%s4616_s10 + $0x194] ss:$24 sps:$4 sm:$0xff]  }
  0xbb   : > { %1973 = vmatprep.subr.bf16.mxu1 %v5018_v34  ;;  %v5069_v34 = vld [vmem:[%s4616_s10 + $0x164] ss:$24 sps:$4 sm:$0xff]   ;;  %6937 = vst [vmem:[#allocation36_spill] sm:$0xff] %v5086_v28 }
  0xbc   : > { %1217 = vmatmul.mubr.bf16.gmra.mrb[24].mxu0 %v4808_v53  ;;  %v5058_v53 = vld [vmem:[%s4616_s10 + $0x128] ss:$24 sps:$4 sm:$0xff]   ;;  %6935 = vst [vmem:[#allocation34_spill] sm:$0xff] %v5069_v34 }
  0xbd   : > { %1933 = vmatpush1.bf16.msra.mxu0 %v5024_v40  ;;  %1226 = vmatprep.mubr.bf16.mxu0 %v4830_v63  ;;  %v5075_v63 = vld [vmem:[%s4616_s10 + $0x158] ss:$24 sps:$4 sm:$0xff]  }
  0xbe   : > { %1974 = vmatpush1.bf16.msra.mxu1 %v5027_v38  ;;  %1934 = vmatprep.subr.bf16.mxu0 %v5032_v42  ;;  %v5061_v38 = vld [vmem:[%s4616_s10 + $0x130] ss:$24 sps:$4 sm:$0xff]  }
  0xbf   : > { %1975 = vmatprep.subr.bf16.mxu1 %v5035_v46  ;;  %6934 = vst [vmem:[#allocation33_spill] sm:$0xff] %v5061_v38  ;;  %v5066_v46 = vld [vmem:[%s4616_s10 + $0x15c] ss:$24 sps:$4 sm:$0xff]  }
  0xc1   : > { %1935 = vmatpush1.bf16.msra.mxu0 %v5041_v48 }
  0xc2   : > { %1976 = vmatpush1.bf16.msra.mxu1 %v5044_v49  ;;  %1936 = vmatprep.subr.bf16.mxu0 %v5049_v51  ;;  %v5078_v49 = vld [vmem:[%s4616_s10 + $0x160] ss:$24 sps:$4 sm:$0xff]  }
  0xc3   : > { %1977 = vmatprep.subr.bf16.mxu1 %v5052_v56  ;;  %6936 = vst [vmem:[#allocation35_spill] sm:$0xff] %v5078_v49  ;;  %v5083_v56 = vld [vmem:[%s4616_s10 + $0x18c] ss:$24 sps:$4 sm:$0xff]  }
  0xc4   : > { %1227 = vmatmul.mubr.bf16.gmra.mrb[28].mxu0 %v4837_v4  ;;  %v5092_v4 = vld [vmem:[%s4616_s10 + $0x188] ss:$24 sps:$4 sm:$0xff]  }
  0xc5   : > { %1937 = vmatpush1.bf16.msra.mxu0 %v5058_v53  ;;  %1956 = vmatprep.mubr.bf16.mxu0 %v4850_v9  ;;  %v5108_v9 = vld [vmem:[%s4616_s10 + $0x1b8] ss:$24 sps:$4 sm:$0xff]  }
  0xc6   : > { %1978 = vmatpush1.bf16.msra.mxu1 %v5061_v38  ;;  %1938 = vmatprep.subr.bf16.mxu0 %v5066_v46  ;;  %v5095_v38 = vld [vmem:[%s4616_s10 + $0x190] ss:$24 sps:$4 sm:$0xff]  }
  0xc7   : > { %1979 = vmatprep.subr.bf16.mxu1 %v5069_v34  ;;  %6938 = vst [vmem:[#allocation37_spill] sm:$0xff] %v5095_v38  ;;  %v5100_v34 = vld [vmem:[%s4616_s10 + $0x1bc] ss:$24 sps:$4 sm:$0xff]  }
  0xc9   : > { %1939 = vmatpush1.bf16.msra.mxu0 %v5075_v63 }
  0xca   : > { %1980 = vmatpush1.bf16.msra.mxu1 %v5078_v49  ;;  %1940 = vmatprep.subr.bf16.mxu0 %v5083_v56  ;;  %v5111_v49 = vld [vmem:[%s4616_s10 + $0x1c0] ss:$24 sps:$4 sm:$0xff]  }
  0xcb   : > { %1981 = vmatprep.subr.bf16.mxu1 %v5086_v28  ;;  %6940 = vst [vmem:[#allocation39_spill] sm:$0xff] %v5111_v49  ;;  %v5116_v28 = vld [vmem:[%s4616_s10 + $0x1ec] ss:$24 sps:$4 sm:$0xff]  }
  0xcd   : > { %1941 = vmatpush1.bf16.msra.mxu0 %v5092_v4 }
  0xce   : > { %1982 = vmatpush1.bf16.msra.mxu1 %v5095_v38  ;;  %1942 = vmatprep.subr.bf16.mxu0 %v5100_v34  ;;  %v5124_v38 = vld [vmem:[%s4616_s10 + $0x1e8] ss:$24 sps:$4 sm:$0xff]  }
  0xcf   : > { %1983 = vmatprep.subr.bf16.mxu1 %v5103_v36  ;;  %v5132_v36 = vld [vmem:[%s4616_s10 + $0x21c] ss:$24 sps:$4 sm:$0xff]  }
  0xd1   : > { %1943 = vmatpush1.bf16.msra.mxu0 %v5108_v9 }
  0xd2   : > { %1984 = vmatpush1.bf16.msra.mxu1 %v5111_v49  ;;  %1944 = vmatprep.subr.bf16.mxu0 %v5116_v28  ;;  %v5140_v49 = vld [vmem:[%s4616_s10 + $0x218] ss:$24 sps:$4 sm:$0xff]  }
  0xd3   : > { %1985 = vmatprep.subr.bf16.mxu1 %v5119_v18  ;;  %v5148_v18 = vld [vmem:[%s4616_s10 + $0x24c] ss:$24 sps:$4 sm:$0xff]  }
  0xd4   : > { %6945 = vst [vmem:[#allocation44_spill] sm:$0xff] %v5148_v18 }
  0xd5   : > { %1945 = vmatpush1.bf16.msra.mxu0 %v5124_v38 }
  0xd6   : > { %1986 = vmatpush1.bf16.msra.mxu1 %v5127_v23  ;;  %1946 = vmatprep.subr.bf16.mxu0 %v5132_v36  ;;  %v5156_v23 = vld [vmem:[%s4616_s10 + $0x248] ss:$24 sps:$4 sm:$0xff]  }
  0xd7   : > { %1987 = vmatprep.subr.bf16.mxu1 %v5135_v13  ;;  %6947 = vst [vmem:[#allocation46_spill] sm:$0xff] %v5156_v23  ;;  %v5164_v13 = vld [vmem:[%s4616_s10 + $0x27c] ss:$24 sps:$4 sm:$0xff]  }
  0xd8   : > { %6949 = vst [vmem:[#allocation48_spill] sm:$0xff] %v5164_v13 }
  0xd9   : > { %1947 = vmatpush1.bf16.msra.mxu0 %v5140_v49 }
  0xda   : > { %1988 = vmatpush1.bf16.msra.mxu1 %v5143_v8  ;;  %1948 = vmatprep.subr.bf16.mxu0 %v5148_v18  ;;  %v5172_v8 = vld [vmem:[%s4616_s10 + $0x278] ss:$24 sps:$4 sm:$0xff]  }
  0xdb   : > { %1989 = vmatprep.subr.bf16.mxu1 %v5151_v5  ;;  %6951 = vst [vmem:[#allocation50_spill] sm:$0xff] %v5172_v8  ;;  %v5180_v5 = vld [vmem:[%s4616_s10 + $0x2ac] ss:$24 sps:$4 sm:$0xff]  }
  0xdc   : > { %6952 = vst [vmem:[#allocation51_spill] sm:$0xff] %v5180_v5 }
  0xdd   : > { %1949 = vmatpush1.bf16.msra.mxu0 %v5156_v23 }
  0xde   : > { %1990 = vmatpush1.bf16.msra.mxu1 %v5159_v59  ;;  %1950 = vmatprep.subr.bf16.mxu0 %v5164_v13  ;;  %v5191_v59 = vld [vmem:[%s4616_s10 + $0x2b0] ss:$24 sps:$4 sm:$0xff]  }
  0xdf   : > { %1991 = vmatprep.subr.bf16.mxu1 %v5167_v62  ;;  %v5204_v62 = vld [vmem:[%s4616_s10 + $0x2d8] ss:$24 sps:$4 sm:$0xff]  }
  0xe0   : > { %6955 = vst [vmem:[#allocation54_spill] sm:$0xff] %v5204_v62 }
  0xe1   : > { %1951 = vmatpush1.bf16.msra.mxu0 %v5172_v8  ;;  %v5207_v8 = vld [vmem:[%s4616_s10 + $0x2e0] ss:$24 sps:$4 sm:$0xff]  }
  0xe2   : > { %1992 = vmatpush1.bf16.msra.mxu1 %v5175_v58  ;;  %1952 = vmatprep.subr.bf16.mxu0 %v5180_v5 }
  0xe3   : > { %1993 = vmatprep.subr.bf16.mxu1 %v5183_v54 }
  0xe5   : > { %1953 = vmatpush1.bf16.msra.mxu0 %v5188_v50 }
  0xe6   : > { %1994 = vmatpush1.bf16.msra.mxu1 %v5191_v59  ;;  %1954 = vmatprep.subr.bf16.mxu0 %v5196_v47 }
  0xe7   : > { %1995 = vmatprep.subr.bf16.mxu1 %v5199_v44 }
  0xe9   : > { %1955 = vmatpush1.bf16.msra.mxu0 %v5204_v62 }
  0xea   : > { %1996 = vmatpush1.bf16.msra.mxu1 %v5207_v8  ;;  %2059 = vmatprep.subr.bf16.mxu0 %v4749_v22 }
  0xeb   : > { %2100 = vmatprep.subr.bf16.mxu1 %v4943_v61 }
  0xec   : > { %1957 = vmatmul.mubr.bf16.vlgmr.msra.gmra.mrb[32].mxu0 %v4950_v0 }
  0xed   : > { %1998 = vmatmul.mubr.bf16.vlgmr.msra.gmra.mrb[20].mxu1 %v4950_v0  ;;  %2060 = vmatpush1.bf16.msra.mxu0 %v4755_v25  ;;  %v6956_v25 = vld [vmem:[#allocation14_spill] sm:$0xff] }
  0xee   : > { %2101 = vmatpush1.bf16.msra.mxu1 %v4953_v1  ;;  %2061 = vmatprep.subr.bf16.mxu0 %v4760_v27  ;;  %v6957_v27 = vld [vmem:[#allocation50_spill] sm:$0xff] }
  0xef   : > { %2102 = vmatprep.subr.bf16.mxu1 %v4960_v7 }
  0xf1   : > { %2062 = vmatpush1.bf16.msra.mxu0 %v4766_v29  ;;  %v6958_v29 = vld [vmem:[#allocation15_spill] sm:$0xff] }
  0xf2   : > { %2103 = vmatpush1.bf16.msra.mxu1 %v4970_v11  ;;  %2063 = vmatprep.subr.bf16.mxu0 %v4772_v31  ;;  %v6959_v31 = vld [vmem:[#allocation16_spill] sm:$0xff] }
  0xf3   : > { %2104 = vmatprep.subr.bf16.mxu1 %v4980_v15 }
  0xf5   : > { %2064 = vmatpush1.bf16.msra.mxu0 %v4776_v35  ;;  %v6960_v35 = vld [vmem:[#allocation17_spill] sm:$0xff] }
  0xf6   : > { %2105 = vmatpush1.bf16.msra.mxu1 %v4990_v3  ;;  %2065 = vmatprep.subr.bf16.mxu0 %v4786_v41  ;;  %v6961_v41 = vld [vmem:[#allocation18_spill] sm:$0xff] }
  0xf7   : > { %2106 = vmatprep.subr.bf16.mxu1 %v4998_v20 }
  0xf9   : > { %2066 = vmatpush1.bf16.msra.mxu0 %v4792_v43  ;;  %v6962_v43 = vld [vmem:[#allocation20_spill] sm:$0xff] }
  0xfa   : > { %2107 = vmatpush1.bf16.msra.mxu1 %v5007_v24  ;;  %2067 = vmatprep.subr.bf16.mxu0 %v4800_v45  ;;  %v508_v45 = vlaneseq }
  0xfb   : > { %2108 = vmatprep.subr.bf16.mxu1 %v5015_v32 }
  0xfd   : > { %2068 = vmatpush1.bf16.msra.mxu0 %v4806_v52  ;;  %v5281_v52 = vshrl.u32 %v508_v45, 7 }
  0xfe   : > { %2109 = vmatpush1.bf16.msra.mxu1 %v5024_v40  ;;  %2069 = vmatprep.subr.bf16.mxu0 %v4814_v55 }
  0xff   : > { %2110 = vmatprep.subr.bf16.mxu1 %v5032_v42  ;;  %v6771_v55 = vsub.s32 0, %v5281_v52 }
 0x101   : > { %2070 = vmatpush1.bf16.msra.mxu0 %v4818_v57  ;;  %v518_v57 = vsub.s32 2, %v5281_v52 }
 0x102   : > { %2111 = vmatpush1.bf16.msra.mxu1 %v5041_v48  ;;  %2071 = vmatprep.subr.bf16.mxu0 %v4827_v60  ;;  %v5286_v60 = vld [vmem:[%s4621_s30] sm:$0x3f] }
 0x103   : > { %2112 = vmatprep.subr.bf16.mxu1 %v5049_v51 }
 0x105   : > { %2072 = vmatpush1.bf16.msra.mxu0 %v4834_v2  ;;  %v522_v2 = vsub.s32 3, %v5281_v52 }
 0x106   : > { %2113 = vmatpush1.bf16.msra.mxu1 %v5058_v53  ;;  %2073 = vmatprep.subr.bf16.mxu0 %v4844_v6  ;;  %v6777_v6 = vsub.s32 1, %v5281_v52 }
 0x107   : > { %2114 = vmatprep.subr.bf16.mxu1 %v5066_v46 }
 0x109   : > { %2074 = vmatpush1.bf16.msra.mxu0 %v4854_v10  ;;  %v5293_v10 = vrot.slane %v5286_v60, %v6771_v55 }
 0x10a   : > { %2115 = vmatpush1.bf16.msra.mxu1 %v5075_v63  ;;  %2075 = vmatprep.subr.bf16.mxu0 %v4859_v12 }
 0x10b   : > { %2116 = vmatprep.subr.bf16.mxu1 %v5083_v56 }
 0x10d   : > { %2076 = vmatpush1.bf16.msra.mxu0 %v4866_v14 }
 0x10e   : > { %2117 = vmatpush1.bf16.msra.mxu1 %v5092_v4  ;;  %2077 = vmatprep.subr.bf16.mxu0 %v4871_v16  ;;  %v5303_v16 = vrot.slane %v5286_v60, %v522_v2 }
 0x10f   : > { %2118 = vmatprep.subr.bf16.mxu1 %v5100_v34 }
 0x111   : > { %2078 = vmatpush1.bf16.msra.mxu0 %v4876_v17 }
 0x112   : > { %2119 = vmatpush1.bf16.msra.mxu1 %v5108_v9  ;;  %2079 = vmatprep.subr.bf16.mxu0 %v4881_v19 }
 0x113   : > { %2120 = vmatprep.subr.bf16.mxu1 %v5116_v28 }
 0x115   : > { %2080 = vmatpush1.bf16.msra.mxu0 %v4886_v21  ;;  %v515_v21 = vrot.slane %v5286_v60, %v6777_v6 }
 0x116   : > { %2121 = vmatpush1.bf16.msra.mxu1 %v5124_v38  ;;  %2081 = vmatprep.subr.bf16.mxu0 %v4891_v26 }
 0x117   : > { %2122 = vmatprep.subr.bf16.mxu1 %v5132_v36 }
 0x119   : > { %2082 = vmatpush1.bf16.msra.mxu0 %v4896_v30 }
 0x11a   : > { %2123 = vmatpush1.bf16.msra.mxu1 %v5140_v49  ;;  %2083 = vmatprep.subr.bf16.mxu0 %v4901_v33 }
 0x11b   : > { %2124 = vmatprep.subr.bf16.mxu1 %v5148_v18 }
 0x11d   : > { %2084 = vmatpush1.bf16.msra.mxu0 %v4906_v37 }
 0x11e   : > { %2125 = vmatpush1.bf16.msra.mxu1 %v5156_v23  ;;  %2085 = vmatprep.subr.bf16.mxu0 %v4911_v39 }
 0x11f   : > { %2126 = vmatprep.subr.bf16.mxu1 %v5164_v13 }
 0x121   : > { %2086 = vmatpush1.bf16.msra.mxu0 %v6956_v25 }
 0x122   : > { %2127 = vmatpush1.bf16.msra.mxu1 %v6957_v27  ;;  %2087 = vmatprep.subr.bf16.mxu0 %v6958_v29 }
 0x123   : > { %2128 = vmatprep.subr.bf16.mxu1 %v5180_v5 }
 0x125   : > { %2088 = vmatpush1.bf16.msra.mxu0 %v6959_v31 }
 0x126   : > { %2129 = vmatpush1.bf16.msra.mxu1 %v5188_v50  ;;  %2089 = vmatprep.subr.bf16.mxu0 %v6960_v35 }
 0x127   : > { %2130 = vmatprep.subr.bf16.mxu1 %v5196_v47 }
 0x129   : > { %2090 = vmatpush1.bf16.msra.mxu0 %v6961_v41 }
 0x12a   : > { %2131 = vmatpush1.bf16.msra.mxu1 %v5204_v62  ;;  %2141 = vmatprep.subr.bf16.mxu0 %v6962_v43 }
 0x12b   : > { %2236 = vmatprep.subr.bf16.mxu1 %v4749_v22  ;;  %v5296_v22 = vrot.slane %v5286_v60, %v518_v57 }
 0x13f   : > { %v5298_v12 = vpop.f32.mrb[0].mxu0 }
 0x140   : > { %v5300_v14 = vpop.f32.mrb[0].mxu1  ;;  %v5305_v17 = vpop.f32.mrb[1].mxu0 }
 0x141   : > { %v5307_v19 = vpop.f32.mrb[1].mxu1  ;;  %v1056_v26 = vpop.f32.mrb[2].mxu0 }
 0x142   : > { %v1129_v0 = vpop.f32.mrb[2].mxu1  ;;  %v5313_v45 = vadd.f32 %v1056_v26, %v5293_v10  ;;  %v1058_v57 = vpop.f32.mrb[3].mxu0 }
 0x143   : > { %v5316_v55 = vadd.f32 %v1129_v0, %v5296_v22  ;;  %v1131_v62 = vpop.f32.mrb[3].mxu1  ;;  %v5318_v2 = vadd.f32 %v1058_v57, %v515_v21 }
 0x144   : > { %6963 = vst [vmem:[#allocation14_spill] sm:$0xff] %v5313_v45  ;;  %v5321_v47 = vadd.f32 %v1131_v62, %v5303_v16 }
 0x145   : > { %6964 = vst [vmem:[#allocation15_spill] sm:$0xff] %v5316_v55  ;;  %6965 = vst [vmem:[#allocation16_spill] sm:$0xff] %v5318_v2 }
 0x146   : > { %6966 = vst [vmem:[#allocation17_spill] sm:$0xff] %v5321_v47 }
 0x147   : > { %v1062_v50 = vpop.f32.mrb[4].mxu0 }
 0x148   : > { %v1135_v5 = vpop.f32.mrb[4].mxu1  ;;  %v5324_v27 = vadd.f32 %v1062_v50, %v5293_v10  ;;  %v1064_v6 = vpop.f32.mrb[5].mxu0 }
 0x149   : > { %v5327_v13 = vadd.f32 %v1135_v5, %v5296_v22  ;;  %v1137_v26 = vpop.f32.mrb[5].mxu1  ;;  %v5329_v45 = vadd.f32 %v1064_v6, %v515_v21  ;;  %v1066_v0 = vpop.f32.mrb[6].mxu0 }
 0x14a   : > { %6967 = vst [vmem:[#allocation18_spill] sm:$0xff] %v5324_v27  ;;  %v5332_v55 = vadd.f32 %v1137_v26, %v5303_v16  ;;  %v1139_v57 = vpop.f32.mrb[6].mxu1  ;;  %v5335_v62 = vadd.f32 %v1066_v0, %v5293_v10  ;;  %v1068_v47 = vpop.f32.mrb[7].mxu0 }
 0x14b   : > { %6968 = vst [vmem:[#allocation20_spill] sm:$0xff] %v5327_v13  ;;  %6969 = vst [vmem:[#allocation55_spill] sm:$0xff] %v5329_v45  ;;  %v5338_v2 = vadd.f32 %v1139_v57, %v5296_v22  ;;  %v1141_v50 = vpop.f32.mrb[7].mxu1  ;;  %v5340_v27 = vadd.f32 %v1068_v47, %v515_v21 }
 0x14c   : > { %6970 = vst [vmem:[#allocation56_spill] sm:$0xff] %v5332_v55  ;;  %6971 = vst [vmem:[#allocation57_spill] sm:$0xff] %v5335_v62  ;;  %v5343_v5 = vadd.f32 %v1141_v50, %v5303_v16 }
 0x14d   : > { %6972 = vst [vmem:[#allocation58_spill] sm:$0xff] %v5338_v2  ;;  %6973 = vst [vmem:[#allocation59_spill] sm:$0xff] %v5340_v27 }
 0x14e   : > { %6974 = vst [vmem:[#allocation60_spill] sm:$0xff] %v5343_v5 }
 0x14f   : > { %v1072_v6 = vpop.f32.mrb[8].mxu0 }
 0x150   : > { %v1145_v45 = vpop.f32.mrb[8].mxu1  ;;  %v5346_v13 = vadd.f32 %v1072_v6, %v5293_v10  ;;  %v1074_v26 = vpop.f32.mrb[9].mxu0 }
 0x151   : > { %v5349_v55 = vadd.f32 %v1145_v45, %v5296_v22  ;;  %v1147_v0 = vpop.f32.mrb[9].mxu1  ;;  %v5351_v62 = vadd.f32 %v1074_v26, %v515_v21  ;;  %v1076_v57 = vpop.f32.mrb[10].mxu0 }
 0x152   : > { %6975 = vst [vmem:[#allocation61_spill] sm:$0xff] %v5346_v13  ;;  %v5354_v2 = vadd.f32 %v1147_v0, %v5303_v16  ;;  %v1149_v47 = vpop.f32.mrb[10].mxu1  ;;  %v5357_v50 = vadd.f32 %v1076_v57, %v5293_v10  ;;  %v1078_v5 = vpop.f32.mrb[11].mxu0 }
 0x153   : > { %6976 = vst [vmem:[#allocation62_spill] sm:$0xff] %v5349_v55  ;;  %6977 = vst [vmem:[#allocation63_spill] sm:$0xff] %v5351_v62  ;;  %v5360_v27 = vadd.f32 %v1149_v47, %v5296_v22  ;;  %v1151_v6 = vpop.f32.mrb[11].mxu1  ;;  %v5362_v13 = vadd.f32 %v1078_v5, %v515_v21 }
 0x154   : > { %6978 = vst [vmem:[#allocation64_spill] sm:$0xff] %v5354_v2  ;;  %6979 = vst [vmem:[#allocation65_spill] sm:$0xff] %v5357_v50  ;;  %v5365_v45 = vadd.f32 %v1151_v6, %v5303_v16 }
 0x155   : > { %6980 = vst [vmem:[#allocation66_spill] sm:$0xff] %v5360_v27  ;;  %6981 = vst [vmem:[#allocation67_spill] sm:$0xff] %v5362_v13 }
 0x156   : > { %6982 = vst [vmem:[#allocation68_spill] sm:$0xff] %v5365_v45 }
 0x157   : > { %v1082_v26 = vpop.f32.mrb[12].mxu0 }
 0x158   : > { %v1155_v62 = vpop.f32.mrb[12].mxu1  ;;  %v5368_v55 = vadd.f32 %v1082_v26, %v5293_v10  ;;  %v1084_v0 = vpop.f32.mrb[13].mxu0 }
 0x159   : > { %v5371_v2 = vadd.f32 %v1155_v62, %v5296_v22  ;;  %v1157_v57 = vpop.f32.mrb[13].mxu1  ;;  %v5373_v50 = vadd.f32 %v1084_v0, %v515_v21  ;;  %v1086_v47 = vpop.f32.mrb[14].mxu0  ;;  %v526_v0 = vsub.s32 4, %v5281_v52 }
 0x15a   : > { %6983 = vst [vmem:[#allocation69_spill] sm:$0xff] %v5368_v55  ;;  %v5376_v27 = vadd.f32 %v1157_v57, %v5303_v16  ;;  %v1159_v5 = vpop.f32.mrb[14].mxu1  ;;  %v5379_v6 = vadd.f32 %v1086_v47, %v5293_v10  ;;  %v1088_v45 = vpop.f32.mrb[15].mxu0  ;;  %v1053_v57 = vadd.f32 %v5298_v12, %v5293_v10 }
 0x15b   : > { %6984 = vst [vmem:[#allocation70_spill] sm:$0xff] %v5371_v2  ;;  %6985 = vst [vmem:[#allocation71_spill] sm:$0xff] %v5373_v50  ;;  %v5382_v13 = vadd.f32 %v1159_v5, %v5296_v22  ;;  %v1161_v26 = vpop.f32.mrb[15].mxu1  ;;  %v5384_v55 = vadd.f32 %v1088_v45, %v515_v21  ;;  %v530_v50 = vsub.s32 5, %v5281_v52  ;;  %v5394_v47 = vrot.slane %v5286_v60, %v526_v0 }
 0x15c   : > { %6986 = vst [vmem:[#allocation72_spill] sm:$0xff] %v5376_v27  ;;  %6987 = vst [vmem:[#allocation73_spill] sm:$0xff] %v5379_v6  ;;  %v5387_v62 = vadd.f32 %v1161_v26, %v5303_v16  ;;  %v1055_v6 = vadd.f32 %v5305_v17, %v515_v21 }
 0x15d   : > { %6988 = vst [vmem:[#allocation74_spill] sm:$0xff] %v5382_v13  ;;  %6989 = vst [vmem:[#allocation75_spill] sm:$0xff] %v5384_v55 }
 0x15e   : > { %6990 = vst [vmem:[#allocation76_spill] sm:$0xff] %v5387_v62  ;;  %v5402_v62 = vrot.slane %v5286_v60, %v530_v50 }
 0x17f   : > { %v5397_v5 = vpop.f32.mrb[16].mxu0 }
 0x180   : > { %v1917_v13 = vpop.f32.mrb[16].mxu1  ;;  %v5399_v55 = vpop.f32.mrb[17].mxu0 }
 0x181   : > { %v2006_v45 = vadd.f32 %v1917_v13, %v1053_v57  ;;  %v1919_v26 = vpop.f32.mrb[17].mxu1  ;;  %v1202_v2 = vpop.f32.mrb[18].mxu0 }
 0x182   : > { %v2007_v27 = vadd.f32 %v1919_v26, %v1055_v6  ;;  %v1921_v23 = vpop.f32.mrb[18].mxu1  ;;  %v5405_v10 = vadd.f32 %v1202_v2, %v5394_v47  ;;  %v1204_v12 = vpop.f32.mrb[19].mxu0 }
 0x183   : > { %v1922_v0 = vpop.f32.mrb[19].mxu1  ;;  %v5408_v17 = vadd.f32 %v1204_v12, %v5402_v62 }
 0x184   : > { %6991 = vst [vmem:[#allocation77_spill] sm:$0xff] %v5405_v10 }
 0x185   : > { %6992 = vst [vmem:[#allocation78_spill] sm:$0xff] %v5408_v17 }
 0x187   : > { %v1208_v21 = vpop.f32.mrb[20].mxu0 }
 0x188   : > { %v5411_v13 = vadd.f32 %v1208_v21, %v5394_v47  ;;  %v1210_v57 = vpop.f32.mrb[21].mxu0 }
 0x189   : > { %v5414_v18 = vadd.f32 %v1210_v57, %v5402_v62  ;;  %v1212_v60 = vpop.f32.mrb[22].mxu0 }
 0x18a   : > { %6993 = vst [vmem:[#allocation79_spill] sm:$0xff] %v5411_v13  ;;  %v5417_v50 = vadd.f32 %v1212_v60, %v5394_v47  ;;  %v1214_v23 = vpop.f32.mrb[23].mxu0 }
 0x18b   : > { %6994 = vst [vmem:[#allocation80_spill] sm:$0xff] %v5414_v18  ;;  %v5420_v2 = vadd.f32 %v1214_v23, %v5402_v62 }
 0x18c   : > { %6995 = vst [vmem:[#allocation81_spill] sm:$0xff] %v5417_v50 }
 0x18d   : > { %6996 = vst [vmem:[#allocation82_spill] sm:$0xff] %v5420_v2 }
 0x18f   : > { %v1218_v6 = vpop.f32.mrb[24].mxu0 }
 0x190   : > { %v5423_v26 = vadd.f32 %v1218_v6, %v5394_v47  ;;  %v1220_v12 = vpop.f32.mrb[25].mxu0 }
 0x191   : > { %v5426_v0 = vadd.f32 %v1220_v12, %v5402_v62  ;;  %v1222_v21 = vpop.f32.mrb[26].mxu0 }
 0x192   : > { %6997 = vst [vmem:[#allocation83_spill] sm:$0xff] %v5423_v26  ;;  %v5429_v57 = vadd.f32 %v1222_v21, %v5394_v47  ;;  %v1224_v18 = vpop.f32.mrb[27].mxu0 }
 0x193   : > { %6998 = vst [vmem:[#allocation84_spill] sm:$0xff] %v5426_v0  ;;  %v5432_v60 = vadd.f32 %v1224_v18, %v5402_v62  ;;  %v3679_v18 = vmul.f32 -1.442695, %v2007_v27  ;;  %v1126_v27 = vadd.f32 %v5300_v14, %v5296_v22  ;;  %v1199_v22 = vadd.f32 %v5397_v5, %v5394_v47 }
 0x194   : > { %6999 = vst [vmem:[#allocation85_spill] sm:$0xff] %v5429_v57  ;;  %v3678_v57 = vmul.f32 -1.442695, %v2006_v45  ;;  %v1128_v45 = vadd.f32 %v5307_v19, %v5303_v16 }
 0x195   : > { %7000 = vst [vmem:[#allocation86_spill] sm:$0xff] %v5432_v60 }
 0x196   : > { %4058 = vpow2.f32 %v3678_v57 }
 0x197   : > { %v1228_v50 = vpop.f32.mrb[28].mxu0  ;;  %4060 = vpow2.f32 %v3679_v18 }
 0x198   : > { %v5435_v23 = vadd.f32 %v1228_v50, %v5394_v47  ;;  %v1230_v2 = vpop.f32.mrb[29].mxu0 }
 0x199   : > { %v5438_v6 = vadd.f32 %v1230_v2, %v5402_v62  ;;  %v1232_v26 = vpop.f32.mrb[30].mxu0  ;;  %v1381_v2 = vld [vmem:[%s4626_s19] sm:$0x3] }
 0x19a   : > { %7001 = vst [vmem:[#allocation87_spill] sm:$0xff] %v5435_v23  ;;  %v5441_v12 = vadd.f32 %v1232_v26, %v5394_v47  ;;  %v1234_v0 = vpop.f32.mrb[31].mxu0  ;;  %v7006_v26 = vsub.s32 1, %v5281_v52 }
 0x19b   : > { %7002 = vst [vmem:[#allocation88_spill] sm:$0xff] %v5438_v6  ;;  %v5444_v21 = vadd.f32 %v1234_v0, %v5402_v62  ;;  %v7005_v6 = vsub.s32 0, %v5281_v52 }
 0x19c   : > { %7003 = vst [vmem:[#allocation89_spill] sm:$0xff] %v5441_v12  ;;  %v5453_v12 = vrot.slane %v1381_v2, %v7006_v26 }
 0x19d   : > { %7004 = vst [vmem:[#allocation90_spill] sm:$0xff] %v5444_v21  ;;  %v5449_v17 = vrot.slane %v1381_v2, %v7005_v6 }
 0x1a0   : > { %v4059_v60 = vpop.eup %4058 }
 0x1a1   : > { %v4061_v50 = vpop.eup %4060  ;;  %v2022_v23 = vadd.f32 1.0, %v4059_v60 }
 0x1a2   : > { %v2023_v13 = vadd.f32 1.0, %v4061_v50 }
 0x1a3   : > { %4062 = vrcp.f32 %v2022_v23 }
 0x1a4   : > { %4064 = vrcp.f32 %v2023_v13 }
 0x1ad   : > { %v4063_v50 = vpop.eup %4062 }
 0x1ae   : > { %v4065_v26 = vpop.eup %4064 }
 0x1bf   : > { %v1958_v0 = vpop.f32.mrb[32].mxu0 }
 0x1c0   : > { %v1999_v57 = vpop.f32.mrb[20].mxu1  ;;  %v2008_v60 = vadd.f32 %v1958_v0, %v1126_v27  ;;  %v1960_v23 = vpop.f32.mrb[33].mxu0  ;;  %v1201_v27 = vadd.f32 %v5399_v55, %v5402_v62  ;;  %v4218_v62 = vld [vmem:[%s4606_s20 + $0x8] sm:$0xff] }
 0x1c1   : > { %v2034_v13 = vadd.f32 %v1999_v57, %v5449_v17  ;;  %v2001_v18 = vpop.f32.mrb[21].mxu1  ;;  %v2009_v6 = vadd.f32 %v1960_v23, %v1128_v45  ;;  %v1962_v52 = vpop.f32.mrb[34].mxu0 }
 0x1c2   : > { %v2035_v21 = vadd.f32 %v2001_v18, %v5453_v12  ;;  %v2003_v2 = vpop.f32.mrb[22].mxu1  ;;  %v3680_v14 = vmul.f32 -1.442695, %v2008_v60  ;;  %v1963_v16 = vpop.f32.mrb[35].mxu0 }
 0x1c3   : > { %v2036_v10 = vmul.f32 %v4063_v50, %v2034_v13  ;;  %v2004_v19 = vpop.f32.mrb[23].mxu1  ;;  %v3681_v0 = vmul.f32 -1.442695, %v2009_v6  ;;  %v7007_v13 = vld [vmem:[#allocation19_spill] sm:$0xff] }
 0x1c4   : > { %v2037_v57 = vmul.f32 %v4065_v26, %v2035_v21  ;;  %4066 = vpow2.f32 %v3680_v14 }
 0x1c5   : > { %v2038_v45 = vadd.f32 %v2036_v10, %v1199_v22  ;;  %4068 = vpow2.f32 %v3681_v0  ;;  %v7009_v0 = vld [vmem:[#allocation22_spill] sm:$0xff] }
 0x1c6   : > { %v2039_v23 = vadd.f32 %v2037_v57, %v1201_v27  ;;  %v7008_v27 = vld [vmem:[#allocation21_spill] sm:$0xff] }
 0x1c7   : > { %4070 = vtanh.f32 %v2038_v45  ;;  %v5484_v57 = vld [vmem:[%s4616_s10] ss:$24 sps:$4 sm:$0xff]   ;;  %v5488_v45 = vld [vmem:[%s4616_s10 + $0x34] ss:$24 sps:$4 sm:$0xff]  }
 0x1c8   : > { %4072 = vtanh.f32 %v2039_v23  ;;  %v7010_v23 = vld [vmem:[#allocation23_spill] sm:$0xff] }
 0x1ce   : > { %v4067_v18 = vpop.eup %4066 }
 0x1cf   : > { %v4069_v52 = vpop.eup %4068  ;;  %v2024_v2 = vadd.f32 1.0, %v4067_v18  ;;  %v7011_v18 = vld [vmem:[#allocation24_spill] sm:$0xff] }
 0x1d0   : > { %v2025_v47 = vadd.f32 1.0, %v4069_v52  ;;  %v5494_v52 = vld [vmem:[%s4616_s10 + $0x30] ss:$24 sps:$4 sm:$0xff]  }
 0x1d1   : > { %4074 = vrcp.f32 %v2024_v2  ;;  %v4071_v5 = vpop.eup %4070  ;;  %v5498_v2 = vld [vmem:[%s4616_s10 + $0x64] ss:$24 sps:$4 sm:$0xff]  }
 0x1d2   : > { %4076 = vrcp.f32 %v2025_v47  ;;  %v4073_v60 = vpop.eup %4072  ;;  %v2042_v50 = vsub.f32 %v7007_v13, %v4071_v5  ;;  %v7012_v47 = vld [vmem:[#allocation25_spill] sm:$0xff]  ;;  %v5508_v13 = vld [vmem:[%s4616_s10 + $0x94] ss:$24 sps:$4 sm:$0xff]  }
 0x1d3   : > { %v2043_v21 = vsub.f32 %v4218_v62, %v4073_v60  ;;  %v5514_v62 = vld [vmem:[%s4616_s10 + $0x90] ss:$24 sps:$4 sm:$0xff]  }
 0x1db   : > { %v4075_v55 = vpop.eup %4074 }
 0x1dc   : > { %v4077_v6 = vpop.eup %4076  ;;  %v2044_v10 = vmul.f32 %v4075_v55, %v2042_v50  ;;  %v7014_v50 = vld [vmem:[#allocation27_spill] sm:$0xff]  ;;  %v7015_v55 = vld [vmem:[#allocation28_spill] sm:$0xff] }
 0x1dd   : > { %v2045_v26 = vmul.f32 %v4077_v6, %v2043_v21  ;;  %v5518_v21 = vld [vmem:[%s4616_s10 + $0xc4] ss:$24 sps:$4 sm:$0xff]  }
 0x1de   : > { %v5467_v22 = vadd.f32 %v4071_v5, %v2044_v10  ;;  %v7013_v5 = vld [vmem:[#allocation26_spill] sm:$0xff]  ;;  %v7016_v6 = vld [vmem:[#allocation29_spill] sm:$0xff] }
 0x1df   : > { %v5469_v14 = vadd.f32 %v4073_v60, %v2045_v26  ;;  %v5504_v60 = vld [vmem:[%s4616_s10 + $0x60] ss:$24 sps:$4 sm:$0xff]  }
 0x1e0   : > { %2048 = vst [vmem:[#allocation2] sm:$0xff] %v5467_v22  ;;  %v5477_v19 = vpack.c.bf16 %v5467_v22, %v5467_v22  ;;  %v7017_v10 = vld [vmem:[#allocation30_spill] sm:$0xff] }
 0x1e1   : > { %2049 = vst [vmem:[#allocation2 + $0x8] sm:$0xff] %v5469_v14  ;;  %v2058_v16 = vpack.c.bf16 %v5469_v14, %v5469_v14  ;;  %v5524_v26 = vld [vmem:[%s4616_s10 + $0xc0] ss:$24 sps:$4 sm:$0xff]  }
 0x1e3   : > { %2091 = vmatprep.mubr.bf16.mxu0 %v2058_v16  ;;  %2132 = vmatprep.mubr.bf16.mxu1 %v2058_v16 }
 0x1e4   : > { %2092 = vmatmul.mubr.bf16.vlgmr.msra.gmra.mrb[36].mxu0 %v5477_v19  ;;  %2133 = vmatmul.mubr.bf16.vlgmr.msra.gmra.mrb[24].mxu1 %v5477_v19 }
 0x1e5   : > { %2142 = vmatpush1.bf16.msra.mxu0 %v7008_v27  ;;  %2173 = vmatprep.mubr.bf16.mxu0 %v2058_v16  ;;  %v5528_v16 = vld [vmem:[%s4616_s10 + $0xf4] ss:$24 sps:$4 sm:$0xff]  }
 0x1e6   : > { %2143 = vmatprep.subr.bf16.mxu0 %v7009_v0  ;;  %2237 = vmatpush1.bf16.msra.mxu1 %v5484_v57  ;;  %v7018_v27 = vld [vmem:[#allocation31_spill] sm:$0xff]  ;;  %v7019_v0 = vld [vmem:[#allocation32_spill] sm:$0xff] }
 0x1e7   : > { %2238 = vmatprep.subr.bf16.mxu1 %v5488_v45 }
 0x1e9   : > { %2144 = vmatpush1.bf16.msra.mxu0 %v7010_v23  ;;  %v5534_v23 = vld [vmem:[%s4616_s10 + $0xf0] ss:$24 sps:$4 sm:$0xff]  }
 0x1ea   : > { %2145 = vmatprep.subr.bf16.mxu0 %v7011_v18  ;;  %2239 = vmatpush1.bf16.msra.mxu1 %v5494_v52  ;;  %v5538_v18 = vld [vmem:[%s4616_s10 + $0x124] ss:$24 sps:$4 sm:$0xff]  }
 0x1eb   : > { %2240 = vmatprep.subr.bf16.mxu1 %v5498_v2 }
 0x1ed   : > { %2146 = vmatpush1.bf16.msra.mxu0 %v7012_v47  ;;  %v7020_v47 = vld [vmem:[#allocation33_spill] sm:$0xff] }
 0x1ee   : > { %2147 = vmatprep.subr.bf16.mxu0 %v7013_v5  ;;  %2241 = vmatpush1.bf16.msra.mxu1 %v5504_v60  ;;  %v7021_v5 = vld [vmem:[#allocation34_spill] sm:$0xff] }
 0x1ef   : > { %2242 = vmatprep.subr.bf16.mxu1 %v5508_v13 }
 0x1f1   : > { %2148 = vmatpush1.bf16.msra.mxu0 %v7014_v50  ;;  %v5544_v50 = vld [vmem:[%s4616_s10 + $0x120] ss:$24 sps:$4 sm:$0xff]  }
 0x1f2   : > { %2149 = vmatprep.subr.bf16.mxu0 %v7015_v55  ;;  %2243 = vmatpush1.bf16.msra.mxu1 %v5514_v62  ;;  %7022 = vst [vmem:[#allocation19_spill] sm:$0xff] %v5544_v50  ;;  %v5548_v55 = vld [vmem:[%s4616_s10 + $0x154] ss:$24 sps:$4 sm:$0xff]  }
 0x1f3   : > { %2244 = vmatprep.subr.bf16.mxu1 %v5518_v21  ;;  %7023 = vst [vmem:[#allocation21_spill] sm:$0xff] %v5548_v55 }
 0x1f5   : > { %2150 = vmatpush1.bf16.msra.mxu0 %v7016_v6  ;;  %v7024_v6 = vld [vmem:[#allocation35_spill] sm:$0xff] }
 0x1f6   : > { %2151 = vmatprep.subr.bf16.mxu0 %v7017_v10  ;;  %2245 = vmatpush1.bf16.msra.mxu1 %v5524_v26  ;;  %v7025_v10 = vld [vmem:[#allocation36_spill] sm:$0xff] }
 0x1f7   : > { %2246 = vmatprep.subr.bf16.mxu1 %v5528_v16 }
 0x1f9   : > { %2152 = vmatpush1.bf16.msra.mxu0 %v7018_v27  ;;  %v5554_v27 = vld [vmem:[%s4616_s10 + $0x150] ss:$24 sps:$4 sm:$0xff]  }
 0x1fa   : > { %2153 = vmatprep.subr.bf16.mxu0 %v7019_v0  ;;  %2247 = vmatpush1.bf16.msra.mxu1 %v5534_v23  ;;  %7026 = vst [vmem:[#allocation22_spill] sm:$0xff] %v5554_v27  ;;  %v5558_v0 = vld [vmem:[%s4616_s10 + $0x184] ss:$24 sps:$4 sm:$0xff]  }
 0x1fb   : > { %2248 = vmatprep.subr.bf16.mxu1 %v5538_v18  ;;  %7027 = vst [vmem:[#allocation23_spill] sm:$0xff] %v5558_v0 }
 0x1fd   : > { %2154 = vmatpush1.bf16.msra.mxu0 %v7020_v47  ;;  %v7028_v47 = vld [vmem:[#allocation37_spill] sm:$0xff] }
 0x1fe   : > { %2155 = vmatprep.subr.bf16.mxu0 %v7021_v5  ;;  %2249 = vmatpush1.bf16.msra.mxu1 %v5544_v50  ;;  %v7029_v50 = vld [vmem:[#allocation38_spill] sm:$0xff]  ;;  %v5574_v5 = vld [vmem:[%s4616_s10 + $0x1b0] ss:$24 sps:$4 sm:$0xff]  }
 0x1ff   : > { %2250 = vmatprep.subr.bf16.mxu1 %v5548_v55  ;;  %v5564_v55 = vld [vmem:[%s4616_s10 + $0x180] ss:$24 sps:$4 sm:$0xff]  }
 0x200   : > { %7030 = vst [vmem:[#allocation24_spill] sm:$0xff] %v5564_v55 }
 0x201   : > { %2156 = vmatpush1.bf16.msra.mxu0 %v7024_v6  ;;  %v5568_v6 = vld [vmem:[%s4616_s10 + $0x1b4] ss:$24 sps:$4 sm:$0xff]  }
 0x202   : > { %2157 = vmatprep.subr.bf16.mxu0 %v7025_v10  ;;  %2251 = vmatpush1.bf16.msra.mxu1 %v5554_v27  ;;  %7031 = vst [vmem:[#allocation25_spill] sm:$0xff] %v5568_v6  ;;  %v7032_v10 = vld [vmem:[#allocation39_spill] sm:$0xff]  ;;  %v7033_v27 = vld [vmem:[#allocation40_spill] sm:$0xff] }
 0x203   : > { %2252 = vmatprep.subr.bf16.mxu1 %v5558_v0  ;;  %v7036_v0 = vld [vmem:[#allocation42_spill] sm:$0xff] }
 0x205   : > { %2158 = vmatpush1.bf16.msra.mxu0 %v7028_v47  ;;  %v5578_v47 = vld [vmem:[%s4616_s10 + $0x1e4] ss:$24 sps:$4 sm:$0xff]  }
 0x206   : > { %2159 = vmatprep.subr.bf16.mxu0 %v7029_v50  ;;  %2253 = vmatpush1.bf16.msra.mxu1 %v5564_v55  ;;  %7034 = vst [vmem:[#allocation26_spill] sm:$0xff] %v5578_v47  ;;  %v7035_v50 = vld [vmem:[#allocation41_spill] sm:$0xff] }
 0x207   : > { %2254 = vmatprep.subr.bf16.mxu1 %v5568_v6  ;;  %v5584_v55 = vld [vmem:[%s4616_s10 + $0x1e0] ss:$24 sps:$4 sm:$0xff]   ;;  %v5588_v6 = vld [vmem:[%s4616_s10 + $0x214] ss:$24 sps:$4 sm:$0xff]  }
 0x208   : > { %7037 = vst [vmem:[#allocation27_spill] sm:$0xff] %v5584_v55  ;;  %7038 = vst [vmem:[#allocation28_spill] sm:$0xff] %v5588_v6 }
 0x209   : > { %2160 = vmatpush1.bf16.msra.mxu0 %v7032_v10  ;;  %v7040_v10 = vld [vmem:[#allocation45_spill] sm:$0xff] }
 0x20a   : > { %2161 = vmatprep.subr.bf16.mxu0 %v7033_v27  ;;  %2255 = vmatpush1.bf16.msra.mxu1 %v5574_v5  ;;  %v7039_v27 = vld [vmem:[#allocation43_spill] sm:$0xff] }
 0x20b   : > { %2256 = vmatprep.subr.bf16.mxu1 %v5578_v47  ;;  %v7041_v47 = vld [vmem:[#allocation47_spill] sm:$0xff] }
 0x20d   : > { %2162 = vmatpush1.bf16.msra.mxu0 %v7035_v50  ;;  %v7042_v50 = vld [vmem:[#allocation49_spill] sm:$0xff] }
 0x20e   : > { %2163 = vmatprep.subr.bf16.mxu0 %v7036_v0  ;;  %2257 = vmatpush1.bf16.msra.mxu1 %v5584_v55 }
 0x20f   : > { %2258 = vmatprep.subr.bf16.mxu1 %v5588_v6 }
 0x211   : > { %2164 = vmatpush1.bf16.msra.mxu0 %v7039_v27 }
 0x212   : > { %2165 = vmatprep.subr.bf16.mxu0 %v7040_v10  ;;  %2259 = vmatpush1.bf16.msra.mxu1 %v4896_v30  ;;  %v7043_v30 = vld [vmem:[#allocation44_spill] sm:$0xff] }
 0x213   : > { %2260 = vmatprep.subr.bf16.mxu1 %v4901_v33  ;;  %v7044_v33 = vld [vmem:[#allocation46_spill] sm:$0xff] }
 0x215   : > { %2166 = vmatpush1.bf16.msra.mxu0 %v7041_v47 }
 0x216   : > { %2167 = vmatprep.subr.bf16.mxu0 %v7042_v50  ;;  %2261 = vmatpush1.bf16.msra.mxu1 %v4906_v37  ;;  %v7045_v37 = vld [vmem:[#allocation48_spill] sm:$0xff] }
 0x217   : > { %2262 = vmatprep.subr.bf16.mxu1 %v4911_v39  ;;  %v7046_v39 = vld [vmem:[#allocation50_spill] sm:$0xff] }
 0x219   : > { %2168 = vmatpush1.bf16.msra.mxu0 %v5175_v58 }
 0x21a   : > { %2169 = vmatprep.subr.bf16.mxu0 %v5183_v54  ;;  %2263 = vmatpush1.bf16.msra.mxu1 %v6956_v25 }
 0x21b   : > { %2264 = vmatprep.subr.bf16.mxu1 %v6958_v29 }
 0x21d   : > { %2170 = vmatpush1.bf16.msra.mxu0 %v5191_v59 }
 0x21e   : > { %2171 = vmatprep.subr.bf16.mxu0 %v5199_v44  ;;  %2265 = vmatpush1.bf16.msra.mxu1 %v6959_v31 }
 0x21f   : > { %2266 = vmatprep.subr.bf16.mxu1 %v6960_v35 }
 0x221   : > { %2172 = vmatpush1.bf16.msra.mxu0 %v5207_v8 }
 0x222   : > { %2277 = vmatprep.subr.bf16.mxu0 %v4943_v61  ;;  %2267 = vmatpush1.bf16.msra.mxu1 %v6961_v41  ;;  %v7047_v61 = vld [vmem:[#allocation51_spill] sm:$0xff] }
 0x223   : > { %2318 = vmatprep.subr.bf16.mxu1 %v6962_v43 }
 0x224   : > { %2174 = vmatmul.mubr.bf16.vlgmr.msra.gmra.mrb[40].mxu0 %v5477_v19 }
 0x225   : > { %2278 = vmatpush1.bf16.msra.mxu0 %v4953_v1  ;;  %v7048_v1 = vld [vmem:[#allocation52_spill] sm:$0xff] }
 0x226   : > { %2279 = vmatprep.subr.bf16.mxu0 %v4960_v7  ;;  %v7049_v7 = vld [vmem:[#allocation53_spill] sm:$0xff] }
 0x229   : > { %2280 = vmatpush1.bf16.msra.mxu0 %v4970_v11  ;;  %v7050_v11 = vld [vmem:[#allocation54_spill] sm:$0xff] }
 0x22a   : > { %2281 = vmatprep.subr.bf16.mxu0 %v4980_v15  ;;  %v5644_v15 = vld [vmem:[%s4616_s10 + $0x4] ss:$24 sps:$4 sm:$0xff]  }
 0x22b   : > { %7051 = vst [vmem:[#allocation29_spill] sm:$0xff] %v5644_v15 }
 0x22d   : > { %2282 = vmatpush1.bf16.msra.mxu0 %v4990_v3 }
 0x22e   : > { %2283 = vmatprep.subr.bf16.mxu0 %v4998_v20 }
 0x231   : > { %2284 = vmatpush1.bf16.msra.mxu0 %v5007_v24 }
 0x232   : > { %2285 = vmatprep.subr.bf16.mxu0 %v5015_v32 }
 0x235   : > { %2286 = vmatpush1.bf16.msra.mxu0 %v5024_v40 }
 0x236   : > { %2287 = vmatprep.subr.bf16.mxu0 %v5032_v42 }
 0x239   : > { %2288 = vmatpush1.bf16.msra.mxu0 %v5041_v48 }
 0x23a   : > { %2289 = vmatprep.subr.bf16.mxu0 %v5049_v51 }
 0x23d   : > { %2290 = vmatpush1.bf16.msra.mxu0 %v5058_v53 }
 0x23e   : > { %2291 = vmatprep.subr.bf16.mxu0 %v5066_v46  ;;  %v7055_v46 = vld [vmem:[#allocation17_spill] sm:$0xff] }
 0x241   : > { %2292 = vmatpush1.bf16.msra.mxu0 %v5075_v63 }
 0x242   : > { %2293 = vmatprep.subr.bf16.mxu0 %v5083_v56 }
 0x245   : > { %2294 = vmatpush1.bf16.msra.mxu0 %v5092_v4 }
 0x246   : > { %2295 = vmatprep.subr.bf16.mxu0 %v5100_v34 }
 0x249   : > { %2296 = vmatpush1.bf16.msra.mxu0 %v5108_v9 }
 0x24a   : > { %2297 = vmatprep.subr.bf16.mxu0 %v5116_v28  ;;  %v7053_v28 = vld [vmem:[#allocation15_spill] sm:$0xff] }
 0x24d   : > { %2298 = vmatpush1.bf16.msra.mxu0 %v5124_v38  ;;  %v7054_v38 = vld [vmem:[#allocation16_spill] sm:$0xff] }
 0x24e   : > { %2299 = vmatprep.subr.bf16.mxu0 %v5132_v36  ;;  %v7052_v36 = vld [vmem:[#allocation14_spill] sm:$0xff] }
 0x251   : > { %2300 = vmatpush1.bf16.msra.mxu0 %v5140_v49 }
 0x252   : > { %2301 = vmatprep.subr.bf16.mxu0 %v7043_v30 }
 0x255   : > { %2302 = vmatpush1.bf16.msra.mxu0 %v7044_v33 }
 0x256   : > { %2303 = vmatprep.subr.bf16.mxu0 %v7045_v37 }
 0x259   : > { %2304 = vmatpush1.bf16.msra.mxu0 %v7046_v39 }
 0x25a   : > { %2305 = vmatprep.subr.bf16.mxu0 %v7047_v61 }
 0x25d   : > { %2306 = vmatpush1.bf16.msra.mxu0 %v7048_v1 }
 0x25e   : > { %2307 = vmatprep.subr.bf16.mxu0 %v7049_v7 }
 0x261   : > { %2308 = vmatpush1.bf16.msra.mxu0 %v7050_v11 }
 0x262   : > { %2413 = vmatprep.subr.bf16.mxu0 %v5644_v15 }
 0x2b7   : > { %v2093_v3 = vpop.f32.mrb[36].mxu0  ;;  %v2134_v20 = vpop.f32.mrb[24].mxu1 }
 0x2b8   : > { %v2182_v24 = vadd.f32 %v2093_v3, %v7052_v36  ;;  %v2184_v32 = vadd.f32 %v2134_v20, %v7053_v28  ;;  %v2095_v34 = vpop.f32.mrb[37].mxu0  ;;  %v2136_v40 = vpop.f32.mrb[25].mxu1  ;;  %v7056_v28 = vld [vmem:[#allocation77_spill] sm:$0xff] }
 0x2b9   : > { %v2183_v42 = vadd.f32 %v2095_v34, %v7054_v38  ;;  %v2185_v48 = vadd.f32 %v2136_v40, %v7055_v46  ;;  %v2097_v49 = vpop.f32.mrb[38].mxu0  ;;  %v2138_v51 = vpop.f32.mrb[26].mxu1  ;;  %v7057_v40 = vld [vmem:[#allocation78_spill] sm:$0xff] }
 0x2ba   : > { %v2098_v56 = vpop.f32.mrb[39].mxu0  ;;  %v2139_v53 = vpop.f32.mrb[27].mxu1  ;;  %v3682_v63 = vmul.f32 -1.442695, %v2182_v24  ;;  %v3684_v29 = vmul.f32 -1.442695, %v2184_v32 }
 0x2bb   : > { %v3683_v4 = vmul.f32 -1.442695, %v2183_v42  ;;  %v3685_v31 = vmul.f32 -1.442695, %v2185_v48 }
 0x2bc   : > { %4078 = vpow2.f32 %v3682_v63 }
 0x2bd   : > { %4080 = vpow2.f32 %v3683_v4 }
 0x2be   : > { %4082 = vpow2.f32 %v3684_v29  ;;  %v5676_v29 = vld [vmem:[%s4616_s10 + $0x44] ss:$24 sps:$4 sm:$0xff]  }
 0x2bf   : > { %4084 = vpow2.f32 %v3685_v31  ;;  %v5682_v31 = vld [vmem:[%s4616_s10 + $0x40] ss:$24 sps:$4 sm:$0xff]  }
 0x2c6   : > { %v4079_v9 = vpop.eup %4078 }
 0x2c7   : > { %v4081_v25 = vpop.eup %4080  ;;  %v2198_v35 = vadd.f32 1.0, %v4079_v9 }
 0x2c8   : > { %v2199_v41 = vadd.f32 1.0, %v4081_v25  ;;  %v4083_v43 = vpop.eup %4082  ;;  %v5672_v25 = vld [vmem:[%s4616_s10 + $0x10] ss:$24 sps:$4 sm:$0xff]  }
 0x2c9   : > { %4086 = vrcp.f32 %v2198_v35  ;;  %v4085_v30 = vpop.eup %4084  ;;  %v2200_v24 = vadd.f32 1.0, %v4083_v43  ;;  %v5686_v35 = vld [vmem:[%s4616_s10 + $0x74] ss:$24 sps:$4 sm:$0xff]   ;;  %v5696_v43 = vld [vmem:[%s4616_s10 + $0xa4] ss:$24 sps:$4 sm:$0xff]  }
 0x2ca   : > { %4088 = vrcp.f32 %v2199_v41  ;;  %v2201_v34 = vadd.f32 1.0, %v4085_v30  ;;  %v5692_v41 = vld [vmem:[%s4616_s10 + $0x70] ss:$24 sps:$4 sm:$0xff]   ;;  %v5706_v30 = vld [vmem:[%s4616_s10 + $0xd4] ss:$24 sps:$4 sm:$0xff]  }
 0x2d3   : > { %v4087_v39 = vpop.eup %4086 }
 0x2d4   : > { %v4089_v7 = vpop.eup %4088 }
 0x2f7   : > { %v2175_v19 = vpop.f32.mrb[40].mxu0 }
 0x2f8   : > { %v2210_v33 = vadd.f32 %v2175_v19, %v5449_v17  ;;  %v2177_v37 = vpop.f32.mrb[41].mxu0  ;;  %v5702_v19 = vld [vmem:[%s4616_s10 + $0xa0] ss:$24 sps:$4 sm:$0xff]  }
 0x2f9   : > { %v2211_v61 = vadd.f32 %v2177_v37, %v5453_v12  ;;  %v2179_v1 = vpop.f32.mrb[42].mxu0  ;;  %v5716_v37 = vld [vmem:[%s4616_s10 + $0x104] ss:$24 sps:$4 sm:$0xff]  }
 0x2fa   : > { %v2212_v3 = vmul.f32 %v4087_v39, %v2210_v33  ;;  %v2180_v20 = vpop.f32.mrb[43].mxu0  ;;  %v5712_v33 = vld [vmem:[%s4616_s10 + $0xd0] ss:$24 sps:$4 sm:$0xff]   ;;  %v5722_v39 = vld [vmem:[%s4616_s10 + $0x100] ss:$24 sps:$4 sm:$0xff]  }
 0x2fb   : > { %v2213_v36 = vmul.f32 %v4089_v7, %v2211_v61  ;;  %v5726_v61 = vld [vmem:[%s4616_s10 + $0x134] ss:$24 sps:$4 sm:$0xff]   ;;  %v5732_v1 = vld [vmem:[%s4616_s10 + $0x130] ss:$24 sps:$4 sm:$0xff]   ;;  %v7058_v7 = vld [vmem:[#allocation34_spill] sm:$0xff] }
 0x2fc   : > { %v2214_v32 = vadd.f32 %v2212_v3, %v7056_v28  ;;  %v7059_v3 = vld [vmem:[#allocation19_spill] sm:$0xff]  ;;  %v7060_v20 = vld [vmem:[#allocation21_spill] sm:$0xff]  ;;  %v7063_v28 = vld [vmem:[#allocation22_spill] sm:$0xff] }
 0x2fd   : > { %v2215_v38 = vadd.f32 %v2213_v36, %v7057_v40  ;;  %v7061_v36 = vld [vmem:[#allocation35_spill] sm:$0xff]  ;;  %v7066_v40 = vld [vmem:[#allocation38_spill] sm:$0xff] }
 0x2fe   : > { %4090 = vtanh.f32 %v2214_v32  ;;  %v7064_v32 = vld [vmem:[#allocation23_spill] sm:$0xff] }
 0x2ff   : > { %4092 = vtanh.f32 %v2215_v38  ;;  %v7067_v38 = vld [vmem:[#allocation24_spill] sm:$0xff] }
 0x300   : > { %4094 = vrcp.f32 %v2200_v24  ;;  %v7062_v24 = vld [vmem:[#allocation36_spill] sm:$0xff] }
 0x301   : > { %4096 = vrcp.f32 %v2201_v34  ;;  %v7065_v34 = vld [vmem:[#allocation37_spill] sm:$0xff] }
 0x308   : > { %v4091_v42 = vpop.eup %4090 }
 0x309   : > { %v4093_v46 = vpop.eup %4092  ;;  %v2218_v48 = vsub.f32 %v5467_v22, %v4091_v42 }
 0x30a   : > { %v4095_v49 = vpop.eup %4094  ;;  %v2219_v51 = vsub.f32 %v5469_v14, %v4093_v46 }
 0x30b   : > { %v4097_v56 = vpop.eup %4096  ;;  %v2220_v53 = vmul.f32 %v4095_v49, %v2218_v48  ;;  %v7070_v48 = vld [vmem:[#allocation40_spill] sm:$0xff]  ;;  %v7071_v49 = vld [vmem:[#allocation26_spill] sm:$0xff] }
 0x30c   : > { %v2221_v63 = vmul.f32 %v4097_v56, %v2219_v51  ;;  %v7072_v51 = vld [vmem:[#allocation41_spill] sm:$0xff]  ;;  %v5757_v56 = vld [vmem:[%s4616_s10 + $0x210] ss:$24 sps:$4 sm:$0xff]  }
 0x30d   : > { %v5657_v4 = vadd.f32 %v4091_v42, %v2220_v53  ;;  %v7068_v42 = vld [vmem:[#allocation25_spill] sm:$0xff]  ;;  %7073 = vst [vmem:[#allocation30_spill] sm:$0xff] %v5757_v56 }
 0x30e   : > { %v5659_v9 = vadd.f32 %v4093_v46, %v2221_v63  ;;  %v7069_v46 = vld [vmem:[#allocation39_spill] sm:$0xff]  ;;  %v5761_v53 = vld [vmem:[%s4616_s10 + $0x244] ss:$24 sps:$4 sm:$0xff]  }
 0x30f   : > { %2225 = vst [vmem:[#allocation2 + $0x10] sm:$0xff] %v5657_v4  ;;  %v5667_v14 = vpack.c.bf16 %v5657_v4, %v5657_v4  ;;  %7074 = vst [vmem:[#allocation31_spill] sm:$0xff] %v5761_v53  ;;  %v5809_v63 = vld [vmem:[%s4616_s10 + $0x8] ss:$24 sps:$4 sm:$0xff]  }
 0x310   : > { %2226 = vst [vmem:[#allocation2 + $0x18] sm:$0xff] %v5659_v9  ;;  %v2235_v22 = vpack.c.bf16 %v5659_v9, %v5659_v9  ;;  %7084 = vst [vmem:[#allocation48_spill] sm:$0xff] %v5809_v63 }
 0x312   : > { %2268 = vmatprep.mubr.bf16.mxu1 %v2235_v22  ;;  %2309 = vmatprep.mubr.bf16.mxu0 %v2235_v22 }
 0x313   : > { %2269 = vmatmul.mubr.bf16.vlgmr.msra.gmra.mrb[28].mxu1 %v5667_v14  ;;  %2310 = vmatmul.mubr.bf16.vlgmr.msra.gmra.mrb[44].mxu0 %v5667_v14 }
 0x314   : > { %2319 = vmatpush1.bf16.msra.mxu1 %v5672_v25  ;;  %2350 = vmatprep.mubr.bf16.mxu1 %v2235_v22  ;;  %v5817_v22 = vld [vmem:[%s4616_s10 + $0x38] ss:$24 sps:$4 sm:$0xff]  }
 0x315   : > { %2320 = vmatprep.subr.bf16.mxu1 %v5676_v29  ;;  %2414 = vmatpush1.bf16.msra.mxu0 %v5484_v57  ;;  %7086 = vst [vmem:[#allocation51_spill] sm:$0xff] %v5817_v22 }
 0x316   : > { %2415 = vmatprep.subr.bf16.mxu0 %v5488_v45 }
 0x318   : > { %2321 = vmatpush1.bf16.msra.mxu1 %v5682_v31 }
 0x319   : > { %2322 = vmatprep.subr.bf16.mxu1 %v5686_v35  ;;  %2416 = vmatpush1.bf16.msra.mxu0 %v5494_v52 }
 0x31a   : > { %2417 = vmatprep.subr.bf16.mxu0 %v5498_v2 }
 0x31c   : > { %2323 = vmatpush1.bf16.msra.mxu1 %v5692_v41 }
 0x31d   : > { %2324 = vmatprep.subr.bf16.mxu1 %v5696_v43  ;;  %2418 = vmatpush1.bf16.msra.mxu0 %v5504_v60 }
 0x31e   : > { %2419 = vmatprep.subr.bf16.mxu0 %v5508_v13 }
 0x320   : > { %2325 = vmatpush1.bf16.msra.mxu1 %v5702_v19 }
 0x321   : > { %2326 = vmatprep.subr.bf16.mxu1 %v5706_v30  ;;  %2420 = vmatpush1.bf16.msra.mxu0 %v5514_v62 }
 0x322   : > { %2421 = vmatprep.subr.bf16.mxu0 %v5518_v21 }
 0x324   : > { %2327 = vmatpush1.bf16.msra.mxu1 %v5712_v33 }
 0x325   : > { %2328 = vmatprep.subr.bf16.mxu1 %v5716_v37  ;;  %2422 = vmatpush1.bf16.msra.mxu0 %v5524_v26 }
 0x326   : > { %2423 = vmatprep.subr.bf16.mxu0 %v5528_v16 }
 0x328   : > { %2329 = vmatpush1.bf16.msra.mxu1 %v5722_v39 }
 0x329   : > { %2330 = vmatprep.subr.bf16.mxu1 %v5726_v61  ;;  %2424 = vmatpush1.bf16.msra.mxu0 %v5534_v23 }
 0x32a   : > { %2425 = vmatprep.subr.bf16.mxu0 %v5538_v18 }
 0x32c   : > { %2331 = vmatpush1.bf16.msra.mxu1 %v5732_v1 }
 0x32d   : > { %2332 = vmatprep.subr.bf16.mxu1 %v7058_v7  ;;  %2426 = vmatpush1.bf16.msra.mxu0 %v7059_v3  ;;  %v5821_v7 = vld [vmem:[%s4616_s10 + $0x6c] ss:$24 sps:$4 sm:$0xff]  }
 0x32e   : > { %2427 = vmatprep.subr.bf16.mxu0 %v7060_v20  ;;  %7087 = vst [vmem:[#allocation52_spill] sm:$0xff] %v5821_v7 }
 0x330   : > { %2333 = vmatpush1.bf16.msra.mxu1 %v7061_v36  ;;  %v5829_v36 = vld [vmem:[%s4616_s10 + $0x9c] ss:$24 sps:$4 sm:$0xff]  }
 0x331   : > { %2334 = vmatprep.subr.bf16.mxu1 %v7062_v24  ;;  %2428 = vmatpush1.bf16.msra.mxu0 %v7063_v28  ;;  %7089 = vst [vmem:[#allocation54_spill] sm:$0xff] %v5829_v36  ;;  %v5833_v24 = vld [vmem:[%s4616_s10 + $0x98] ss:$24 sps:$4 sm:$0xff]  }
 0x332   : > { %2429 = vmatprep.subr.bf16.mxu0 %v7064_v32  ;;  %7090 = vst [vmem:[#allocation14_spill] sm:$0xff] %v5833_v24 }
 0x334   : > { %2335 = vmatpush1.bf16.msra.mxu1 %v7065_v34  ;;  %v5837_v34 = vld [vmem:[%s4616_s10 + $0xcc] ss:$24 sps:$4 sm:$0xff]  }
 0x335   : > { %2336 = vmatprep.subr.bf16.mxu1 %v7066_v40  ;;  %2430 = vmatpush1.bf16.msra.mxu0 %v7067_v38  ;;  %7091 = vst [vmem:[#allocation15_spill] sm:$0xff] %v5837_v34  ;;  %v5841_v40 = vld [vmem:[%s4616_s10 + $0xc8] ss:$24 sps:$4 sm:$0xff]  }
 0x336   : > { %2431 = vmatprep.subr.bf16.mxu0 %v7068_v42  ;;  %7092 = vst [vmem:[#allocation16_spill] sm:$0xff] %v5841_v40 }
 0x338   : > { %2337 = vmatpush1.bf16.msra.mxu1 %v7069_v46  ;;  %v5845_v46 = vld [vmem:[%s4616_s10 + $0xfc] ss:$24 sps:$4 sm:$0xff]  }
 0x339   : > { %2338 = vmatprep.subr.bf16.mxu1 %v7070_v48  ;;  %2432 = vmatpush1.bf16.msra.mxu0 %v5574_v5  ;;  %7093 = vst [vmem:[#allocation17_spill] sm:$0xff] %v5845_v46  ;;  %v5849_v48 = vld [vmem:[%s4616_s10 + $0xf8] ss:$24 sps:$4 sm:$0xff]  }
 0x33a   : > { %2433 = vmatprep.subr.bf16.mxu0 %v7071_v49  ;;  %7094 = vst [vmem:[#allocation77_spill] sm:$0xff] %v5849_v48 }
 0x33c   : > { %2339 = vmatpush1.bf16.msra.mxu1 %v7072_v51  ;;  %v5853_v51 = vld [vmem:[%s4616_s10 + $0x12c] ss:$24 sps:$4 sm:$0xff]  }
 0x33d   : > { %2340 = vmatprep.subr.bf16.mxu1 %v7036_v0  ;;  %2434 = vmatpush1.bf16.msra.mxu0 %v5584_v55  ;;  %v5767_v0 = vld [vmem:[%s4616_s10 + $0x240] ss:$24 sps:$4 sm:$0xff]   ;;  %7095 = vst [vmem:[#allocation78_spill] sm:$0xff] %v5853_v51 }
 0x33e   : > { %2435 = vmatprep.subr.bf16.mxu0 %v5588_v6  ;;  %7075 = vst [vmem:[#allocation32_spill] sm:$0xff] %v5767_v0 }
 0x340   : > { %2341 = vmatpush1.bf16.msra.mxu1 %v7039_v27  ;;  %v5777_v27 = vld [vmem:[%s4616_s10 + $0x270] ss:$24 sps:$4 sm:$0xff]  }
 0x341   : > { %2342 = vmatprep.subr.bf16.mxu1 %v7040_v10  ;;  %2436 = vmatpush1.bf16.msra.mxu0 %v5757_v56  ;;  %v5771_v10 = vld [vmem:[%s4616_s10 + $0x274] ss:$24 sps:$4 sm:$0xff]   ;;  %7077 = vst [vmem:[#allocation42_spill] sm:$0xff] %v5777_v27 }
 0x342   : > { %2437 = vmatprep.subr.bf16.mxu0 %v5761_v53  ;;  %7076 = vst [vmem:[#allocation33_spill] sm:$0xff] %v5771_v10 }
 0x344   : > { %2343 = vmatpush1.bf16.msra.mxu1 %v7041_v47  ;;  %v5787_v47 = vld [vmem:[%s4616_s10 + $0x2a0] ss:$24 sps:$4 sm:$0xff]  }
 0x345   : > { %2344 = vmatprep.subr.bf16.mxu1 %v7042_v50  ;;  %2438 = vmatpush1.bf16.msra.mxu0 %v5767_v0  ;;  %v5781_v50 = vld [vmem:[%s4616_s10 + $0x2a4] ss:$24 sps:$4 sm:$0xff]   ;;  %7079 = vst [vmem:[#allocation45_spill] sm:$0xff] %v5787_v47 }
 0x346   : > { %2439 = vmatprep.subr.bf16.mxu0 %v5771_v10  ;;  %7078 = vst [vmem:[#allocation43_spill] sm:$0xff] %v5781_v50 }
 0x348   : > { %2345 = vmatpush1.bf16.msra.mxu1 %v5175_v58  ;;  %v5796_v58 = vld [vmem:[%s4616_s10 + $0xc] ss:$24 sps:$4 sm:$0xff]  }
 0x349   : > { %2346 = vmatprep.subr.bf16.mxu1 %v5183_v54  ;;  %2440 = vmatpush1.bf16.msra.mxu0 %v5777_v27  ;;  %v5791_v54 = vld [vmem:[%s4616_s10 + $0x2d4] ss:$24 sps:$4 sm:$0xff]   ;;  %7081 = vst [vmem:[#allocation49_spill] sm:$0xff] %v5796_v58 }
 0x34a   : > { %2441 = vmatprep.subr.bf16.mxu0 %v5781_v50  ;;  %7080 = vst [vmem:[#allocation47_spill] sm:$0xff] %v5791_v54 }
 0x34c   : > { %2347 = vmatpush1.bf16.msra.mxu1 %v5191_v59  ;;  %v5800_v59 = vld [vmem:[%s4616_s10 + $0x2d0] ss:$24 sps:$4 sm:$0xff]  }
 0x34d   : > { %2348 = vmatprep.subr.bf16.mxu1 %v5199_v44  ;;  %2442 = vmatpush1.bf16.msra.mxu0 %v5787_v47  ;;  %7082 = vst [vmem:[#allocation44_spill] sm:$0xff] %v5800_v59  ;;  %v5804_v44 = vld [vmem:[%s4616_s10 + $0x14] ss:$24 sps:$4 sm:$0xff]  }
 0x34e   : > { %2443 = vmatprep.subr.bf16.mxu0 %v5791_v54  ;;  %7083 = vst [vmem:[#allocation46_spill] sm:$0xff] %v5804_v44 }
 0x350   : > { %2349 = vmatpush1.bf16.msra.mxu1 %v5207_v8  ;;  %v5813_v8 = vld [vmem:[%s4616_s10 + $0x3c] ss:$24 sps:$4 sm:$0xff]  }
 0x351   : > { %2454 = vmatprep.subr.bf16.mxu1 %v5796_v58  ;;  %2444 = vmatpush1.bf16.msra.mxu0 %v5800_v59  ;;  %7085 = vst [vmem:[#allocation50_spill] sm:$0xff] %v5813_v8 }
 0x352   : > { %2495 = vmatprep.subr.bf16.mxu0 %v5804_v44  ;;  %v7117_v44 = vld [vmem:[#allocation56_spill] sm:$0xff] }
 0x353   : > { %2351 = vmatmul.mubr.bf16.vlgmr.msra.gmra.mrb[32].mxu1 %v5667_v14  ;;  %v5825_v14 = vld [vmem:[%s4616_s10 + $0x68] ss:$24 sps:$4 sm:$0xff]  }
 0x354   : > { %2455 = vmatpush1.bf16.msra.mxu1 %v5809_v63  ;;  %7088 = vst [vmem:[#allocation53_spill] sm:$0xff] %v5825_v14 }
 0x355   : > { %2456 = vmatprep.subr.bf16.mxu1 %v5813_v8  ;;  %v7116_v8 = vld [vmem:[#allocation55_spill] sm:$0xff] }
 0x358   : > { %2457 = vmatpush1.bf16.msra.mxu1 %v5817_v22 }
 0x359   : > { %2458 = vmatprep.subr.bf16.mxu1 %v5821_v7 }
 0x35c   : > { %2459 = vmatpush1.bf16.msra.mxu1 %v5825_v14  ;;  %v7115_v14 = vld [vmem:[#allocation20_spill] sm:$0xff] }
 0x35d   : > { %2460 = vmatprep.subr.bf16.mxu1 %v5829_v36  ;;  %v7114_v36 = vld [vmem:[#allocation18_spill] sm:$0xff] }
 0x360   : > { %2461 = vmatpush1.bf16.msra.mxu1 %v5833_v24  ;;  %v5905_v24 = vld [vmem:[%s4616_s10 + $0x248] ss:$24 sps:$4 sm:$0xff]  }
 0x361   : > { %2462 = vmatprep.subr.bf16.mxu1 %v5837_v34  ;;  %v5857_v34 = vld [vmem:[%s4616_s10 + $0x128] ss:$24 sps:$4 sm:$0xff]   ;;  %7108 = vst [vmem:[#allocation40_spill] sm:$0xff] %v5905_v24 }
 0x362   : > { %7096 = vst [vmem:[#allocation34_spill] sm:$0xff] %v5857_v34 }
 0x364   : > { %2463 = vmatpush1.bf16.msra.mxu1 %v5841_v40  ;;  %v5861_v40 = vld [vmem:[%s4616_s10 + $0x15c] ss:$24 sps:$4 sm:$0xff]  }
 0x365   : > { %2464 = vmatprep.subr.bf16.mxu1 %v5845_v46  ;;  %7097 = vst [vmem:[#allocation19_spill] sm:$0xff] %v5861_v40  ;;  %v5865_v46 = vld [vmem:[%s4616_s10 + $0x158] ss:$24 sps:$4 sm:$0xff]  }
 0x366   : > { %7098 = vst [vmem:[#allocation21_spill] sm:$0xff] %v5865_v46 }
 0x368   : > { %2465 = vmatpush1.bf16.msra.mxu1 %v5849_v48  ;;  %v5869_v48 = vld [vmem:[%s4616_s10 + $0x18c] ss:$24 sps:$4 sm:$0xff]  }
 0x369   : > { %2466 = vmatprep.subr.bf16.mxu1 %v5853_v51  ;;  %7099 = vst [vmem:[#allocation35_spill] sm:$0xff] %v5869_v48  ;;  %v5873_v51 = vld [vmem:[%s4616_s10 + $0x188] ss:$24 sps:$4 sm:$0xff]  }
 0x36a   : > { %7100 = vst [vmem:[#allocation36_spill] sm:$0xff] %v5873_v51 }
 0x36c   : > { %2467 = vmatpush1.bf16.msra.mxu1 %v5857_v34  ;;  %v5877_v34 = vld [vmem:[%s4616_s10 + $0x1bc] ss:$24 sps:$4 sm:$0xff]  }
 0x36d   : > { %2468 = vmatprep.subr.bf16.mxu1 %v5861_v40  ;;  %7101 = vst [vmem:[#allocation22_spill] sm:$0xff] %v5877_v34  ;;  %v5881_v40 = vld [vmem:[%s4616_s10 + $0x1b8] ss:$24 sps:$4 sm:$0xff]  }
 0x36e   : > { %7102 = vst [vmem:[#allocation23_spill] sm:$0xff] %v5881_v40 }
 0x370   : > { %2469 = vmatpush1.bf16.msra.mxu1 %v5865_v46  ;;  %v5885_v46 = vld [vmem:[%s4616_s10 + $0x1ec] ss:$24 sps:$4 sm:$0xff]  }
 0x371   : > { %2470 = vmatprep.subr.bf16.mxu1 %v5869_v48  ;;  %7103 = vst [vmem:[#allocation37_spill] sm:$0xff] %v5885_v46  ;;  %v5889_v48 = vld [vmem:[%s4616_s10 + $0x1e8] ss:$24 sps:$4 sm:$0xff]  }
 0x372   : > { %7104 = vst [vmem:[#allocation38_spill] sm:$0xff] %v5889_v48 }
 0x374   : > { %2471 = vmatpush1.bf16.msra.mxu1 %v5873_v51  ;;  %v5893_v51 = vld [vmem:[%s4616_s10 + $0x21c] ss:$24 sps:$4 sm:$0xff]  }
 0x375   : > { %2472 = vmatprep.subr.bf16.mxu1 %v5877_v34  ;;  %7105 = vst [vmem:[#allocation24_spill] sm:$0xff] %v5893_v51  ;;  %v5897_v34 = vld [vmem:[%s4616_s10 + $0x218] ss:$24 sps:$4 sm:$0xff]  }
 0x376   : > { %7106 = vst [vmem:[#allocation25_spill] sm:$0xff] %v5897_v34 }
 0x378   : > { %2473 = vmatpush1.bf16.msra.mxu1 %v5881_v40  ;;  %v5901_v40 = vld [vmem:[%s4616_s10 + $0x24c] ss:$24 sps:$4 sm:$0xff]  }
 0x379   : > { %2474 = vmatprep.subr.bf16.mxu1 %v5885_v46  ;;  %7107 = vst [vmem:[#allocation39_spill] sm:$0xff] %v5901_v40  ;;  %v5909_v46 = vld [vmem:[%s4616_s10 + $0x27c] ss:$24 sps:$4 sm:$0xff]  }
 0x37a   : > { %7109 = vst [vmem:[#allocation41_spill] sm:$0xff] %v5909_v46 }
 0x37c   : > { %2475 = vmatpush1.bf16.msra.mxu1 %v5889_v48  ;;  %v5913_v48 = vld [vmem:[%s4616_s10 + $0x278] ss:$24 sps:$4 sm:$0xff]  }
 0x37d   : > { %2476 = vmatprep.subr.bf16.mxu1 %v5893_v51  ;;  %7110 = vst [vmem:[#allocation91_spill] sm:$0xff] %v5913_v48  ;;  %v5917_v51 = vld [vmem:[%s4616_s10 + $0x2ac] ss:$24 sps:$4 sm:$0xff]  }
 0x37e   : > { %7111 = vst [vmem:[#allocation92_spill] sm:$0xff] %v5917_v51 }
 0x380   : > { %2477 = vmatpush1.bf16.msra.mxu1 %v5897_v34  ;;  %v5921_v34 = vld [vmem:[%s4616_s10 + $0x2a8] ss:$24 sps:$4 sm:$0xff]  }
 0x381   : > { %2478 = vmatprep.subr.bf16.mxu1 %v5901_v40  ;;  %7112 = vst [vmem:[#allocation93_spill] sm:$0xff] %v5921_v34  ;;  %v5925_v40 = vld [vmem:[%s4616_s10 + $0x2dc] ss:$24 sps:$4 sm:$0xff]  }
 0x382   : > { %7113 = vst [vmem:[#allocation94_spill] sm:$0xff] %v5925_v40 }
 0x384   : > { %2479 = vmatpush1.bf16.msra.mxu1 %v5905_v24 }
 0x385   : > { %2480 = vmatprep.subr.bf16.mxu1 %v5909_v46 }
 0x388   : > { %2481 = vmatpush1.bf16.msra.mxu1 %v5913_v48 }
 0x389   : > { %2482 = vmatprep.subr.bf16.mxu1 %v5917_v51 }
 0x38c   : > { %2483 = vmatpush1.bf16.msra.mxu1 %v5921_v34 }
 0x38d   : > { %2484 = vmatprep.subr.bf16.mxu1 %v5925_v40 }
 0x390   : > { %2485 = vmatpush1.bf16.msra.mxu1 %v7050_v11 }
 0x391   : > { %2590 = vmatprep.subr.bf16.mxu1 %v5644_v15 }
 0x3e6   : > { %v2270_v46 = vpop.f32.mrb[28].mxu1  ;;  %v2311_v24 = vpop.f32.mrb[44].mxu0 }
 0x3e7   : > { %v2359_v48 = vadd.f32 %v2270_v46, %v7114_v36  ;;  %v2361_v7 = vadd.f32 %v2311_v24, %v7115_v14  ;;  %v2272_v22 = vpop.f32.mrb[29].mxu1  ;;  %v2313_v51 = vpop.f32.mrb[45].mxu0 }
 0x3e8   : > { %v2360_v63 = vadd.f32 %v2272_v22, %v7116_v8  ;;  %v2362_v34 = vadd.f32 %v2313_v51, %v7117_v44  ;;  %v2274_v59 = vpop.f32.mrb[30].mxu1  ;;  %v2315_v58 = vpop.f32.mrb[46].mxu0  ;;  %v7119_v51 = vld [vmem:[#allocation80_spill] sm:$0xff] }
 0x3e9   : > { %v2275_v54 = vpop.f32.mrb[31].mxu1  ;;  %v2316_v40 = vpop.f32.mrb[47].mxu0  ;;  %v3686_v47 = vmul.f32 -1.442695, %v2359_v48  ;;  %v3688_v27 = vmul.f32 -1.442695, %v2361_v7 }
 0x3ea   : > { %v3687_v11 = vmul.f32 -1.442695, %v2360_v63  ;;  %v3689_v36 = vmul.f32 -1.442695, %v2362_v34 }
 0x3eb   : > { %4098 = vpow2.f32 %v3686_v47 }
 0x3ec   : > { %4100 = vpow2.f32 %v3687_v11 }
 0x3ed   : > { %4102 = vpow2.f32 %v3688_v27 }
 0x3ee   : > { %4104 = vpow2.f32 %v3689_v36 }
 0x3f5   : > { %v4099_v15 = vpop.eup %4098 }
 0x3f6   : > { %v4101_v50 = vpop.eup %4100  ;;  %v2375_v46 = vadd.f32 1.0, %v4099_v15 }
 0x3f7   : > { %v2376_v14 = vadd.f32 1.0, %v4101_v50  ;;  %v4103_v8 = vpop.eup %4102  ;;  %v7118_v50 = vld [vmem:[#allocation79_spill] sm:$0xff] }
 0x3f8   : > { %4106 = vrcp.f32 %v2375_v46  ;;  %v4105_v59 = vpop.eup %4104  ;;  %v2377_v15 = vadd.f32 1.0, %v4103_v8 }
 0x3f9   : > { %4108 = vrcp.f32 %v2376_v14  ;;  %v2378_v48 = vadd.f32 1.0, %v4105_v59 }
 0x402   : > { %v4107_v22 = vpop.eup %4106 }
 0x403   : > { %v4109_v24 = vpop.eup %4108 }
 0x426   : > { %v2352_v44 = vpop.f32.mrb[32].mxu1 }
 0x427   : > { %v2387_v54 = vadd.f32 %v2352_v44, %v5449_v17  ;;  %v2354_v58 = vpop.f32.mrb[33].mxu1 }
 0x428   : > { %v2388_v47 = vadd.f32 %v2354_v58, %v5453_v12  ;;  %v2356_v63 = vpop.f32.mrb[34].mxu1 }
 0x429   : > { %v2389_v40 = vmul.f32 %v4107_v22, %v2387_v54  ;;  %v2357_v7 = vpop.f32.mrb[35].mxu1 }
 0x42a   : > { %v2390_v34 = vmul.f32 %v4109_v24, %v2388_v47  ;;  %v5986_v24 = vld [vmem:[%s4616_s10 + $0x160] ss:$24 sps:$4 sm:$0xff]   ;;  %v5996_v7 = vld [vmem:[%s4616_s10 + $0x190] ss:$24 sps:$4 sm:$0xff]  }
 0x42b   : > { %v2391_v27 = vadd.f32 %v2389_v40, %v7118_v50  ;;  %v5990_v40 = vld [vmem:[%s4616_s10 + $0x194] ss:$24 sps:$4 sm:$0xff]  }
 0x42c   : > { %v2392_v11 = vadd.f32 %v2390_v34, %v7119_v51  ;;  %v6000_v34 = vld [vmem:[%s4616_s10 + $0x1c4] ss:$24 sps:$4 sm:$0xff]   ;;  %v6010_v50 = vld [vmem:[%s4616_s10 + $0x1f4] ss:$24 sps:$4 sm:$0xff]   ;;  %v6026_v51 = vld [vmem:[%s4616_s10 + $0x220] ss:$24 sps:$4 sm:$0xff]  }
 0x42d   : > { %4110 = vtanh.f32 %v2391_v27  ;;  %v6016_v27 = vld [vmem:[%s4616_s10 + $0x1f0] ss:$24 sps:$4 sm:$0xff]   ;;  %7122 = vst [vmem:[#allocation55_spill] sm:$0xff] %v6026_v51 }
 0x42e   : > { %4112 = vtanh.f32 %v2392_v11  ;;  %7120 = vst [vmem:[#allocation18_spill] sm:$0xff] %v6016_v27  ;;  %v6030_v11 = vld [vmem:[%s4616_s10 + $0x254] ss:$24 sps:$4 sm:$0xff]  }
 0x42f   : > { %4114 = vrcp.f32 %v2377_v15  ;;  %v6006_v15 = vld [vmem:[%s4616_s10 + $0x1c0] ss:$24 sps:$4 sm:$0xff]   ;;  %7123 = vst [vmem:[#allocation56_spill] sm:$0xff] %v6030_v11 }
 0x430   : > { %4116 = vrcp.f32 %v2378_v48  ;;  %v6020_v48 = vld [vmem:[%s4616_s10 + $0x224] ss:$24 sps:$4 sm:$0xff]  }
 0x431   : > { %7121 = vst [vmem:[#allocation20_spill] sm:$0xff] %v6020_v48 }
 0x437   : > { %v4111_v36 = vpop.eup %4110 }
 0x438   : > { %v4113_v46 = vpop.eup %4112  ;;  %v2395_v14 = vsub.f32 %v5657_v4, %v4111_v36 }
 0x439   : > { %v4115_v44 = vpop.eup %4114  ;;  %v2396_v58 = vsub.f32 %v5659_v9, %v4113_v46  ;;  %v5980_v9 = vld [vmem:[%s4616_s10 + $0x164] ss:$24 sps:$4 sm:$0xff]  }
 0x43a   : > { %v4117_v54 = vpop.eup %4116  ;;  %v2397_v22 = vmul.f32 %v4115_v44, %v2395_v14  ;;  %v6046_v14 = vld [vmem:[%s4616_s10 + $0x280] ss:$24 sps:$4 sm:$0xff]   ;;  %v6050_v44 = vld [vmem:[%s4616_s10 + $0x2b4] ss:$24 sps:$4 sm:$0xff]  }
 0x43b   : > { %v2398_v47 = vmul.f32 %v4117_v54, %v2396_v58  ;;  %7126 = vst [vmem:[#allocation95_spill] sm:$0xff] %v6046_v14  ;;  %7127 = vst [vmem:[#allocation96_spill] sm:$0xff] %v6050_v44  ;;  %v7128_v58 = vld [vmem:[#allocation42_spill] sm:$0xff]  ;;  %v7129_v54 = vld [vmem:[#allocation43_spill] sm:$0xff] }
 0x43c   : > { %v5940_v8 = vadd.f32 %v4111_v36, %v2397_v22  ;;  %v6036_v36 = vld [vmem:[%s4616_s10 + $0x250] ss:$24 sps:$4 sm:$0xff]  }
 0x43d   : > { %v5942_v63 = vadd.f32 %v4113_v46, %v2398_v47  ;;  %7124 = vst [vmem:[#allocation79_spill] sm:$0xff] %v6036_v36  ;;  %v6040_v46 = vld [vmem:[%s4616_s10 + $0x284] ss:$24 sps:$4 sm:$0xff]   ;;  %v6056_v22 = vld [vmem:[%s4616_s10 + $0x2b0] ss:$24 sps:$4 sm:$0xff]  }
 0x43e   : > { %2402 = vst [vmem:[#allocation2 + $0x20] sm:$0xff] %v5940_v8  ;;  %v5950_v4 = vpack.c.bf16 %v5940_v8, %v5940_v8  ;;  %7125 = vst [vmem:[#allocation80_spill] sm:$0xff] %v6040_v46  ;;  %v6060_v47 = vld [vmem:[%s4616_s10 + $0x2e4] ss:$24 sps:$4 sm:$0xff]  }
 0x43f   : > { %2403 = vst [vmem:[#allocation2 + $0x28] sm:$0xff] %v5942_v63  ;;  %v2412_v59 = vpack.c.bf16 %v5942_v63, %v5942_v63  ;;  %7130 = vst [vmem:[#allocation97_spill] sm:$0xff] %v6056_v22 }
 0x440   : > { %7131 = vst [vmem:[#allocation98_spill] sm:$0xff] %v6060_v47 }
 0x441   : > { %2445 = vmatprep.mubr.bf16.mxu0 %v2412_v59  ;;  %2486 = vmatprep.mubr.bf16.mxu1 %v2412_v59 }
 0x442   : > { %2446 = vmatmul.mubr.bf16.vlgmr.msra.gmra.mrb[48].mxu0 %v5950_v4  ;;  %2487 = vmatmul.mubr.bf16.vlgmr.msra.gmra.mrb[36].mxu1 %v5950_v4 }
 0x443   : > { %2496 = vmatpush1.bf16.msra.mxu0 %v5672_v25  ;;  %2527 = vmatprep.mubr.bf16.mxu0 %v2412_v59  ;;  %v7132_v59 = vld [vmem:[#allocation45_spill] sm:$0xff] }
 0x444   : > { %2497 = vmatprep.subr.bf16.mxu0 %v5676_v29  ;;  %2591 = vmatpush1.bf16.msra.mxu1 %v5484_v57 }
 0x445   : > { %2592 = vmatprep.subr.bf16.mxu1 %v5488_v45 }
 0x447   : > { %2498 = vmatpush1.bf16.msra.mxu0 %v5682_v31 }
 0x448   : > { %2499 = vmatprep.subr.bf16.mxu0 %v5686_v35  ;;  %2593 = vmatpush1.bf16.msra.mxu1 %v5494_v52 }
 0x449   : > { %2594 = vmatprep.subr.bf16.mxu1 %v5498_v2 }
 0x44b   : > { %2500 = vmatpush1.bf16.msra.mxu0 %v5692_v41 }
 0x44c   : > { %2501 = vmatprep.subr.bf16.mxu0 %v5696_v43  ;;  %2595 = vmatpush1.bf16.msra.mxu1 %v5504_v60 }
 0x44d   : > { %2596 = vmatprep.subr.bf16.mxu1 %v5508_v13 }
 0x44f   : > { %2502 = vmatpush1.bf16.msra.mxu0 %v5702_v19 }
 0x450   : > { %2503 = vmatprep.subr.bf16.mxu0 %v5706_v30  ;;  %2597 = vmatpush1.bf16.msra.mxu1 %v5514_v62 }
 0x451   : > { %2598 = vmatprep.subr.bf16.mxu1 %v5518_v21 }
 0x453   : > { %2504 = vmatpush1.bf16.msra.mxu0 %v5712_v33 }
 0x454   : > { %2505 = vmatprep.subr.bf16.mxu0 %v5716_v37  ;;  %2599 = vmatpush1.bf16.msra.mxu1 %v5524_v26 }
 0x455   : > { %2600 = vmatprep.subr.bf16.mxu1 %v5528_v16 }
 0x457   : > { %2506 = vmatpush1.bf16.msra.mxu0 %v5722_v39 }
 0x458   : > { %2507 = vmatprep.subr.bf16.mxu0 %v5726_v61  ;;  %2601 = vmatpush1.bf16.msra.mxu1 %v5534_v23 }
 0x459   : > { %2602 = vmatprep.subr.bf16.mxu1 %v5538_v18 }
 0x45b   : > { %2508 = vmatpush1.bf16.msra.mxu0 %v5732_v1 }
 0x45c   : > { %2509 = vmatprep.subr.bf16.mxu0 %v5980_v9  ;;  %2603 = vmatpush1.bf16.msra.mxu1 %v7059_v3 }
 0x45d   : > { %2604 = vmatprep.subr.bf16.mxu1 %v7060_v20 }
 0x45f   : > { %2510 = vmatpush1.bf16.msra.mxu0 %v5986_v24 }
 0x460   : > { %2511 = vmatprep.subr.bf16.mxu0 %v5990_v40  ;;  %2605 = vmatpush1.bf16.msra.mxu1 %v7063_v28 }
 0x461   : > { %2606 = vmatprep.subr.bf16.mxu1 %v7064_v32 }
 0x463   : > { %2512 = vmatpush1.bf16.msra.mxu0 %v5996_v7 }
 0x464   : > { %2513 = vmatprep.subr.bf16.mxu0 %v6000_v34  ;;  %2607 = vmatpush1.bf16.msra.mxu1 %v7067_v38 }
 0x465   : > { %2608 = vmatprep.subr.bf16.mxu1 %v7068_v42 }
 0x467   : > { %2514 = vmatpush1.bf16.msra.mxu0 %v6006_v15 }
 0x468   : > { %2515 = vmatprep.subr.bf16.mxu0 %v6010_v50  ;;  %2609 = vmatpush1.bf16.msra.mxu1 %v5574_v5 }
 0x469   : > { %2610 = vmatprep.subr.bf16.mxu1 %v7071_v49 }
 0x46b   : > { %2516 = vmatpush1.bf16.msra.mxu0 %v6016_v27 }
 0x46c   : > { %2517 = vmatprep.subr.bf16.mxu0 %v6020_v48  ;;  %2611 = vmatpush1.bf16.msra.mxu1 %v5584_v55 }
 0x46d   : > { %2612 = vmatprep.subr.bf16.mxu1 %v5588_v6 }
 0x46f   : > { %2518 = vmatpush1.bf16.msra.mxu0 %v6026_v51 }
 0x470   : > { %2519 = vmatprep.subr.bf16.mxu0 %v6030_v11  ;;  %2613 = vmatpush1.bf16.msra.mxu1 %v5757_v56  ;;  %v7172_v56 = vld [vmem:[#allocation59_spill] sm:$0xff]  ;;  %v7173_v11 = vld [vmem:[#allocation60_spill] sm:$0xff] }
 0x471   : > { %2614 = vmatprep.subr.bf16.mxu1 %v5761_v53 }
 0x473   : > { %2520 = vmatpush1.bf16.msra.mxu0 %v6036_v36  ;;  %v7171_v36 = vld [vmem:[#allocation58_spill] sm:$0xff] }
 0x474   : > { %2521 = vmatprep.subr.bf16.mxu0 %v6040_v46  ;;  %2615 = vmatpush1.bf16.msra.mxu1 %v5767_v0  ;;  %v7139_v0 = vld [vmem:[#allocation50_spill] sm:$0xff] }
 0x475   : > { %2616 = vmatprep.subr.bf16.mxu1 %v5771_v10  ;;  %v7133_v10 = vld [vmem:[#allocation47_spill] sm:$0xff]  ;;  %v7143_v46 = vld [vmem:[#allocation54_spill] sm:$0xff] }
 0x477   : > { %2522 = vmatpush1.bf16.msra.mxu0 %v6046_v14  ;;  %v6066_v14 = vld [vmem:[%s4616_s10 + $0x2e0] ss:$24 sps:$4 sm:$0xff]  }
 0x478   : > { %2523 = vmatprep.subr.bf16.mxu0 %v6050_v44  ;;  %2617 = vmatpush1.bf16.msra.mxu1 %v7128_v58  ;;  %7134 = vst [vmem:[#allocation99_spill] sm:$0xff] %v6066_v14  ;;  %v7135_v44 = vld [vmem:[#allocation49_spill] sm:$0xff]  ;;  %v7136_v58 = vld [vmem:[#allocation44_spill] sm:$0xff] }
 0x479   : > { %2618 = vmatprep.subr.bf16.mxu1 %v7129_v54  ;;  %v7137_v54 = vld [vmem:[#allocation46_spill] sm:$0xff] }
 0x47b   : > { %2524 = vmatpush1.bf16.msra.mxu0 %v6056_v22  ;;  %v7138_v22 = vld [vmem:[#allocation48_spill] sm:$0xff] }
 0x47c   : > { %2525 = vmatprep.subr.bf16.mxu0 %v6060_v47  ;;  %2619 = vmatpush1.bf16.msra.mxu1 %v7132_v59  ;;  %v7140_v47 = vld [vmem:[#allocation51_spill] sm:$0xff]  ;;  %v7141_v59 = vld [vmem:[#allocation52_spill] sm:$0xff] }
 0x47d   : > { %2620 = vmatprep.subr.bf16.mxu1 %v7133_v10  ;;  %v7142_v10 = vld [vmem:[#allocation53_spill] sm:$0xff] }
 0x47f   : > { %2526 = vmatpush1.bf16.msra.mxu0 %v6066_v14  ;;  %v7144_v14 = vld [vmem:[#allocation14_spill] sm:$0xff] }
 0x480   : > { %2631 = vmatprep.subr.bf16.mxu0 %v7135_v44  ;;  %2621 = vmatpush1.bf16.msra.mxu1 %v7136_v58  ;;  %v7145_v44 = vld [vmem:[#allocation15_spill] sm:$0xff]  ;;  %v7146_v58 = vld [vmem:[#allocation16_spill] sm:$0xff] }
 0x481   : > { %2672 = vmatprep.subr.bf16.mxu1 %v7137_v54  ;;  %v7147_v54 = vld [vmem:[#allocation17_spill] sm:$0xff] }
 0x482   : > { %2528 = vmatmul.mubr.bf16.vlgmr.msra.gmra.mrb[52].mxu0 %v5950_v4  ;;  %v7148_v4 = vld [vmem:[#allocation77_spill] sm:$0xff] }
 0x483   : > { %2632 = vmatpush1.bf16.msra.mxu0 %v7138_v22  ;;  %v7149_v22 = vld [vmem:[#allocation78_spill] sm:$0xff] }
 0x484   : > { %2633 = vmatprep.subr.bf16.mxu0 %v7139_v0  ;;  %v7150_v0 = vld [vmem:[#allocation34_spill] sm:$0xff] }
 0x487   : > { %2634 = vmatpush1.bf16.msra.mxu0 %v7140_v47  ;;  %v7151_v47 = vld [vmem:[#allocation19_spill] sm:$0xff] }
 0x488   : > { %2635 = vmatprep.subr.bf16.mxu0 %v7141_v59  ;;  %v7152_v59 = vld [vmem:[#allocation21_spill] sm:$0xff] }
 0x48b   : > { %2636 = vmatpush1.bf16.msra.mxu0 %v7142_v10  ;;  %v7153_v10 = vld [vmem:[#allocation35_spill] sm:$0xff] }
 0x48c   : > { %2637 = vmatprep.subr.bf16.mxu0 %v7143_v46  ;;  %v7163_v46 = vld [vmem:[#allocation41_spill] sm:$0xff] }
 0x48f   : > { %2638 = vmatpush1.bf16.msra.mxu0 %v7144_v14  ;;  %v7154_v14 = vld [vmem:[#allocation36_spill] sm:$0xff] }
 0x490   : > { %2639 = vmatprep.subr.bf16.mxu0 %v7145_v44  ;;  %v7155_v44 = vld [vmem:[#allocation22_spill] sm:$0xff] }
 0x493   : > { %2640 = vmatpush1.bf16.msra.mxu0 %v7146_v58  ;;  %v7156_v58 = vld [vmem:[#allocation23_spill] sm:$0xff] }
 0x494   : > { %2641 = vmatprep.subr.bf16.mxu0 %v7147_v54  ;;  %v7157_v54 = vld [vmem:[#allocation37_spill] sm:$0xff] }
 0x497   : > { %2642 = vmatpush1.bf16.msra.mxu0 %v7148_v4  ;;  %v7158_v4 = vld [vmem:[#allocation38_spill] sm:$0xff] }
 0x498   : > { %2643 = vmatprep.subr.bf16.mxu0 %v7149_v22  ;;  %v7159_v22 = vld [vmem:[#allocation24_spill] sm:$0xff] }
 0x49b   : > { %2644 = vmatpush1.bf16.msra.mxu0 %v7150_v0  ;;  %v7160_v0 = vld [vmem:[#allocation25_spill] sm:$0xff] }
 0x49c   : > { %2645 = vmatprep.subr.bf16.mxu0 %v7151_v47  ;;  %v7161_v47 = vld [vmem:[#allocation39_spill] sm:$0xff] }
 0x49f   : > { %2646 = vmatpush1.bf16.msra.mxu0 %v7152_v59  ;;  %v7162_v59 = vld [vmem:[#allocation40_spill] sm:$0xff] }
 0x4a0   : > { %2647 = vmatprep.subr.bf16.mxu0 %v7153_v10  ;;  %v7164_v10 = vld [vmem:[#allocation91_spill] sm:$0xff] }
 0x4a3   : > { %2648 = vmatpush1.bf16.msra.mxu0 %v7154_v14  ;;  %v7165_v14 = vld [vmem:[#allocation92_spill] sm:$0xff] }
 0x4a4   : > { %2649 = vmatprep.subr.bf16.mxu0 %v7155_v44  ;;  %v7166_v44 = vld [vmem:[#allocation93_spill] sm:$0xff] }
 0x4a7   : > { %2650 = vmatpush1.bf16.msra.mxu0 %v7156_v58  ;;  %v7167_v58 = vld [vmem:[#allocation94_spill] sm:$0xff] }
 0x4a8   : > { %2651 = vmatprep.subr.bf16.mxu0 %v7157_v54  ;;  %v6104_v54 = vld [vmem:[%s4616_s10 + $0x2d8] ss:$24 sps:$4 sm:$0xff]  }
 0x4a9   : > { %7168 = vst [vmem:[#allocation100_spill] sm:$0xff] %v6104_v54 }
 0x4ab   : > { %2652 = vmatpush1.bf16.msra.mxu0 %v7158_v4  ;;  %v7170_v4 = vld [vmem:[#allocation57_spill] sm:$0xff] }
 0x4ac   : > { %2653 = vmatprep.subr.bf16.mxu0 %v7159_v22  ;;  %v7169_v22 = vld [vmem:[#allocation29_spill] sm:$0xff] }
 0x4af   : > { %2654 = vmatpush1.bf16.msra.mxu0 %v7160_v0 }
 0x4b0   : > { %2655 = vmatprep.subr.bf16.mxu0 %v7161_v47 }
 0x4b3   : > { %2656 = vmatpush1.bf16.msra.mxu0 %v7162_v59 }
 0x4b4   : > { %2657 = vmatprep.subr.bf16.mxu0 %v7163_v46 }
 0x4b7   : > { %2658 = vmatpush1.bf16.msra.mxu0 %v7164_v10 }
 0x4b8   : > { %2659 = vmatprep.subr.bf16.mxu0 %v7165_v14 }
 0x4bb   : > { %2660 = vmatpush1.bf16.msra.mxu0 %v7166_v44 }
 0x4bc   : > { %2661 = vmatprep.subr.bf16.mxu0 %v7167_v58 }
 0x4bf   : > { %2662 = vmatpush1.bf16.msra.mxu0 %v6104_v54 }
 0x4c0   : > { %2767 = vmatprep.subr.bf16.mxu0 %v7169_v22 }
 0x515   : > { %v2447_v0 = vpop.f32.mrb[48].mxu0  ;;  %v2488_v47 = vpop.f32.mrb[36].mxu1 }
 0x516   : > { %v2536_v59 = vadd.f32 %v2447_v0, %v7170_v4  ;;  %v2538_v46 = vadd.f32 %v2488_v47, %v7171_v36  ;;  %v2449_v53 = vpop.f32.mrb[49].mxu0  ;;  %v2490_v10 = vpop.f32.mrb[37].mxu1  ;;  %v7175_v47 = vld [vmem:[#allocation82_spill] sm:$0xff] }
 0x517   : > { %v2537_v14 = vadd.f32 %v2449_v53, %v7172_v56  ;;  %v2539_v44 = vadd.f32 %v2490_v10, %v7173_v11  ;;  %v2451_v51 = vpop.f32.mrb[50].mxu0  ;;  %v2492_v58 = vpop.f32.mrb[38].mxu1 }
 0x518   : > { %v2452_v6 = vpop.f32.mrb[51].mxu0  ;;  %v2493_v55 = vpop.f32.mrb[39].mxu1  ;;  %v3690_v48 = vmul.f32 -1.442695, %v2536_v59  ;;  %v3692_v49 = vmul.f32 -1.442695, %v2538_v46 }
 0x519   : > { %v3691_v54 = vmul.f32 -1.442695, %v2537_v14  ;;  %v3693_v0 = vmul.f32 -1.442695, %v2539_v44 }
 0x51a   : > { %4118 = vpow2.f32 %v3690_v48 }
 0x51b   : > { %4120 = vpow2.f32 %v3691_v54 }
 0x51c   : > { %4122 = vpow2.f32 %v3692_v49 }
 0x51d   : > { %4124 = vpow2.f32 %v3693_v0 }
 0x524   : > { %v4119_v22 = vpop.eup %4118 }
 0x525   : > { %v4121_v27 = vpop.eup %4120  ;;  %v2552_v4 = vadd.f32 1.0, %v4119_v22 }
 0x526   : > { %v2553_v36 = vadd.f32 1.0, %v4121_v27  ;;  %v4123_v56 = vpop.eup %4122  ;;  %v7174_v27 = vld [vmem:[#allocation81_spill] sm:$0xff] }
 0x527   : > { %4126 = vrcp.f32 %v2552_v4  ;;  %v4125_v10 = vpop.eup %4124  ;;  %v2554_v54 = vadd.f32 1.0, %v4123_v56 }
 0x528   : > { %4128 = vrcp.f32 %v2553_v36  ;;  %v2555_v22 = vadd.f32 1.0, %v4125_v10 }
 0x531   : > { %v4127_v51 = vpop.eup %4126 }
 0x532   : > { %v4129_v14 = vpop.eup %4128 }
 0x555   : > { %v2529_v53 = vpop.f32.mrb[52].mxu0 }
 0x556   : > { %v2564_v6 = vadd.f32 %v2529_v53, %v5449_v17  ;;  %v2531_v55 = vpop.f32.mrb[53].mxu0 }
 0x557   : > { %v2565_v48 = vadd.f32 %v2531_v55, %v5453_v12  ;;  %v2533_v11 = vpop.f32.mrb[54].mxu0 }
 0x558   : > { %v2566_v58 = vmul.f32 %v4127_v51, %v2564_v6  ;;  %v2534_v46 = vpop.f32.mrb[55].mxu0 }
 0x559   : > { %v2567_v44 = vmul.f32 %v4129_v14, %v2565_v48  ;;  %v7196_v14 = vld [vmem:[#allocation47_spill] sm:$0xff]  ;;  %v7198_v46 = vld [vmem:[#allocation49_spill] sm:$0xff] }
 0x55a   : > { %v2568_v49 = vadd.f32 %v2566_v58, %v7174_v27  ;;  %v7197_v58 = vld [vmem:[#allocation99_spill] sm:$0xff]  ;;  %v7201_v27 = vld [vmem:[#allocation48_spill] sm:$0xff] }
 0x55b   : > { %v2569_v59 = vadd.f32 %v2567_v44, %v7175_v47  ;;  %v7199_v44 = vld [vmem:[#allocation44_spill] sm:$0xff] }
 0x55c   : > { %4130 = vtanh.f32 %v2568_v49  ;;  %v7202_v49 = vld [vmem:[#allocation50_spill] sm:$0xff]  ;;  %v7204_v47 = vld [vmem:[#allocation52_spill] sm:$0xff] }
 0x55d   : > { %4132 = vtanh.f32 %v2569_v59  ;;  %v7205_v59 = vld [vmem:[#allocation53_spill] sm:$0xff] }
 0x55e   : > { %4134 = vrcp.f32 %v2554_v54  ;;  %v7200_v54 = vld [vmem:[#allocation46_spill] sm:$0xff] }
 0x55f   : > { %4136 = vrcp.f32 %v2555_v22  ;;  %v7203_v22 = vld [vmem:[#allocation51_spill] sm:$0xff] }
 0x566   : > { %v4131_v0 = vpop.eup %4130 }
 0x567   : > { %v4133_v4 = vpop.eup %4132  ;;  %v2572_v36 = vsub.f32 %v5940_v8, %v4131_v0 }
 0x568   : > { %v4135_v53 = vpop.eup %4134  ;;  %v2573_v55 = vsub.f32 %v5942_v63, %v4133_v4  ;;  %v7195_v63 = vld [vmem:[#allocation45_spill] sm:$0xff] }
 0x569   : > { %v4137_v6 = vpop.eup %4136  ;;  %v2574_v51 = vmul.f32 %v4135_v53, %v2572_v36  ;;  %v7208_v36 = vld [vmem:[#allocation15_spill] sm:$0xff]  ;;  %v7209_v53 = vld [vmem:[#allocation16_spill] sm:$0xff] }
 0x56a   : > { %v2575_v48 = vmul.f32 %v4137_v6, %v2573_v55  ;;  %v7210_v55 = vld [vmem:[#allocation17_spill] sm:$0xff] }
 0x56b   : > { %v6118_v56 = vadd.f32 %v4131_v0, %v2574_v51  ;;  %v7206_v0 = vld [vmem:[#allocation54_spill] sm:$0xff]  ;;  %v7211_v6 = vld [vmem:[#allocation77_spill] sm:$0xff] }
 0x56c   : > { %v6120_v11 = vadd.f32 %v4133_v4, %v2575_v48  ;;  %v7207_v4 = vld [vmem:[#allocation14_spill] sm:$0xff] }
 0x56d   : > { %2579 = vst [vmem:[#allocation2 + $0x30] sm:$0xff] %v6118_v56  ;;  %v6128_v8 = vpack.c.bf16 %v6118_v56, %v6118_v56  ;;  %v7212_v51 = vld [vmem:[#allocation78_spill] sm:$0xff] }
 0x56e   : > { %2580 = vst [vmem:[#allocation2 + $0x38] sm:$0xff] %v6120_v11  ;;  %v2589_v10 = vpack.c.bf16 %v6120_v11, %v6120_v11  ;;  %v7213_v48 = vld [vmem:[#allocation34_spill] sm:$0xff] }
 0x570   : > { %2622 = vmatprep.mubr.bf16.mxu1 %v2589_v10  ;;  %2663 = vmatprep.mubr.bf16.mxu0 %v2589_v10 }
 0x571   : > { %2623 = vmatmul.mubr.bf16.vlgmr.msra.gmra.mrb[40].mxu1 %v6128_v8  ;;  %2664 = vmatmul.mubr.bf16.vlgmr.msra.gmra.mrb[56].mxu0 %v6128_v8 }
 0x572   : > { %2673 = vmatpush1.bf16.msra.mxu1 %v5672_v25  ;;  %2704 = vmatprep.mubr.bf16.mxu1 %v2589_v10  ;;  %v7214_v10 = vld [vmem:[#allocation19_spill] sm:$0xff] }
 0x573   : > { %2674 = vmatprep.subr.bf16.mxu1 %v5676_v29  ;;  %2768 = vmatpush1.bf16.msra.mxu0 %v5484_v57  ;;  %v7176_v57 = vld [vmem:[#allocation26_spill] sm:$0xff] }
 0x574   : > { %2769 = vmatprep.subr.bf16.mxu0 %v5488_v45  ;;  %v7177_v45 = vld [vmem:[#allocation18_spill] sm:$0xff] }
 0x576   : > { %2675 = vmatpush1.bf16.msra.mxu1 %v5682_v31 }
 0x577   : > { %2676 = vmatprep.subr.bf16.mxu1 %v5686_v35  ;;  %2770 = vmatpush1.bf16.msra.mxu0 %v5494_v52  ;;  %v7178_v52 = vld [vmem:[#allocation20_spill] sm:$0xff] }
 0x578   : > { %2771 = vmatprep.subr.bf16.mxu0 %v5498_v2  ;;  %v7179_v2 = vld [vmem:[#allocation27_spill] sm:$0xff] }
 0x57a   : > { %2677 = vmatpush1.bf16.msra.mxu1 %v5692_v41 }
 0x57b   : > { %2678 = vmatprep.subr.bf16.mxu1 %v5696_v43  ;;  %2772 = vmatpush1.bf16.msra.mxu0 %v5504_v60  ;;  %v7180_v60 = vld [vmem:[#allocation28_spill] sm:$0xff] }
 0x57c   : > { %2773 = vmatprep.subr.bf16.mxu0 %v5508_v13  ;;  %v7181_v13 = vld [vmem:[#allocation55_spill] sm:$0xff] }
 0x57e   : > { %2679 = vmatpush1.bf16.msra.mxu1 %v5702_v19 }
 0x57f   : > { %2680 = vmatprep.subr.bf16.mxu1 %v5706_v30  ;;  %2774 = vmatpush1.bf16.msra.mxu0 %v5514_v62  ;;  %v7182_v62 = vld [vmem:[#allocation56_spill] sm:$0xff] }
 0x580   : > { %2775 = vmatprep.subr.bf16.mxu0 %v5518_v21  ;;  %v7183_v21 = vld [vmem:[#allocation30_spill] sm:$0xff] }
 0x582   : > { %2681 = vmatpush1.bf16.msra.mxu1 %v5712_v33 }
 0x583   : > { %2682 = vmatprep.subr.bf16.mxu1 %v5716_v37  ;;  %2776 = vmatpush1.bf16.msra.mxu0 %v5524_v26  ;;  %v7184_v26 = vld [vmem:[#allocation31_spill] sm:$0xff] }
 0x584   : > { %2777 = vmatprep.subr.bf16.mxu0 %v5528_v16  ;;  %v7185_v16 = vld [vmem:[#allocation79_spill] sm:$0xff] }
 0x586   : > { %2683 = vmatpush1.bf16.msra.mxu1 %v5722_v39 }
 0x587   : > { %2684 = vmatprep.subr.bf16.mxu1 %v5726_v61  ;;  %2778 = vmatpush1.bf16.msra.mxu0 %v5534_v23  ;;  %v7186_v23 = vld [vmem:[#allocation80_spill] sm:$0xff] }
 0x588   : > { %2779 = vmatprep.subr.bf16.mxu0 %v5538_v18  ;;  %v7187_v18 = vld [vmem:[#allocation32_spill] sm:$0xff] }
 0x58a   : > { %2685 = vmatpush1.bf16.msra.mxu1 %v5732_v1 }
 0x58b   : > { %2686 = vmatprep.subr.bf16.mxu1 %v5980_v9  ;;  %2780 = vmatpush1.bf16.msra.mxu0 %v7059_v3  ;;  %v7189_v3 = vld [vmem:[#allocation95_spill] sm:$0xff] }
 0x58c   : > { %2781 = vmatprep.subr.bf16.mxu0 %v7060_v20  ;;  %v7190_v20 = vld [vmem:[#allocation96_spill] sm:$0xff] }
 0x58e   : > { %2687 = vmatpush1.bf16.msra.mxu1 %v5986_v24 }
 0x58f   : > { %2688 = vmatprep.subr.bf16.mxu1 %v5990_v40  ;;  %2782 = vmatpush1.bf16.msra.mxu0 %v7063_v28  ;;  %v7191_v28 = vld [vmem:[#allocation42_spill] sm:$0xff] }
 0x590   : > { %2783 = vmatprep.subr.bf16.mxu0 %v7064_v32  ;;  %v7192_v32 = vld [vmem:[#allocation43_spill] sm:$0xff] }
 0x592   : > { %2689 = vmatpush1.bf16.msra.mxu1 %v5996_v7 }
 0x593   : > { %2690 = vmatprep.subr.bf16.mxu1 %v6000_v34  ;;  %2784 = vmatpush1.bf16.msra.mxu0 %v7067_v38  ;;  %v7193_v38 = vld [vmem:[#allocation97_spill] sm:$0xff] }
 0x594   : > { %2785 = vmatprep.subr.bf16.mxu0 %v7068_v42  ;;  %v7194_v42 = vld [vmem:[#allocation98_spill] sm:$0xff] }
 0x596   : > { %2691 = vmatpush1.bf16.msra.mxu1 %v6006_v15 }
 0x597   : > { %2692 = vmatprep.subr.bf16.mxu1 %v6010_v50  ;;  %2786 = vmatpush1.bf16.msra.mxu0 %v5574_v5  ;;  %v7188_v5 = vld [vmem:[#allocation33_spill] sm:$0xff] }
 0x598   : > { %2787 = vmatprep.subr.bf16.mxu0 %v7176_v57  ;;  %v7216_v57 = vld [vmem:[#allocation35_spill] sm:$0xff] }
 0x59a   : > { %2693 = vmatpush1.bf16.msra.mxu1 %v7177_v45 }
 0x59b   : > { %2694 = vmatprep.subr.bf16.mxu1 %v7178_v52  ;;  %2788 = vmatpush1.bf16.msra.mxu0 %v7179_v2  ;;  %v7217_v2 = vld [vmem:[#allocation36_spill] sm:$0xff] }
 0x59c   : > { %2789 = vmatprep.subr.bf16.mxu0 %v7180_v60  ;;  %v7218_v60 = vld [vmem:[#allocation22_spill] sm:$0xff] }
 0x59e   : > { %2695 = vmatpush1.bf16.msra.mxu1 %v7181_v13 }
 0x59f   : > { %2696 = vmatprep.subr.bf16.mxu1 %v7182_v62  ;;  %2790 = vmatpush1.bf16.msra.mxu0 %v7183_v21 }
 0x5a0   : > { %2791 = vmatprep.subr.bf16.mxu0 %v7184_v26 }
 0x5a2   : > { %2697 = vmatpush1.bf16.msra.mxu1 %v7185_v16 }
 0x5a3   : > { %2698 = vmatprep.subr.bf16.mxu1 %v7186_v23  ;;  %2792 = vmatpush1.bf16.msra.mxu0 %v7187_v18 }
 0x5a4   : > { %2793 = vmatprep.subr.bf16.mxu0 %v7188_v5 }
 0x5a6   : > { %2699 = vmatpush1.bf16.msra.mxu1 %v7189_v3 }
 0x5a7   : > { %2700 = vmatprep.subr.bf16.mxu1 %v7190_v20  ;;  %2794 = vmatpush1.bf16.msra.mxu0 %v7191_v28 }
 0x5a8   : > { %2795 = vmatprep.subr.bf16.mxu0 %v7192_v32 }
 0x5aa   : > { %2701 = vmatpush1.bf16.msra.mxu1 %v7193_v38 }
 0x5ab   : > { %2702 = vmatprep.subr.bf16.mxu1 %v7194_v42  ;;  %2796 = vmatpush1.bf16.msra.mxu0 %v7195_v63 }
 0x5ac   : > { %2797 = vmatprep.subr.bf16.mxu0 %v7196_v14 }
 0x5ae   : > { %2703 = vmatpush1.bf16.msra.mxu1 %v7197_v58 }
 0x5af   : > { %2808 = vmatprep.subr.bf16.mxu1 %v7198_v46  ;;  %2798 = vmatpush1.bf16.msra.mxu0 %v7199_v44 }
 0x5b0   : > { %2849 = vmatprep.subr.bf16.mxu0 %v7200_v54 }
 0x5b1   : > { %2705 = vmatmul.mubr.bf16.vlgmr.msra.gmra.mrb[44].mxu1 %v6128_v8  ;;  %v7215_v8 = vld [vmem:[#allocation21_spill] sm:$0xff] }
 0x5b2   : > { %2809 = vmatpush1.bf16.msra.mxu1 %v7201_v27 }
 0x5b3   : > { %2810 = vmatprep.subr.bf16.mxu1 %v7202_v49 }
 0x5b6   : > { %2811 = vmatpush1.bf16.msra.mxu1 %v7203_v22  ;;  %v7236_v22 = vld [vmem:[#allocation64_spill] sm:$0xff] }
 0x5b7   : > { %2812 = vmatprep.subr.bf16.mxu1 %v7204_v47  ;;  %v7235_v47 = vld [vmem:[#allocation63_spill] sm:$0xff] }
 0x5ba   : > { %2813 = vmatpush1.bf16.msra.mxu1 %v7205_v59 }
 0x5bb   : > { %2814 = vmatprep.subr.bf16.mxu1 %v7206_v0  ;;  %v7234_v0 = vld [vmem:[#allocation62_spill] sm:$0xff] }
 0x5be   : > { %2815 = vmatpush1.bf16.msra.mxu1 %v7207_v4  ;;  %v7233_v4 = vld [vmem:[#allocation61_spill] sm:$0xff] }
 0x5bf   : > { %2816 = vmatprep.subr.bf16.mxu1 %v7208_v36  ;;  %v7219_v36 = vld [vmem:[#allocation23_spill] sm:$0xff] }
 0x5c2   : > { %2817 = vmatpush1.bf16.msra.mxu1 %v7209_v53  ;;  %v7220_v53 = vld [vmem:[#allocation37_spill] sm:$0xff] }
 0x5c3   : > { %2818 = vmatprep.subr.bf16.mxu1 %v7210_v55  ;;  %v7221_v55 = vld [vmem:[#allocation38_spill] sm:$0xff] }
 0x5c6   : > { %2819 = vmatpush1.bf16.msra.mxu1 %v7211_v6  ;;  %v7222_v6 = vld [vmem:[#allocation24_spill] sm:$0xff] }
 0x5c7   : > { %2820 = vmatprep.subr.bf16.mxu1 %v7212_v51  ;;  %v7223_v51 = vld [vmem:[#allocation25_spill] sm:$0xff] }
 0x5ca   : > { %2821 = vmatpush1.bf16.msra.mxu1 %v7213_v48  ;;  %v7224_v48 = vld [vmem:[#allocation39_spill] sm:$0xff] }
 0x5cb   : > { %2822 = vmatprep.subr.bf16.mxu1 %v7214_v10  ;;  %v7225_v10 = vld [vmem:[#allocation40_spill] sm:$0xff] }
 0x5ce   : > { %2823 = vmatpush1.bf16.msra.mxu1 %v7215_v8  ;;  %v7226_v8 = vld [vmem:[#allocation41_spill] sm:$0xff] }
 0x5cf   : > { %2824 = vmatprep.subr.bf16.mxu1 %v7216_v57  ;;  %v7227_v57 = vld [vmem:[#allocation91_spill] sm:$0xff] }
 0x5d2   : > { %2825 = vmatpush1.bf16.msra.mxu1 %v7217_v2  ;;  %v7228_v2 = vld [vmem:[#allocation92_spill] sm:$0xff] }
 0x5d3   : > { %2826 = vmatprep.subr.bf16.mxu1 %v7218_v60  ;;  %v7229_v60 = vld [vmem:[#allocation93_spill] sm:$0xff] }
 0x5d6   : > { %2827 = vmatpush1.bf16.msra.mxu1 %v7219_v36  ;;  %v7230_v36 = vld [vmem:[#allocation94_spill] sm:$0xff] }
 0x5d7   : > { %2828 = vmatprep.subr.bf16.mxu1 %v7220_v53  ;;  %v7231_v53 = vld [vmem:[#allocation100_spill] sm:$0xff] }
 0x5da   : > { %2829 = vmatpush1.bf16.msra.mxu1 %v7221_v55  ;;  %v7232_v55 = vld [vmem:[#allocation29_spill] sm:$0xff] }
 0x5db   : > { %2830 = vmatprep.subr.bf16.mxu1 %v7222_v6 }
 0x5de   : > { %2831 = vmatpush1.bf16.msra.mxu1 %v7223_v51 }
 0x5df   : > { %2832 = vmatprep.subr.bf16.mxu1 %v7224_v48 }
 0x5e2   : > { %2833 = vmatpush1.bf16.msra.mxu1 %v7225_v10 }
 0x5e3   : > { %2834 = vmatprep.subr.bf16.mxu1 %v7226_v8 }
 0x5e6   : > { %2835 = vmatpush1.bf16.msra.mxu1 %v7227_v57 }
 0x5e7   : > { %2836 = vmatprep.subr.bf16.mxu1 %v7228_v2 }
 0x5ea   : > { %2837 = vmatpush1.bf16.msra.mxu1 %v7229_v60 }
 0x5eb   : > { %2838 = vmatprep.subr.bf16.mxu1 %v7230_v36 }
 0x5ee   : > { %2839 = vmatpush1.bf16.msra.mxu1 %v7231_v53 }
 0x5ef   : > { %2944 = vmatprep.subr.bf16.mxu1 %v7232_v55 }
 0x644   : > { %v2624_v6 = vpop.f32.mrb[40].mxu1  ;;  %v2665_v51 = vpop.f32.mrb[56].mxu0 }
 0x645   : > { %v2713_v48 = vadd.f32 %v2624_v6, %v7233_v4  ;;  %v2715_v10 = vadd.f32 %v2665_v51, %v7234_v0  ;;  %v2626_v59 = vpop.f32.mrb[41].mxu1  ;;  %v2667_v8 = vpop.f32.mrb[57].mxu0 }
 0x646   : > { %v2714_v57 = vadd.f32 %v2626_v59, %v7235_v47  ;;  %v2716_v2 = vadd.f32 %v2667_v8, %v7236_v22  ;;  %v2628_v49 = vpop.f32.mrb[42].mxu1  ;;  %v2669_v60 = vpop.f32.mrb[58].mxu0 }
 0x647   : > { %v2629_v27 = vpop.f32.mrb[43].mxu1  ;;  %v2670_v36 = vpop.f32.mrb[59].mxu0  ;;  %v3694_v54 = vmul.f32 -1.442695, %v2713_v48  ;;  %v3696_v46 = vmul.f32 -1.442695, %v2715_v10 }
 0x648   : > { %v3695_v53 = vmul.f32 -1.442695, %v2714_v57  ;;  %v3697_v4 = vmul.f32 -1.442695, %v2716_v2  ;;  %v7238_v60 = vld [vmem:[#allocation84_spill] sm:$0xff] }
 0x649   : > { %4138 = vpow2.f32 %v3694_v54 }
 0x64a   : > { %4140 = vpow2.f32 %v3695_v53 }
 0x64b   : > { %4142 = vpow2.f32 %v3696_v46 }
 0x64c   : > { %4144 = vpow2.f32 %v3697_v4 }
 0x653   : > { %v4139_v55 = vpop.eup %4138 }
 0x654   : > { %v4141_v44 = vpop.eup %4140  ;;  %v2729_v6 = vadd.f32 1.0, %v4139_v55 }
 0x655   : > { %v2730_v0 = vadd.f32 1.0, %v4141_v44  ;;  %v4143_v47 = vpop.eup %4142  ;;  %v7237_v44 = vld [vmem:[#allocation83_spill] sm:$0xff] }
 0x656   : > { %4146 = vrcp.f32 %v2729_v6  ;;  %v4145_v49 = vpop.eup %4144  ;;  %v2731_v57 = vadd.f32 1.0, %v4143_v47 }
 0x657   : > { %4148 = vrcp.f32 %v2730_v0  ;;  %v2732_v2 = vadd.f32 1.0, %v4145_v49 }
 0x660   : > { %v4147_v36 = vpop.eup %4146 }
 0x661   : > { %v4149_v51 = vpop.eup %4148 }
 0x684   : > { %v2706_v22 = vpop.f32.mrb[44].mxu1 }
 0x685   : > { %v2741_v27 = vadd.f32 %v2706_v22, %v5449_v17  ;;  %v2708_v59 = vpop.f32.mrb[45].mxu1 }
 0x686   : > { %v2742_v54 = vadd.f32 %v2708_v59, %v5453_v12  ;;  %v2710_v53 = vpop.f32.mrb[46].mxu1 }
 0x687   : > { %v2743_v48 = vmul.f32 %v4147_v36, %v2741_v27  ;;  %v2711_v10 = vpop.f32.mrb[47].mxu1  ;;  %v6256_v53 = vld [vmem:[%s4616_s10] ss:$24 sps:$4 sm:$0xff]  }
 0x688   : > { %v2744_v8 = vmul.f32 %v4149_v51, %v2742_v54  ;;  %v6260_v51 = vld [vmem:[%s4616_s10 + $0x34] ss:$24 sps:$4 sm:$0xff]   ;;  %v6336_v10 = vld [vmem:[%s4616_s10 + $0x180] ss:$24 sps:$4 sm:$0xff]  }
 0x689   : > { %v2745_v46 = vadd.f32 %v2743_v48, %v7237_v44  ;;  %v6266_v48 = vld [vmem:[%s4616_s10 + $0x30] ss:$24 sps:$4 sm:$0xff]   ;;  %v6350_v44 = vld [vmem:[%s4616_s10 + $0x1e4] ss:$24 sps:$4 sm:$0xff]  }
 0x68a   : > { %v2746_v55 = vadd.f32 %v2744_v8, %v7238_v60  ;;  %v6340_v8 = vld [vmem:[%s4616_s10 + $0x1b4] ss:$24 sps:$4 sm:$0xff]  }
 0x68b   : > { %4150 = vtanh.f32 %v2745_v46  ;;  %v6356_v46 = vld [vmem:[%s4616_s10 + $0x1e0] ss:$24 sps:$4 sm:$0xff]   ;;  %v7245_v60 = vld [vmem:[#allocation52_spill] sm:$0xff] }
 0x68c   : > { %4152 = vtanh.f32 %v2746_v55  ;;  %v7248_v55 = vld [vmem:[#allocation14_spill] sm:$0xff] }
 0x68d   : > { %4154 = vrcp.f32 %v2731_v57  ;;  %v6346_v57 = vld [vmem:[%s4616_s10 + $0x1b0] ss:$24 sps:$4 sm:$0xff]  }
 0x68e   : > { %4156 = vrcp.f32 %v2732_v2  ;;  %v6360_v2 = vld [vmem:[%s4616_s10 + $0x214] ss:$24 sps:$4 sm:$0xff]  }
 0x695   : > { %v4151_v4 = vpop.eup %4150 }
 0x696   : > { %v4153_v6 = vpop.eup %4152  ;;  %v2749_v0 = vsub.f32 %v6118_v56, %v4151_v4 }
 0x697   : > { %v4155_v22 = vpop.eup %4154  ;;  %v2750_v59 = vsub.f32 %v6120_v11, %v4153_v6 }
 0x698   : > { %v4157_v27 = vpop.eup %4156  ;;  %v2751_v36 = vmul.f32 %v4155_v22, %v2749_v0  ;;  %v7251_v0 = vld [vmem:[#allocation17_spill] sm:$0xff] }
 0x699   : > { %v2752_v47 = vmul.f32 %v4157_v27, %v2750_v59  ;;  %v7252_v22 = vld [vmem:[#allocation77_spill] sm:$0xff]  ;;  %v7253_v59 = vld [vmem:[#allocation78_spill] sm:$0xff] }
 0x69a   : > { %v6239_v54 = vadd.f32 %v4151_v4, %v2751_v36  ;;  %v7249_v4 = vld [vmem:[#allocation15_spill] sm:$0xff]  ;;  %v7254_v27 = vld [vmem:[#allocation34_spill] sm:$0xff] }
 0x69b   : > { %v6241_v49 = vadd.f32 %v4153_v6, %v2752_v47  ;;  %v7250_v6 = vld [vmem:[#allocation16_spill] sm:$0xff]  ;;  %v7255_v36 = vld [vmem:[#allocation19_spill] sm:$0xff]  ;;  %v7256_v47 = vld [vmem:[#allocation21_spill] sm:$0xff] }
 0x69c   : > { %2756 = vst [vmem:[#allocation2 + $0x40] sm:$0xff] %v6239_v54  ;;  %v6249_v11 = vpack.c.bf16 %v6239_v54, %v6239_v54 }
 0x69d   : > { %2757 = vst [vmem:[#allocation2 + $0x48] sm:$0xff] %v6241_v49  ;;  %v2766_v56 = vpack.c.bf16 %v6241_v49, %v6241_v49 }
 0x69f   : > { %2799 = vmatprep.mubr.bf16.mxu0 %v2766_v56  ;;  %2840 = vmatprep.mubr.bf16.mxu1 %v2766_v56 }
 0x6a0   : > { %2800 = vmatmul.mubr.bf16.vlgmr.msra.gmra.mrb[60].mxu0 %v6249_v11  ;;  %2841 = vmatmul.mubr.bf16.vlgmr.msra.gmra.mrb[48].mxu1 %v6249_v11 }
 0x6a1   : > { %2850 = vmatpush1.bf16.msra.mxu0 %v5672_v25  ;;  %2881 = vmatprep.mubr.bf16.mxu0 %v2766_v56  ;;  %v6270_v25 = vld [vmem:[%s4616_s10 + $0x64] ss:$24 sps:$4 sm:$0xff]   ;;  %v7257_v56 = vld [vmem:[#allocation35_spill] sm:$0xff] }
 0x6a2   : > { %2851 = vmatprep.subr.bf16.mxu0 %v5676_v29  ;;  %2945 = vmatpush1.bf16.msra.mxu1 %v6256_v53  ;;  %v6276_v29 = vld [vmem:[%s4616_s10 + $0x60] ss:$24 sps:$4 sm:$0xff]  }
 0x6a3   : > { %2946 = vmatprep.subr.bf16.mxu1 %v6260_v51 }
 0x6a5   : > { %2852 = vmatpush1.bf16.msra.mxu0 %v5682_v31  ;;  %v6280_v31 = vld [vmem:[%s4616_s10 + $0x94] ss:$24 sps:$4 sm:$0xff]  }
 0x6a6   : > { %2853 = vmatprep.subr.bf16.mxu0 %v5686_v35  ;;  %2947 = vmatpush1.bf16.msra.mxu1 %v6266_v48  ;;  %v6286_v35 = vld [vmem:[%s4616_s10 + $0x90] ss:$24 sps:$4 sm:$0xff]  }
 0x6a7   : > { %2948 = vmatprep.subr.bf16.mxu1 %v6270_v25 }
 0x6a9   : > { %2854 = vmatpush1.bf16.msra.mxu0 %v5692_v41  ;;  %v6290_v41 = vld [vmem:[%s4616_s10 + $0xc4] ss:$24 sps:$4 sm:$0xff]  }
 0x6aa   : > { %2855 = vmatprep.subr.bf16.mxu0 %v5696_v43  ;;  %2949 = vmatpush1.bf16.msra.mxu1 %v6276_v29  ;;  %v6296_v43 = vld [vmem:[%s4616_s10 + $0xc0] ss:$24 sps:$4 sm:$0xff]  }
 0x6ab   : > { %2950 = vmatprep.subr.bf16.mxu1 %v6280_v31 }
 0x6ad   : > { %2856 = vmatpush1.bf16.msra.mxu0 %v5702_v19  ;;  %v6300_v19 = vld [vmem:[%s4616_s10 + $0xf4] ss:$24 sps:$4 sm:$0xff]  }
 0x6ae   : > { %2857 = vmatprep.subr.bf16.mxu0 %v5706_v30  ;;  %2951 = vmatpush1.bf16.msra.mxu1 %v6286_v35  ;;  %v6306_v30 = vld [vmem:[%s4616_s10 + $0xf0] ss:$24 sps:$4 sm:$0xff]  }
 0x6af   : > { %2952 = vmatprep.subr.bf16.mxu1 %v6290_v41 }
 0x6b1   : > { %2858 = vmatpush1.bf16.msra.mxu0 %v5712_v33  ;;  %v6310_v33 = vld [vmem:[%s4616_s10 + $0x124] ss:$24 sps:$4 sm:$0xff]  }
 0x6b2   : > { %2859 = vmatprep.subr.bf16.mxu0 %v5716_v37  ;;  %2953 = vmatpush1.bf16.msra.mxu1 %v6296_v43  ;;  %v6316_v37 = vld [vmem:[%s4616_s10 + $0x120] ss:$24 sps:$4 sm:$0xff]  }
 0x6b3   : > { %2954 = vmatprep.subr.bf16.mxu1 %v6300_v19 }
 0x6b5   : > { %2860 = vmatpush1.bf16.msra.mxu0 %v5722_v39  ;;  %v6320_v39 = vld [vmem:[%s4616_s10 + $0x154] ss:$24 sps:$4 sm:$0xff]  }
 0x6b6   : > { %2861 = vmatprep.subr.bf16.mxu0 %v5726_v61  ;;  %2955 = vmatpush1.bf16.msra.mxu1 %v6306_v30  ;;  %v6326_v61 = vld [vmem:[%s4616_s10 + $0x150] ss:$24 sps:$4 sm:$0xff]  }
 0x6b7   : > { %2956 = vmatprep.subr.bf16.mxu1 %v6310_v33 }
 0x6b9   : > { %2862 = vmatpush1.bf16.msra.mxu0 %v5732_v1  ;;  %v6330_v1 = vld [vmem:[%s4616_s10 + $0x184] ss:$24 sps:$4 sm:$0xff]  }
 0x6ba   : > { %2863 = vmatprep.subr.bf16.mxu0 %v5980_v9  ;;  %2957 = vmatpush1.bf16.msra.mxu1 %v6316_v37 }
 0x6bb   : > { %2958 = vmatprep.subr.bf16.mxu1 %v6320_v39 }
 0x6bd   : > { %2864 = vmatpush1.bf16.msra.mxu0 %v5986_v24 }
 0x6be   : > { %2865 = vmatprep.subr.bf16.mxu0 %v5990_v40  ;;  %2959 = vmatpush1.bf16.msra.mxu1 %v6326_v61 }
 0x6bf   : > { %2960 = vmatprep.subr.bf16.mxu1 %v6330_v1 }
 0x6c1   : > { %2866 = vmatpush1.bf16.msra.mxu0 %v5996_v7 }
 0x6c2   : > { %2867 = vmatprep.subr.bf16.mxu0 %v6000_v34  ;;  %2961 = vmatpush1.bf16.msra.mxu1 %v6336_v10 }
 0x6c3   : > { %2962 = vmatprep.subr.bf16.mxu1 %v6340_v8 }
 0x6c5   : > { %2868 = vmatpush1.bf16.msra.mxu0 %v6006_v15 }
 0x6c6   : > { %2869 = vmatprep.subr.bf16.mxu0 %v6010_v50  ;;  %2963 = vmatpush1.bf16.msra.mxu1 %v6346_v57 }
 0x6c7   : > { %2964 = vmatprep.subr.bf16.mxu1 %v6350_v44 }
 0x6c9   : > { %2870 = vmatpush1.bf16.msra.mxu0 %v7177_v45 }
 0x6ca   : > { %2871 = vmatprep.subr.bf16.mxu0 %v7178_v52  ;;  %2965 = vmatpush1.bf16.msra.mxu1 %v6356_v46 }
 0x6cb   : > { %2966 = vmatprep.subr.bf16.mxu1 %v6360_v2 }
 0x6cd   : > { %2872 = vmatpush1.bf16.msra.mxu0 %v7181_v13 }
 0x6ce   : > { %2873 = vmatprep.subr.bf16.mxu0 %v7182_v62  ;;  %2967 = vmatpush1.bf16.msra.mxu1 %v7183_v21  ;;  %v7239_v21 = vld [vmem:[#allocation49_spill] sm:$0xff] }
 0x6cf   : > { %2968 = vmatprep.subr.bf16.mxu1 %v7184_v26  ;;  %v7240_v26 = vld [vmem:[#allocation44_spill] sm:$0xff] }
 0x6d1   : > { %2874 = vmatpush1.bf16.msra.mxu0 %v7185_v16 }
 0x6d2   : > { %2875 = vmatprep.subr.bf16.mxu0 %v7186_v23  ;;  %2969 = vmatpush1.bf16.msra.mxu1 %v7187_v18  ;;  %v7241_v18 = vld [vmem:[#allocation46_spill] sm:$0xff] }
 0x6d3   : > { %2970 = vmatprep.subr.bf16.mxu1 %v7188_v5  ;;  %v7242_v5 = vld [vmem:[#allocation48_spill] sm:$0xff] }
 0x6d5   : > { %2876 = vmatpush1.bf16.msra.mxu0 %v7189_v3 }
 0x6d6   : > { %2877 = vmatprep.subr.bf16.mxu0 %v7190_v20  ;;  %2971 = vmatpush1.bf16.msra.mxu1 %v7191_v28  ;;  %v7243_v28 = vld [vmem:[#allocation50_spill] sm:$0xff] }
 0x6d7   : > { %2972 = vmatprep.subr.bf16.mxu1 %v7192_v32  ;;  %v7244_v32 = vld [vmem:[#allocation51_spill] sm:$0xff] }
 0x6d9   : > { %2878 = vmatpush1.bf16.msra.mxu0 %v7193_v38 }
 0x6da   : > { %2879 = vmatprep.subr.bf16.mxu0 %v7194_v42  ;;  %2973 = vmatpush1.bf16.msra.mxu1 %v7195_v63  ;;  %v7246_v63 = vld [vmem:[#allocation53_spill] sm:$0xff] }
 0x6db   : > { %2974 = vmatprep.subr.bf16.mxu1 %v7196_v14  ;;  %v7247_v14 = vld [vmem:[#allocation54_spill] sm:$0xff] }
 0x6dd   : > { %2880 = vmatpush1.bf16.msra.mxu0 %v7197_v58 }
 0x6de   : > { %2985 = vmatprep.subr.bf16.mxu0 %v7239_v21  ;;  %2975 = vmatpush1.bf16.msra.mxu1 %v7240_v26  ;;  %v7259_v21 = vld [vmem:[#allocation22_spill] sm:$0xff]  ;;  %v7260_v26 = vld [vmem:[#allocation23_spill] sm:$0xff] }
 0x6df   : > { %3026 = vmatprep.subr.bf16.mxu1 %v7241_v18  ;;  %v7261_v18 = vld [vmem:[#allocation37_spill] sm:$0xff] }
 0x6e0   : > { %2882 = vmatmul.mubr.bf16.vlgmr.msra.gmra.mrb[64].mxu0 %v6249_v11  ;;  %v7258_v11 = vld [vmem:[#allocation36_spill] sm:$0xff] }
 0x6e1   : > { %2986 = vmatpush1.bf16.msra.mxu0 %v7242_v5  ;;  %v7262_v5 = vld [vmem:[#allocation38_spill] sm:$0xff] }
 0x6e2   : > { %2987 = vmatprep.subr.bf16.mxu0 %v7243_v28  ;;  %v7263_v28 = vld [vmem:[#allocation24_spill] sm:$0xff] }
 0x6e5   : > { %2988 = vmatpush1.bf16.msra.mxu0 %v7244_v32  ;;  %v7264_v32 = vld [vmem:[#allocation25_spill] sm:$0xff] }
 0x6e6   : > { %2989 = vmatprep.subr.bf16.mxu0 %v7245_v60  ;;  %v7265_v60 = vld [vmem:[#allocation39_spill] sm:$0xff] }
 0x6e9   : > { %2990 = vmatpush1.bf16.msra.mxu0 %v7246_v63  ;;  %v7266_v63 = vld [vmem:[#allocation40_spill] sm:$0xff] }
 0x6ea   : > { %2991 = vmatprep.subr.bf16.mxu0 %v7247_v14  ;;  %v7267_v14 = vld [vmem:[#allocation41_spill] sm:$0xff] }
 0x6ed   : > { %2992 = vmatpush1.bf16.msra.mxu0 %v7248_v55  ;;  %v7268_v55 = vld [vmem:[#allocation91_spill] sm:$0xff] }
 0x6ee   : > { %2993 = vmatprep.subr.bf16.mxu0 %v7249_v4  ;;  %v7269_v4 = vld [vmem:[#allocation92_spill] sm:$0xff] }
 0x6f1   : > { %2994 = vmatpush1.bf16.msra.mxu0 %v7250_v6  ;;  %v7270_v6 = vld [vmem:[#allocation93_spill] sm:$0xff] }
 0x6f2   : > { %2995 = vmatprep.subr.bf16.mxu0 %v7251_v0  ;;  %v7271_v0 = vld [vmem:[#allocation94_spill] sm:$0xff] }
 0x6f5   : > { %2996 = vmatpush1.bf16.msra.mxu0 %v7252_v22  ;;  %v7272_v22 = vld [vmem:[#allocation100_spill] sm:$0xff] }
 0x6f6   : > { %2997 = vmatprep.subr.bf16.mxu0 %v7253_v59  ;;  %v4337_v59 = vld [vmem:[%s4616_s10 + $0x4] ss:$24 sps:$4 sm:$0xff]  }
 0x6f9   : > { %2998 = vmatpush1.bf16.msra.mxu0 %v7254_v27 }
 0x6fa   : > { %2999 = vmatprep.subr.bf16.mxu0 %v7255_v36 }
 0x6fd   : > { %3000 = vmatpush1.bf16.msra.mxu0 %v7256_v47  ;;  %v7273_v47 = vld [vmem:[#allocation65_spill] sm:$0xff] }
 0x6fe   : > { %3001 = vmatprep.subr.bf16.mxu0 %v7257_v56 }
 0x701   : > { %3002 = vmatpush1.bf16.msra.mxu0 %v7258_v11  ;;  %v7274_v11 = vld [vmem:[#allocation66_spill] sm:$0xff] }
 0x702   : > { %3003 = vmatprep.subr.bf16.mxu0 %v7259_v21 }
 0x705   : > { %3004 = vmatpush1.bf16.msra.mxu0 %v7260_v26 }
 0x706   : > { %3005 = vmatprep.subr.bf16.mxu0 %v7261_v18 }
 0x709   : > { %3006 = vmatpush1.bf16.msra.mxu0 %v7262_v5  ;;  %v7275_v5 = vld [vmem:[#allocation67_spill] sm:$0xff] }
 0x70a   : > { %3007 = vmatprep.subr.bf16.mxu0 %v7263_v28 }
 0x70d   : > { %3008 = vmatpush1.bf16.msra.mxu0 %v7264_v32  ;;  %v7276_v32 = vld [vmem:[#allocation68_spill] sm:$0xff] }
 0x70e   : > { %3009 = vmatprep.subr.bf16.mxu0 %v7265_v60 }
 0x711   : > { %3010 = vmatpush1.bf16.msra.mxu0 %v7266_v63 }
 0x712   : > { %3011 = vmatprep.subr.bf16.mxu0 %v7267_v14 }
 0x715   : > { %3012 = vmatpush1.bf16.msra.mxu0 %v7268_v55 }
 0x716   : > { %3013 = vmatprep.subr.bf16.mxu0 %v7269_v4 }
 0x719   : > { %3014 = vmatpush1.bf16.msra.mxu0 %v7270_v6 }
 0x71a   : > { %3015 = vmatprep.subr.bf16.mxu0 %v7271_v0 }
 0x71d   : > { %3016 = vmatpush1.bf16.msra.mxu0 %v7272_v22 }
 0x71e   : > { %3121 = vmatprep.subr.bf16.mxu0 %v4337_v59 }
 0x773   : > { %v2801_v27 = vpop.f32.mrb[60].mxu0  ;;  %v2842_v36 = vpop.f32.mrb[48].mxu1 }
 0x774   : > { %v2890_v56 = vadd.f32 %v2801_v27, %v7273_v47  ;;  %v2892_v21 = vadd.f32 %v2842_v36, %v7274_v11  ;;  %v2803_v26 = vpop.f32.mrb[61].mxu0  ;;  %v2844_v18 = vpop.f32.mrb[49].mxu1 }
 0x775   : > { %v2891_v28 = vadd.f32 %v2803_v26, %v7275_v5  ;;  %v2893_v60 = vadd.f32 %v2844_v18, %v7276_v32  ;;  %v2805_v63 = vpop.f32.mrb[62].mxu0  ;;  %v2846_v14 = vpop.f32.mrb[50].mxu1 }
 0x776   : > { %v2806_v55 = vpop.f32.mrb[63].mxu0  ;;  %v2847_v4 = vpop.f32.mrb[51].mxu1  ;;  %v3698_v6 = vmul.f32 -1.442695, %v2890_v56  ;;  %v3700_v58 = vmul.f32 -1.442695, %v2892_v21 }
 0x777   : > { %v3699_v0 = vmul.f32 -1.442695, %v2891_v28  ;;  %v3701_v27 = vmul.f32 -1.442695, %v2893_v60 }
 0x778   : > { %4158 = vpow2.f32 %v3698_v6 }
 0x779   : > { %4160 = vpow2.f32 %v3699_v0  ;;  %v7278_v0 = vld [vmem:[#allocation86_spill] sm:$0xff] }
 0x77a   : > { %4162 = vpow2.f32 %v3700_v58 }
 0x77b   : > { %4164 = vpow2.f32 %v3701_v27 }
 0x782   : > { %v4159_v59 = vpop.eup %4158 }
 0x783   : > { %v4161_v22 = vpop.eup %4160  ;;  %v2906_v47 = vadd.f32 1.0, %v4159_v59 }
 0x784   : > { %v2907_v36 = vadd.f32 1.0, %v4161_v22  ;;  %v4163_v11 = vpop.eup %4162  ;;  %v7277_v22 = vld [vmem:[#allocation85_spill] sm:$0xff] }
 0x785   : > { %4166 = vrcp.f32 %v2906_v47  ;;  %v4165_v18 = vpop.eup %4164  ;;  %v2908_v4 = vadd.f32 1.0, %v4163_v11 }
 0x786   : > { %4168 = vrcp.f32 %v2907_v36  ;;  %v2909_v6 = vadd.f32 1.0, %v4165_v18 }
 0x78f   : > { %v4167_v56 = vpop.eup %4166 }
 0x790   : > { %v4169_v14 = vpop.eup %4168 }
 0x7b3   : > { %v2883_v26 = vpop.f32.mrb[64].mxu0 }
 0x7b4   : > { %v2918_v5 = vadd.f32 %v2883_v26, %v5449_v17  ;;  %v2885_v32 = vpop.f32.mrb[65].mxu0 }
 0x7b5   : > { %v2919_v28 = vadd.f32 %v2885_v32, %v5453_v12  ;;  %v2887_v63 = vpop.f32.mrb[66].mxu0 }
 0x7b6   : > { %v2920_v55 = vmul.f32 %v4167_v56, %v2918_v5  ;;  %v2888_v21 = vpop.f32.mrb[67].mxu0  ;;  %v6441_v63 = vld [vmem:[%s4616_s10 + $0x10] ss:$24 sps:$4 sm:$0xff]  }
 0x7b7   : > { %v2921_v60 = vmul.f32 %v4169_v14, %v2919_v28  ;;  %v6445_v14 = vld [vmem:[%s4616_s10 + $0x44] ss:$24 sps:$4 sm:$0xff]   ;;  %v6455_v21 = vld [vmem:[%s4616_s10 + $0x74] ss:$24 sps:$4 sm:$0xff]  }
 0x7b8   : > { %v2922_v58 = vadd.f32 %v2920_v55, %v7277_v22  ;;  %v6451_v55 = vld [vmem:[%s4616_s10 + $0x40] ss:$24 sps:$4 sm:$0xff]  }
 0x7b9   : > { %v2923_v59 = vadd.f32 %v2921_v60, %v7278_v0  ;;  %v6461_v60 = vld [vmem:[%s4616_s10 + $0x70] ss:$24 sps:$4 sm:$0xff]   ;;  %v4385_v0 = vld [vmem:[%s4616_s10 + $0x24c] ss:$24 sps:$4 sm:$0xff]  }
 0x7ba   : > { %4170 = vtanh.f32 %v2922_v58  ;;  %v4382_v22 = vld [vmem:[%s4616_s10 + $0x1e8] ss:$24 sps:$4 sm:$0xff]   ;;  %v4383_v58 = vld [vmem:[%s4616_s10 + $0x21c] ss:$24 sps:$4 sm:$0xff]  }
 0x7bb   : > { %4172 = vtanh.f32 %v2923_v59  ;;  %v4386_v59 = vld [vmem:[%s4616_s10 + $0x248] ss:$24 sps:$4 sm:$0xff]  }
 0x7bc   : > { %4174 = vrcp.f32 %v2908_v4  ;;  %v6495_v4 = vld [vmem:[%s4616_s10 + $0x134] ss:$24 sps:$4 sm:$0xff]  }
 0x7bd   : > { %4176 = vrcp.f32 %v2909_v6  ;;  %v4384_v6 = vld [vmem:[%s4616_s10 + $0x218] ss:$24 sps:$4 sm:$0xff]  }
 0x7c4   : > { %v4171_v27 = vpop.eup %4170 }
 0x7c5   : > { %v4173_v47 = vpop.eup %4172  ;;  %v2926_v36 = vsub.f32 %v6239_v54, %v4171_v27 }
 0x7c6   : > { %v4175_v26 = vpop.eup %4174  ;;  %v2927_v5 = vsub.f32 %v6241_v49, %v4173_v47 }
 0x7c7   : > { %v4177_v32 = vpop.eup %4176  ;;  %v2928_v11 = vmul.f32 %v4175_v26, %v2926_v36  ;;  %v4389_v36 = vld [vmem:[%s4616_s10 + $0x2ac] ss:$24 sps:$4 sm:$0xff]   ;;  %v4390_v26 = vld [vmem:[%s4616_s10 + $0x2a8] ss:$24 sps:$4 sm:$0xff]  }
 0x7c8   : > { %v2929_v56 = vmul.f32 %v4177_v32, %v2927_v5  ;;  %v4391_v5 = vld [vmem:[%s4616_s10 + $0x2dc] ss:$24 sps:$4 sm:$0xff]  }
 0x7c9   : > { %v6426_v28 = vadd.f32 %v4171_v27, %v2928_v11  ;;  %v4387_v27 = vld [vmem:[%s4616_s10 + $0x27c] ss:$24 sps:$4 sm:$0xff]  }
 0x7ca   : > { %v6428_v18 = vadd.f32 %v4173_v47, %v2929_v56  ;;  %v4388_v47 = vld [vmem:[%s4616_s10 + $0x278] ss:$24 sps:$4 sm:$0xff]  }
 0x7cb   : > { %2933 = vst [vmem:[#allocation2 + $0x50] sm:$0xff] %v6426_v28  ;;  %v6436_v49 = vpack.c.bf16 %v6426_v28, %v6426_v28  ;;  %v7280_v32 = vld [vmem:[#allocation100_spill] sm:$0xff] }
 0x7cc   : > { %2934 = vst [vmem:[#allocation2 + $0x58] sm:$0xff] %v6428_v18  ;;  %v2943_v54 = vpack.c.bf16 %v6428_v18, %v6428_v18 }
 0x7ce   : > { %2976 = vmatprep.mubr.bf16.mxu1 %v2943_v54  ;;  %3017 = vmatprep.mubr.bf16.mxu0 %v2943_v54 }
 0x7cf   : > { %2977 = vmatmul.mubr.bf16.vlgmr.msra.gmra.mrb[52].mxu1 %v6436_v49  ;;  %3018 = vmatmul.mubr.bf16.vlgmr.msra.gmra.mrb[68].mxu0 %v6436_v49 }
 0x7d0   : > { %3027 = vmatpush1.bf16.msra.mxu1 %v6441_v63  ;;  %3058 = vmatprep.mubr.bf16.mxu1 %v2943_v54  ;;  %v7281_v54 = vld [vmem:[#allocation69_spill] sm:$0xff] }
 0x7d1   : > { %3028 = vmatprep.subr.bf16.mxu1 %v6445_v14  ;;  %3122 = vmatpush1.bf16.msra.mxu0 %v6256_v53  ;;  %v6465_v53 = vld [vmem:[%s4616_s10 + $0xa4] ss:$24 sps:$4 sm:$0xff]  }
 0x7d2   : > { %3123 = vmatprep.subr.bf16.mxu0 %v6260_v51  ;;  %v6471_v51 = vld [vmem:[%s4616_s10 + $0xa0] ss:$24 sps:$4 sm:$0xff]  }
 0x7d4   : > { %3029 = vmatpush1.bf16.msra.mxu1 %v6451_v55 }
 0x7d5   : > { %3030 = vmatprep.subr.bf16.mxu1 %v6455_v21  ;;  %3124 = vmatpush1.bf16.msra.mxu0 %v6266_v48  ;;  %v6475_v48 = vld [vmem:[%s4616_s10 + $0xd4] ss:$24 sps:$4 sm:$0xff]  }
 0x7d6   : > { %3125 = vmatprep.subr.bf16.mxu0 %v6270_v25  ;;  %v6481_v25 = vld [vmem:[%s4616_s10 + $0xd0] ss:$24 sps:$4 sm:$0xff]  }
 0x7d8   : > { %3031 = vmatpush1.bf16.msra.mxu1 %v6461_v60 }
 0x7d9   : > { %3032 = vmatprep.subr.bf16.mxu1 %v6465_v53  ;;  %3126 = vmatpush1.bf16.msra.mxu0 %v6276_v29  ;;  %v6485_v29 = vld [vmem:[%s4616_s10 + $0x104] ss:$24 sps:$4 sm:$0xff]  }
 0x7da   : > { %3127 = vmatprep.subr.bf16.mxu0 %v6280_v31  ;;  %v6491_v31 = vld [vmem:[%s4616_s10 + $0x100] ss:$24 sps:$4 sm:$0xff]  }
 0x7dc   : > { %3033 = vmatpush1.bf16.msra.mxu1 %v6471_v51 }
 0x7dd   : > { %3034 = vmatprep.subr.bf16.mxu1 %v6475_v48  ;;  %3128 = vmatpush1.bf16.msra.mxu0 %v6286_v35  ;;  %v6501_v35 = vld [vmem:[%s4616_s10 + $0x130] ss:$24 sps:$4 sm:$0xff]  }
 0x7de   : > { %3129 = vmatprep.subr.bf16.mxu0 %v6290_v41  ;;  %v4367_v41 = vld [vmem:[%s4616_s10 + $0x9c] ss:$24 sps:$4 sm:$0xff]  }
 0x7e0   : > { %3035 = vmatpush1.bf16.msra.mxu1 %v6481_v25 }
 0x7e1   : > { %3036 = vmatprep.subr.bf16.mxu1 %v6485_v29  ;;  %3130 = vmatpush1.bf16.msra.mxu0 %v6296_v43  ;;  %v4368_v43 = vld [vmem:[%s4616_s10 + $0x98] ss:$24 sps:$4 sm:$0xff]  }
 0x7e2   : > { %3131 = vmatprep.subr.bf16.mxu0 %v6300_v19  ;;  %v4369_v19 = vld [vmem:[%s4616_s10 + $0xcc] ss:$24 sps:$4 sm:$0xff]  }
 0x7e4   : > { %3037 = vmatpush1.bf16.msra.mxu1 %v6491_v31 }
 0x7e5   : > { %3038 = vmatprep.subr.bf16.mxu1 %v6495_v4  ;;  %3132 = vmatpush1.bf16.msra.mxu0 %v6306_v30  ;;  %v4370_v30 = vld [vmem:[%s4616_s10 + $0xc8] ss:$24 sps:$4 sm:$0xff]  }
 0x7e6   : > { %3133 = vmatprep.subr.bf16.mxu0 %v6310_v33  ;;  %v4371_v33 = vld [vmem:[%s4616_s10 + $0xfc] ss:$24 sps:$4 sm:$0xff]  }
 0x7e8   : > { %3039 = vmatpush1.bf16.msra.mxu1 %v6501_v35 }
 0x7e9   : > { %3040 = vmatprep.subr.bf16.mxu1 %v5980_v9  ;;  %3134 = vmatpush1.bf16.msra.mxu0 %v6316_v37  ;;  %v4351_v9 = vld [vmem:[%s4616_s10 + $0x210] ss:$24 sps:$4 sm:$0xff]  }
 0x7ea   : > { %3135 = vmatprep.subr.bf16.mxu0 %v6320_v39  ;;  %v4372_v37 = vld [vmem:[%s4616_s10 + $0xf8] ss:$24 sps:$4 sm:$0xff]   ;;  %v4373_v39 = vld [vmem:[%s4616_s10 + $0x12c] ss:$24 sps:$4 sm:$0xff]  }
 0x7ec   : > { %3041 = vmatpush1.bf16.msra.mxu1 %v5986_v24  ;;  %v4352_v24 = vld [vmem:[%s4616_s10 + $0x244] ss:$24 sps:$4 sm:$0xff]  }
 0x7ed   : > { %3042 = vmatprep.subr.bf16.mxu1 %v5990_v40  ;;  %3136 = vmatpush1.bf16.msra.mxu0 %v6326_v61  ;;  %v4353_v40 = vld [vmem:[%s4616_s10 + $0x240] ss:$24 sps:$4 sm:$0xff]  }
 0x7ee   : > { %3137 = vmatprep.subr.bf16.mxu0 %v6330_v1  ;;  %v4374_v61 = vld [vmem:[%s4616_s10 + $0x128] ss:$24 sps:$4 sm:$0xff]   ;;  %v4375_v1 = vld [vmem:[%s4616_s10 + $0x15c] ss:$24 sps:$4 sm:$0xff]  }
 0x7f0   : > { %3043 = vmatpush1.bf16.msra.mxu1 %v5996_v7  ;;  %v4354_v7 = vld [vmem:[%s4616_s10 + $0x274] ss:$24 sps:$4 sm:$0xff]  }
 0x7f1   : > { %3044 = vmatprep.subr.bf16.mxu1 %v6000_v34  ;;  %3138 = vmatpush1.bf16.msra.mxu0 %v6336_v10  ;;  %v4355_v34 = vld [vmem:[%s4616_s10 + $0x270] ss:$24 sps:$4 sm:$0xff]  }
 0x7f2   : > { %3139 = vmatprep.subr.bf16.mxu0 %v6340_v8  ;;  %v4376_v10 = vld [vmem:[%s4616_s10 + $0x158] ss:$24 sps:$4 sm:$0xff]   ;;  %v4377_v8 = vld [vmem:[%s4616_s10 + $0x18c] ss:$24 sps:$4 sm:$0xff]  }
 0x7f4   : > { %3045 = vmatpush1.bf16.msra.mxu1 %v6006_v15  ;;  %v4356_v15 = vld [vmem:[%s4616_s10 + $0x2a4] ss:$24 sps:$4 sm:$0xff]  }
 0x7f5   : > { %3046 = vmatprep.subr.bf16.mxu1 %v6010_v50  ;;  %3140 = vmatpush1.bf16.msra.mxu0 %v6346_v57  ;;  %v4357_v50 = vld [vmem:[%s4616_s10 + $0x2a0] ss:$24 sps:$4 sm:$0xff]  }
 0x7f6   : > { %3141 = vmatprep.subr.bf16.mxu0 %v6350_v44  ;;  %v4378_v57 = vld [vmem:[%s4616_s10 + $0x188] ss:$24 sps:$4 sm:$0xff]   ;;  %v4379_v44 = vld [vmem:[%s4616_s10 + $0x1bc] ss:$24 sps:$4 sm:$0xff]  }
 0x7f8   : > { %3047 = vmatpush1.bf16.msra.mxu1 %v7177_v45  ;;  %v4358_v45 = vld [vmem:[%s4616_s10 + $0x2d4] ss:$24 sps:$4 sm:$0xff]  }
 0x7f9   : > { %3048 = vmatprep.subr.bf16.mxu1 %v7178_v52  ;;  %3142 = vmatpush1.bf16.msra.mxu0 %v6356_v46  ;;  %v7279_v52 = vld [vmem:[#allocation99_spill] sm:$0xff]  ;;  %v4380_v46 = vld [vmem:[%s4616_s10 + $0x1b8] ss:$24 sps:$4 sm:$0xff]  }
 0x7fa   : > { %3143 = vmatprep.subr.bf16.mxu0 %v6360_v2  ;;  %v4381_v2 = vld [vmem:[%s4616_s10 + $0x1ec] ss:$24 sps:$4 sm:$0xff]  }
 0x7fc   : > { %3049 = vmatpush1.bf16.msra.mxu1 %v7181_v13  ;;  %v4359_v13 = vld [vmem:[%s4616_s10 + $0xc] ss:$24 sps:$4 sm:$0xff]  }
 0x7fd   : > { %3050 = vmatprep.subr.bf16.mxu1 %v7182_v62  ;;  %3144 = vmatpush1.bf16.msra.mxu0 %v4351_v9  ;;  %v4360_v62 = vld [vmem:[%s4616_s10 + $0x2d0] ss:$24 sps:$4 sm:$0xff]   ;;  %v7282_v9 = vld [vmem:[#allocation70_spill] sm:$0xff] }
 0x7fe   : > { %3145 = vmatprep.subr.bf16.mxu0 %v4352_v24 }
 0x800   : > { %3051 = vmatpush1.bf16.msra.mxu1 %v7185_v16  ;;  %v4361_v16 = vld [vmem:[%s4616_s10 + $0x14] ss:$24 sps:$4 sm:$0xff]  }
 0x801   : > { %3052 = vmatprep.subr.bf16.mxu1 %v7186_v23  ;;  %3146 = vmatpush1.bf16.msra.mxu0 %v4353_v40  ;;  %v4362_v23 = vld [vmem:[%s4616_s10 + $0x8] ss:$24 sps:$4 sm:$0xff]  }
 0x802   : > { %3147 = vmatprep.subr.bf16.mxu0 %v4354_v7 }
 0x804   : > { %3053 = vmatpush1.bf16.msra.mxu1 %v7189_v3  ;;  %v4363_v3 = vld [vmem:[%s4616_s10 + $0x3c] ss:$24 sps:$4 sm:$0xff]  }
 0x805   : > { %3054 = vmatprep.subr.bf16.mxu1 %v7190_v20  ;;  %3148 = vmatpush1.bf16.msra.mxu0 %v4355_v34  ;;  %v4364_v20 = vld [vmem:[%s4616_s10 + $0x38] ss:$24 sps:$4 sm:$0xff]   ;;  %v7283_v34 = vld [vmem:[#allocation71_spill] sm:$0xff] }
 0x806   : > { %3149 = vmatprep.subr.bf16.mxu0 %v4356_v15 }
 0x808   : > { %3055 = vmatpush1.bf16.msra.mxu1 %v7193_v38  ;;  %v4365_v38 = vld [vmem:[%s4616_s10 + $0x6c] ss:$24 sps:$4 sm:$0xff]  }
 0x809   : > { %3056 = vmatprep.subr.bf16.mxu1 %v7194_v42  ;;  %3150 = vmatpush1.bf16.msra.mxu0 %v4357_v50  ;;  %v4366_v42 = vld [vmem:[%s4616_s10 + $0x68] ss:$24 sps:$4 sm:$0xff]   ;;  %v7284_v50 = vld [vmem:[#allocation72_spill] sm:$0xff] }
 0x80a   : > { %3151 = vmatprep.subr.bf16.mxu0 %v4358_v45 }
 0x80c   : > { %3057 = vmatpush1.bf16.msra.mxu1 %v7279_v52 }
 0x80d   : > { %3162 = vmatprep.subr.bf16.mxu1 %v4359_v13  ;;  %3152 = vmatpush1.bf16.msra.mxu0 %v4360_v62 }
 0x80e   : > { %3203 = vmatprep.subr.bf16.mxu0 %v4361_v16 }
 0x80f   : > { %3059 = vmatmul.mubr.bf16.vlgmr.msra.gmra.mrb[56].mxu1 %v6436_v49 }
 0x810   : > { %3163 = vmatpush1.bf16.msra.mxu1 %v4362_v23 }
 0x811   : > { %3164 = vmatprep.subr.bf16.mxu1 %v4363_v3 }
 0x814   : > { %3165 = vmatpush1.bf16.msra.mxu1 %v4364_v20 }
 0x815   : > { %3166 = vmatprep.subr.bf16.mxu1 %v4365_v38 }
 0x818   : > { %3167 = vmatpush1.bf16.msra.mxu1 %v4366_v42 }
 0x819   : > { %3168 = vmatprep.subr.bf16.mxu1 %v4367_v41 }
 0x81c   : > { %3169 = vmatpush1.bf16.msra.mxu1 %v4368_v43 }
 0x81d   : > { %3170 = vmatprep.subr.bf16.mxu1 %v4369_v19 }
 0x820   : > { %3171 = vmatpush1.bf16.msra.mxu1 %v4370_v30 }
 0x821   : > { %3172 = vmatprep.subr.bf16.mxu1 %v4371_v33 }
 0x824   : > { %3173 = vmatpush1.bf16.msra.mxu1 %v4372_v37 }
 0x825   : > { %3174 = vmatprep.subr.bf16.mxu1 %v4373_v39 }
 0x828   : > { %3175 = vmatpush1.bf16.msra.mxu1 %v4374_v61 }
 0x829   : > { %3176 = vmatprep.subr.bf16.mxu1 %v4375_v1 }
 0x82c   : > { %3177 = vmatpush1.bf16.msra.mxu1 %v4376_v10 }
 0x82d   : > { %3178 = vmatprep.subr.bf16.mxu1 %v4377_v8 }
 0x830   : > { %3179 = vmatpush1.bf16.msra.mxu1 %v4378_v57 }
 0x831   : > { %3180 = vmatprep.subr.bf16.mxu1 %v4379_v44 }
 0x834   : > { %3181 = vmatpush1.bf16.msra.mxu1 %v4380_v46 }
 0x835   : > { %3182 = vmatprep.subr.bf16.mxu1 %v4381_v2 }
 0x838   : > { %3183 = vmatpush1.bf16.msra.mxu1 %v4382_v22 }
 0x839   : > { %3184 = vmatprep.subr.bf16.mxu1 %v4383_v58  ;;  %v7285_v58 = vld [vmem:[#allocation87_spill] sm:$0xff] }
 0x83c   : > { %3185 = vmatpush1.bf16.msra.mxu1 %v4384_v6 }
 0x83d   : > { %3186 = vmatprep.subr.bf16.mxu1 %v4385_v0 }
 0x840   : > { %3187 = vmatpush1.bf16.msra.mxu1 %v4386_v59  ;;  %v7286_v59 = vld [vmem:[#allocation88_spill] sm:$0xff] }
 0x841   : > { %3188 = vmatprep.subr.bf16.mxu1 %v4387_v27 }
 0x844   : > { %3189 = vmatpush1.bf16.msra.mxu1 %v4388_v47 }
 0x845   : > { %3190 = vmatprep.subr.bf16.mxu1 %v4389_v36 }
 0x848   : > { %3191 = vmatpush1.bf16.msra.mxu1 %v4390_v26 }
 0x849   : > { %3192 = vmatprep.subr.bf16.mxu1 %v4391_v5 }
 0x84c   : > { %3193 = vmatpush1.bf16.msra.mxu1 %v7280_v32 }
 0x8a2   : > { %v2978_v11 = vpop.f32.mrb[52].mxu1  ;;  %v3019_v56 = vpop.f32.mrb[68].mxu0 }
 0x8a3   : > { %v3067_v49 = vadd.f32 %v2978_v11, %v7281_v54  ;;  %v3069_v24 = vadd.f32 %v3019_v56, %v7282_v9  ;;  %v2980_v40 = vpop.f32.mrb[53].mxu1  ;;  %v3021_v7 = vpop.f32.mrb[69].mxu0 }
 0x8a4   : > { %v3068_v15 = vadd.f32 %v2980_v40, %v7283_v34  ;;  %v3070_v45 = vadd.f32 %v3021_v7, %v7284_v50  ;;  %v2982_v52 = vpop.f32.mrb[54].mxu1  ;;  %v3023_v13 = vpop.f32.mrb[70].mxu0  ;;  %v4406_v40 = vld [vmem:[%s4616_s10 + $0x2b4] ss:$24 sps:$4 sm:$0xff]   ;;  %v4407_v7 = vld [vmem:[%s4616_s10 + $0x2b0] ss:$24 sps:$4 sm:$0xff]  }
 0x8a5   : > { %v2983_v62 = vpop.f32.mrb[55].mxu1  ;;  %v3024_v16 = vpop.f32.mrb[71].mxu0  ;;  %v3702_v23 = vmul.f32 -1.442695, %v3067_v49  ;;  %v3704_v42 = vmul.f32 -1.442695, %v3069_v24 }
 0x8a6   : > { %v3703_v3 = vmul.f32 -1.442695, %v3068_v15  ;;  %v3705_v41 = vmul.f32 -1.442695, %v3070_v45  ;;  %v4408_v34 = vld [vmem:[%s4616_s10 + $0x2e4] ss:$24 sps:$4 sm:$0xff]  }
 0x8a7   : > { %4178 = vpow2.f32 %v3702_v23  ;;  %v4409_v15 = vld [vmem:[%s4616_s10 + $0x2e0] ss:$24 sps:$4 sm:$0xff]  }
 0x8a8   : > { %4180 = vpow2.f32 %v3703_v3  ;;  %v7287_v52 = vld [vmem:[#allocation73_spill] sm:$0xff]  ;;  %v7288_v62 = vld [vmem:[#allocation74_spill] sm:$0xff] }
 0x8a9   : > { %4182 = vpow2.f32 %v3704_v42  ;;  %v7290_v42 = vld [vmem:[#allocation76_spill] sm:$0xff] }
 0x8aa   : > { %4184 = vpow2.f32 %v3705_v41 }
 0x8b1   : > { %v4179_v20 = vpop.eup %4178 }
 0x8b2   : > { %v4181_v38 = vpop.eup %4180  ;;  %v3083_v43 = vadd.f32 1.0, %v4179_v20  ;;  %v7289_v20 = vld [vmem:[#allocation75_spill] sm:$0xff] }
 0x8b3   : > { %v3084_v19 = vadd.f32 1.0, %v4181_v38  ;;  %v4183_v30 = vpop.eup %4182 }
 0x8b4   : > { %4186 = vrcp.f32 %v3083_v43  ;;  %v4185_v37 = vpop.eup %4184  ;;  %v3085_v22 = vadd.f32 1.0, %v4183_v30 }
 0x8b5   : > { %4188 = vrcp.f32 %v3084_v19  ;;  %v3086_v0 = vadd.f32 1.0, %v4185_v37 }
 0x8be   : > { %v4187_v1 = vpop.eup %4186 }
 0x8bf   : > { %v4189_v57 = vpop.eup %4188 }
 0x8e2   : > { %v3060_v33 = vpop.f32.mrb[56].mxu1 }
 0x8e3   : > { %v3095_v39 = vadd.f32 %v3060_v33, %v5449_v17  ;;  %v3062_v61 = vpop.f32.mrb[57].mxu1 }
 0x8e4   : > { %v3096_v10 = vadd.f32 %v3062_v61, %v5453_v12  ;;  %v3064_v8 = vpop.f32.mrb[58].mxu1 }
 0x8e5   : > { %v3097_v44 = vmul.f32 %v4187_v1, %v3095_v39  ;;  %v3065_v46 = vpop.f32.mrb[59].mxu1 }
 0x8e6   : > { %v3098_v2 = vmul.f32 %v4189_v57, %v3096_v10 }
 0x8e7   : > { %v3099_v6 = vadd.f32 %v3097_v44, %v7285_v58 }
 0x8e8   : > { %v3100_v27 = vadd.f32 %v3098_v2, %v7286_v59 }
 0x8e9   : > { %4190 = vtanh.f32 %v3099_v6 }
 0x8ea   : > { %4192 = vtanh.f32 %v3100_v27 }
 0x8eb   : > { %4194 = vrcp.f32 %v3085_v22 }
 0x8ec   : > { %4196 = vrcp.f32 %v3086_v0 }
 0x8f3   : > { %v4191_v47 = vpop.eup %4190 }
 0x8f4   : > { %v4193_v36 = vpop.eup %4192  ;;  %v3103_v26 = vsub.f32 %v6426_v28, %v4191_v47 }
 0x8f5   : > { %v4195_v5 = vpop.eup %4194  ;;  %v3104_v32 = vsub.f32 %v6428_v18, %v4193_v36  ;;  %v4392_v18 = vld [vmem:[%s4616_s10 + $0x164] ss:$24 sps:$4 sm:$0xff]  }
 0x8f6   : > { %v4197_v11 = vpop.eup %4196  ;;  %v3105_v56 = vmul.f32 %v4195_v5, %v3103_v26 }
 0x8f7   : > { %v3106_v54 = vmul.f32 %v4197_v11, %v3104_v32  ;;  %v7291_v11 = vld [vmem:[#allocation89_spill] sm:$0xff] }
 0x8f8   : > { %v6585_v49 = vadd.f32 %v4191_v47, %v3105_v56 }
 0x8f9   : > { %v6587_v9 = vadd.f32 %v4193_v36, %v3106_v54 }
 0x8fa   : > { %3110 = vst [vmem:[#allocation2 + $0x60] sm:$0xff] %v6585_v49  ;;  %v3119_v28 = vpack.c.bf16 %v6585_v49, %v6585_v49 }
 0x8fb   : > { %3111 = vst [vmem:[#allocation2 + $0x68] sm:$0xff] %v6587_v9  ;;  %v3120_v24 = vpack.c.bf16 %v6587_v9, %v6587_v9 }
 0x8fd   : > { %3153 = vmatprep.mubr.bf16.mxu0 %v3120_v24  ;;  %3194 = vmatprep.mubr.bf16.mxu1 %v3120_v24 }
 0x8fe   : > { %3154 = vmatmul.mubr.bf16.vlgmr.msra.gmra.mrb[72].mxu0 %v3119_v28  ;;  %3195 = vmatmul.mubr.bf16.vlgmr.msra.gmra.mrb[60].mxu1 %v3119_v28 }
 0x8ff   : > { %3204 = vmatpush1.bf16.msra.mxu0 %v6441_v63  ;;  %3235 = vmatprep.mubr.bf16.mxu0 %v3120_v24  ;;  %v4393_v63 = vld [vmem:[%s4616_s10 + $0x160] ss:$24 sps:$4 sm:$0xff]  }
 0x900   : > { %3205 = vmatprep.subr.bf16.mxu0 %v6445_v14  ;;  %v4394_v14 = vld [vmem:[%s4616_s10 + $0x194] ss:$24 sps:$4 sm:$0xff]   ;;  %v7292_v24 = vld [vmem:[#allocation90_spill] sm:$0xff] }
 0x903   : > { %3206 = vmatpush1.bf16.msra.mxu0 %v6451_v55  ;;  %v4395_v55 = vld [vmem:[%s4616_s10 + $0x190] ss:$24 sps:$4 sm:$0xff]  }
 0x904   : > { %3207 = vmatprep.subr.bf16.mxu0 %v6455_v21  ;;  %v4396_v21 = vld [vmem:[%s4616_s10 + $0x1c4] ss:$24 sps:$4 sm:$0xff]  }
 0x907   : > { %3208 = vmatpush1.bf16.msra.mxu0 %v6461_v60  ;;  %v4397_v60 = vld [vmem:[%s4616_s10 + $0x1c0] ss:$24 sps:$4 sm:$0xff]  }
 0x908   : > { %3209 = vmatprep.subr.bf16.mxu0 %v6465_v53  ;;  %v4398_v53 = vld [vmem:[%s4616_s10 + $0x1f4] ss:$24 sps:$4 sm:$0xff]  }
 0x90b   : > { %3210 = vmatpush1.bf16.msra.mxu0 %v6471_v51  ;;  %v4399_v51 = vld [vmem:[%s4616_s10 + $0x1f0] ss:$24 sps:$4 sm:$0xff]  }
 0x90c   : > { %3211 = vmatprep.subr.bf16.mxu0 %v6475_v48  ;;  %v4400_v48 = vld [vmem:[%s4616_s10 + $0x224] ss:$24 sps:$4 sm:$0xff]  }
 0x90f   : > { %3212 = vmatpush1.bf16.msra.mxu0 %v6481_v25  ;;  %v4401_v25 = vld [vmem:[%s4616_s10 + $0x220] ss:$24 sps:$4 sm:$0xff]  }
 0x910   : > { %3213 = vmatprep.subr.bf16.mxu0 %v6485_v29  ;;  %v4402_v29 = vld [vmem:[%s4616_s10 + $0x254] ss:$24 sps:$4 sm:$0xff]  }
 0x913   : > { %3214 = vmatpush1.bf16.msra.mxu0 %v6491_v31  ;;  %v4403_v31 = vld [vmem:[%s4616_s10 + $0x250] ss:$24 sps:$4 sm:$0xff]  }
 0x914   : > { %3215 = vmatprep.subr.bf16.mxu0 %v6495_v4  ;;  %v4404_v4 = vld [vmem:[%s4616_s10 + $0x284] ss:$24 sps:$4 sm:$0xff]  }
 0x917   : > { %3216 = vmatpush1.bf16.msra.mxu0 %v6501_v35  ;;  %v4405_v35 = vld [vmem:[%s4616_s10 + $0x280] ss:$24 sps:$4 sm:$0xff]  }
 0x918   : > { %3217 = vmatprep.subr.bf16.mxu0 %v4392_v18 }
 0x91b   : > { %3218 = vmatpush1.bf16.msra.mxu0 %v4393_v63 }
 0x91c   : > { %3219 = vmatprep.subr.bf16.mxu0 %v4394_v14 }
 0x91f   : > { %3220 = vmatpush1.bf16.msra.mxu0 %v4395_v55 }
 0x920   : > { %3221 = vmatprep.subr.bf16.mxu0 %v4396_v21 }
 0x923   : > { %3222 = vmatpush1.bf16.msra.mxu0 %v4397_v60 }
 0x924   : > { %3223 = vmatprep.subr.bf16.mxu0 %v4398_v53 }
 0x927   : > { %3224 = vmatpush1.bf16.msra.mxu0 %v4399_v51 }
 0x928   : > { %3225 = vmatprep.subr.bf16.mxu0 %v4400_v48  ;;  %v3295_v48 = vld [vmem:[#allocation2] sm:$0xff] (!%p3710_p12) }
 0x929   : > { %3311 = vst [vmem:[#allocation4] sm:$0xff] (!%p3710_p12), %v3295_v48 }
 0x92b   : > { %3226 = vmatpush1.bf16.msra.mxu0 %v4401_v25  ;;  %v3296_v25 = vld [vmem:[#allocation2 + $0x8] sm:$0xff] (!%p3710_p12) }
 0x92c   : > { %3227 = vmatprep.subr.bf16.mxu0 %v4402_v29  ;;  %v3297_v29 = vld [vmem:[#allocation2 + $0x10] sm:$0xff] (!%p3710_p12)  ;;  %3312 = vst [vmem:[#allocation4 + $0x8] sm:$0xff] (!%p3710_p12), %v3296_v25 }
 0x92d   : > { %3313 = vst [vmem:[#allocation4 + $0x10] sm:$0xff] (!%p3710_p12), %v3297_v29 }
 0x92f   : > { %3228 = vmatpush1.bf16.msra.mxu0 %v4403_v31  ;;  %v3300_v31 = vld [vmem:[#allocation2 + $0x28] sm:$0xff] (!%p3710_p12) }
 0x930   : > { %3229 = vmatprep.subr.bf16.mxu0 %v4404_v4  ;;  %3316 = vst [vmem:[#allocation4 + $0x28] sm:$0xff] (!%p3710_p12), %v3300_v31  ;;  %v3301_v4 = vld [vmem:[#allocation2 + $0x30] sm:$0xff] (!%p3710_p12) }
 0x931   : > { %3317 = vst [vmem:[#allocation4 + $0x30] sm:$0xff] (!%p3710_p12), %v3301_v4 }
 0x933   : > { %3230 = vmatpush1.bf16.msra.mxu0 %v4405_v35  ;;  %v3302_v35 = vld [vmem:[#allocation2 + $0x38] sm:$0xff] (!%p3710_p12) }
 0x934   : > { %3231 = vmatprep.subr.bf16.mxu0 %v4406_v40  ;;  %v3303_v40 = vld [vmem:[#allocation2 + $0x40] sm:$0xff] (!%p3710_p12)  ;;  %3318 = vst [vmem:[#allocation4 + $0x38] sm:$0xff] (!%p3710_p12), %v3302_v35 }
 0x935   : > { %3319 = vst [vmem:[#allocation4 + $0x40] sm:$0xff] (!%p3710_p12), %v3303_v40 }
 0x937   : > { %3232 = vmatpush1.bf16.msra.mxu0 %v4407_v7  ;;  %v3304_v7 = vld [vmem:[#allocation2 + $0x48] sm:$0xff] (!%p3710_p12) }
 0x938   : > { %3233 = vmatprep.subr.bf16.mxu0 %v4408_v34  ;;  %v3305_v34 = vld [vmem:[#allocation2 + $0x50] sm:$0xff] (!%p3710_p12)  ;;  %3320 = vst [vmem:[#allocation4 + $0x48] sm:$0xff] (!%p3710_p12), %v3304_v7 }
 0x939   : > { %3321 = vst [vmem:[#allocation4 + $0x50] sm:$0xff] (!%p3710_p12), %v3305_v34 }
 0x93b   : > { %3234 = vmatpush1.bf16.msra.mxu0 %v4409_v15  ;;  %v3306_v15 = vld [vmem:[#allocation2 + $0x58] sm:$0xff] (!%p3710_p12) }
 0x93c   : > { %3322 = vst [vmem:[#allocation4 + $0x58] sm:$0xff] (!%p3710_p12), %v3306_v15 }
 0x93e   : > { %3236 = vmatmul.mubr.bf16.vlgmr.msra.gmra.mrb[76].mxu0 %v3119_v28 }
 0x9d1   : > { %v3155_v50 = vpop.f32.mrb[72].mxu0  ;;  %v3196_v45 = vpop.f32.mrb[60].mxu1 }
 0x9d2   : > { %v3244_v13 = vadd.f32 %v3155_v50, %v7287_v52  ;;  %v3246_v16 = vadd.f32 %v3196_v45, %v7288_v62  ;;  %v3157_v23 = vpop.f32.mrb[73].mxu0  ;;  %v3198_v3 = vpop.f32.mrb[61].mxu1  ;;  %v3307_v50 = vld [vmem:[#allocation2 + $0x60] sm:$0xff] (!%p3710_p12)  ;;  %v3308_v45 = vld [vmem:[#allocation2 + $0x68] sm:$0xff] (!%p3710_p12) }
 0x9d3   : > { %v3245_v38 = vadd.f32 %v3157_v23, %v7289_v20  ;;  %v3247_v41 = vadd.f32 %v3198_v3, %v7290_v42  ;;  %v3159_v43 = vpop.f32.mrb[74].mxu0  ;;  %v3200_v19 = vpop.f32.mrb[62].mxu1  ;;  %3323 = vst [vmem:[#allocation4 + $0x60] sm:$0xff] (!%p3710_p12), %v3307_v50  ;;  %3324 = vst [vmem:[#allocation4 + $0x68] sm:$0xff] (!%p3710_p12), %v3308_v45 }
 0x9d4   : > { %v3160_v30 = vpop.f32.mrb[75].mxu0  ;;  %v3201_v33 = vpop.f32.mrb[63].mxu1  ;;  %v3706_v37 = vmul.f32 -1.442695, %v3244_v13  ;;  %v3708_v10 = vmul.f32 -1.442695, %v3246_v16 }
 0x9d5   : > { %v3707_v39 = vmul.f32 -1.442695, %v3245_v38  ;;  %v3709_v8 = vmul.f32 -1.442695, %v3247_v41 }
 0x9d6   : > { %4198 = vpow2.f32 %v3706_v37 }
 0x9d7   : > { %4200 = vpow2.f32 %v3707_v39 }
 0x9d8   : > { %4202 = vpow2.f32 %v3708_v10 }
 0x9d9   : > { %4204 = vpow2.f32 %v3709_v8 }
 0x9e0   : > { %v4199_v61 = vpop.eup %4198 }
 0x9e1   : > { %v4201_v1 = vpop.eup %4200  ;;  %v3260_v57 = vadd.f32 1.0, %v4199_v61 }
 0x9e2   : > { %v3261_v44 = vadd.f32 1.0, %v4201_v1  ;;  %v4203_v46 = vpop.eup %4202 }
 0x9e3   : > { %4206 = vrcp.f32 %v3260_v57  ;;  %v4205_v22 = vpop.eup %4204  ;;  %v3262_v32 = vadd.f32 1.0, %v4203_v46 }
 0x9e4   : > { %4208 = vrcp.f32 %v3261_v44  ;;  %v3263_v54 = vadd.f32 1.0, %v4205_v22 }
 0x9ed   : > { %v4207_v0 = vpop.eup %4206 }
 0x9ee   : > { %v4209_v47 = vpop.eup %4208 }
 0xa11   : > { %v3237_v2 = vpop.f32.mrb[76].mxu0 }
 0xa12   : > { %v3272_v58 = vadd.f32 %v3237_v2, %v5449_v17  ;;  %v3239_v6 = vpop.f32.mrb[77].mxu0 }
 0xa13   : > { %v3273_v59 = vadd.f32 %v3239_v6, %v5453_v12  ;;  %v3241_v27 = vpop.f32.mrb[78].mxu0 }
 0xa14   : > { %v3274_v36 = vmul.f32 %v4207_v0, %v3272_v58  ;;  %v3242_v26 = vpop.f32.mrb[79].mxu0 }
 0xa15   : > { %v3275_v5 = vmul.f32 %v4209_v47, %v3273_v59 }
 0xa16   : > { %v3276_v56 = vadd.f32 %v3274_v36, %v7291_v11 }
 0xa17   : > { %v3277_v28 = vadd.f32 %v3275_v5, %v7292_v24 }
 0xa18   : > { %4210 = vtanh.f32 %v3276_v56 }
 0xa19   : > { %4212 = vtanh.f32 %v3277_v28 }
 0xa1a   : > { %4214 = vrcp.f32 %v3262_v32 }
 0xa1b   : > { %4216 = vrcp.f32 %v3263_v54 }
 0xa22   : > { %v4211_v17 = vpop.eup %4210 }
 0xa23   : > { %v4213_v18 = vpop.eup %4212  ;;  %v3280_v12 = vsub.f32 %v6585_v49, %v4211_v17  ;;  %v3298_v49 = vld [vmem:[#allocation2 + $0x18] sm:$0xff] (!%p3710_p12) }
 0xa24   : > { %v4215_v63 = vpop.eup %4214  ;;  %v3281_v14 = vsub.f32 %v6587_v9, %v4213_v18  ;;  %3294 = sbr.rel (%p3710_p12) target bundleno = 2611 (0xa33), region = 52  ;;  %v3299_v9 = vld [vmem:[#allocation2 + $0x20] sm:$0xff] (!%p3710_p12)  ;;  %3314 = vst [vmem:[#allocation4 + $0x18] sm:$0xff] (!%p3710_p12), %v3298_v49 }
 0xa25   : > { %v4217_v55 = vpop.eup %4216  ;;  %v3282_v21 = vmul.f32 %v4215_v63, %v3280_v12  ;;  %3315 = vst [vmem:[#allocation4 + $0x20] sm:$0xff] (!%p3710_p12), %v3299_v9 }
 0xa26   : > { %v3283_v60 = vmul.f32 %v4217_v55, %v3281_v14 }
 0xa27   : > { %v3284_v53 = vadd.f32 %v4211_v17, %v3282_v21 }
 0xa28   : > { %v3285_v51 = vadd.f32 %v4213_v18, %v3283_v60 }
 0xa29   : > { %3287 = vst [vmem:[#allocation2 + $0x70] sm:$0xff] %v3284_v53  ;;  %3289 = vst [vmem:[%s4628_s1] sm:$0xff] %v3284_v53 }
 0xa2a   : > { %3288 = vst [vmem:[#allocation2 + $0x78] sm:$0xff] %v3285_v51  ;;  %3290 = vst [vmem:[%s4628_s1 + $0x8] sm:$0xff] %v3285_v51 }
 0xa30   : > { %v3309_v52 = vld [vmem:[#allocation2 + $0x70] sm:$0xff] }
 0xa31   : > { %3325 = vst [vmem:[#allocation4 + $0x70] sm:$0xff] %v3309_v52  ;;  %v3310_v13 = vld [vmem:[#allocation2 + $0x78] sm:$0xff] }
 0xa32   : > { %3326 = vst [vmem:[#allocation4 + $0x78] sm:$0xff] %v3310_v13 }
 0xa33 PF: > { %s4504_s30 = smov [#allocation4]  }
 0xa34   : > { %s3338_s10 = sshll.u32 %s4504_s30, 4  ;;  %s3339_s10 = int_to_ptr.vmem [resolvable:$true] %s3338_s10 }
 0xa35   : > { %s4410_s20 = scalar_lea.vmem %s3339_s10, 2048  ;;  %p4417_p3 = scmp.lt.s32.totalorder %s3339_s10, %s3339_s10 }
 0xa36   : > { %p4411_p13 = scmp.ne.s32.totalorder %s3339_s10, %s4410_s20  ;;  %p4418_p4 = scmp.lt.s32.totalorder %s4410_s20, %s4410_s20 }
 0xa38   : > { %p4412_p0 = pnand %p4411_p13, %p212_p2  ;;  %p4419_p7 = por %p4418_p4, %p4417_p3 }
 0xa3a   : > { %p4413_p1 = pneg %p4412_p0 }
 0xa3c   : > { %p4420_p8 = pnand %p4419_p7, %p4413_p1 }
 0xa3e   : > { %4423 = shalt.err (!%p4420_p8)
}
 0xa3f   : > { %s4424_s12 = scalar_lea.hbm %s6710_s6, 2048 }
 0xa40   : > { %p4425_p9 = scmp.ne.s32.totalorder %s6710_s6, %s4424_s12  ;;  %p4430_p12 = scmp.lt.u32.totalorder %s4424_s12, %s6710_s6 }
 0xa42   : > { %p4426_p10 = pnand %p4425_p9, %p212_p2 }
 0xa44   : > { %p4427_p11 = pneg %p4426_p10 }
 0xa46   : > { %p4432_p13 = pnand %p4430_p12, %p4427_p11 }
 0xa48   : > { %4435 = shalt.err (!%p4432_p13)
}
 0xa49   : > { %s4505_s18 = smov 256   ;;  %s4506_s16 = smov 16  }
 0xa4a   : > { %3723 = dma.vmem_to_hbm [thread:$0]  (%p212_p2), %s3339_s10, 2048, %s6710_s6, [#allocation5], %s4505_s18, %s4505_s18, %s4506_s16  }
 0xa4b   : > { %s3719_s17 = sshll.u32 %s4569_s28, 8  ;;  %s3355_s8 = sshll.u32 %s4628_s1, 4  ;;  %s3356_s8 = int_to_ptr.vmem [resolvable:$true] %s3355_s8 }
 0xa4c   : > { %s6662_s30 = scalar_lea.hbm %s6711_s7, %s3719_s17  ;;  %s7293_s20 = sand.u32 1, %s4494_s25  }
 0xa4d   : > { %s3328_s29 = scalar_lea.sflag [#allocation7], %s7293_s20  ;;  %s4436_s19 = scalar_lea.vmem %s3356_s8, 256 }
 0xa4e   : > { %p4437_p0 = scmp.ne.s32.totalorder %s3356_s8, %s4436_s19  ;;  %s4507_s12 = smov [#allocation6]  }
 0xa4f   : > { %s4440_s14 = sshll.u32 %s4507_s12, 4  ;;  %s4441_s14 = int_to_ptr.vmem [resolvable:$false] %s4440_s14 }
 0xa50   : > { %p4438_p1 = pnand %p4437_p0, %p4588_p5  ;;  %s4442_s15 = scalar_lea.vmem %s4441_s14, 512 }
 0xa51   : > { %p4443_p4 = scmp.lt.s32.totalorder %s3356_s8, %s4441_s14  ;;  %p4444_p7 = scmp.lt.s32.totalorder %s4442_s15, %s4436_s19 }
 0xa52   : > { %p4439_p3 = pneg %p4438_p1 }
 0xa53   : > { %p4445_p8 = por %p4444_p7, %p4443_p4 }
 0xa55   : > { %p4446_p9 = pnand %p4445_p8, %p4439_p3 }
 0xa57   : > { %4449 = shalt.err (!%p4446_p9)
}
 0xa58   : > { %s4450_s1 = scalar_lea.hbm %s6662_s30, 256  ;;  %s4454_s9 = scalar_lea.hbm %s6711_s7, 768 }
 0xa59   : > { %p4451_p10 = scmp.ne.s32.totalorder %s6662_s30, %s4450_s1  ;;  %p4455_p13 = scmp.lt.u32.totalorder %s6662_s30, %s6711_s7 }
 0xa5a   : > { %p4456_p0 = scmp.lt.u32.totalorder %s4454_s9, %s4450_s1  ;;  %p4458_p3 = scmp.lt.u32.totalorder %s4450_s1, %s6662_s30 }
 0xa5b   : > { %p4452_p11 = pnand %p4451_p10, %p4588_p5 }
 0xa5c   : > { %p4457_p1 = por %p4456_p0, %p4455_p13 }
 0xa5d   : > { %p4453_p12 = pneg %p4452_p11 }
 0xa5e   : > { %p4459_p4 = por %p4458_p3, %p4457_p1 }
 0xa60   : > { %p4460_p7 = pnand %p4459_p4, %p4453_p12 }
 0xa62   : > { %4463 = shalt.err (!%p4460_p7)
}
 0xa63   : > { %3724 = dma.vmem_to_hbm [thread:$0]  (%p4588_p5), %s3356_s8, 256, %s6662_s30, %s3328_s29  }
 0xa64   : > { %4481 = dma.done.wait (%p212_p2), [#allocation5], 2048  }
 0xa65   : > { %4483 = vsyncadd (%p212_p2), [#allocation5], 4294965248 }
 0xa66 PF: > { %p3734_p8 = scmp.ge.s32.totalorder %s4502_s27, 2  ;;  %s3371_s23 = sand.u32 1, %s4490_s24  }
 0xa67   : > { %s3372_s17 = scalar_lea.sflag [#allocation7], %s3371_s23 }
 0xa68   : > { %p3729_p9 = pnand %p3734_p8, %p4592_p6 }
 0xa6a   : > { %4485 = dma.done.wait (!%p3729_p9), %s3372_s17, 256  }
 0xa6b   : > { %4487 = vsyncadd (!%p3729_p9), %s3372_s17, 4294967040  ;;  %s7295_s27 = sld [smem:[#allocation11_spill]]  ;;  %s7296_s11 = sld [smem:[#allocation10_spill]] }
 0xa6c   : > { %s7297_s26 = sld [smem:[#allocation12_spill]]  ;;  %s7298_s24 = smov %s4494_s25 }
 0xa71   : > { %p19_p5 = scmp.ge.s32.totalorder %s7295_s27, 5   ;;  %s7299_s25 = smov %s7296_s11 }
 0xa73   :  { %21 = sbr.rel (!%p19_p5) target bundleno = 6 (0x6), region = 122 }
 0xa7a   :  { %3377 = vsyncpa [#allocation5], 1 }
 0xa7b   :  { %3379 = vsyncpa [#allocation5 + $0x1], 1 }
 0xa7c   :  { %3380 = vsyncpa [#allocation7], 1 }
 0xa7d   :  { %3382 = vsyncpa [#allocation7 + $0x1], 1 }

</bundles_post_ra>
